<compile_context>
chip_gen: v5e
topology: v5e:2x2
jax: 0.10.0
libtpu: 0.0.40
codegen_flags: <defaults>
</compile_context>

<pallas_src>
import functools

import jax
import jax.numpy as jnp
from jax.experimental import pallas as pl
from jax.experimental.pallas import tpu as pltpu

_LANE = 128
_VMEM_LIMIT = 48 * 1024 * 1024              # scoped VMEM limit (<= v7x 64 MiB physical)
_PROJ_FUSED_VMEM_BUDGET = 24 * 1024 * 1024  # resident-weight projection allowed below this


# ------------------------------ tiling helpers ------------------------------
def _round_up(n, m):
    return (n + m - 1) // m * m


def _largest_divisor_tile(n, cap, quantum):
    """Largest t <= cap with n % t == 0 and t % quantum == 0, else the full extent."""
    if n <= cap:
        return n
    t = (cap // quantum) * quantum
    while t >= quantum:
        if n % t == 0:
            return t
        t -= quantum
    return n


def _pick_row_tile(n, cap=256):
    """Row tile (sublane quantum 16 for bf16 operands) + padded row count (no fallback blowup)."""
    cap = max(16, (cap // 16) * 16)
    tm = min(_round_up(n, 16), cap)
    return tm, _round_up(n, tm)


def _batch_tile(b):
    """Split the batch across cores only when tiles stay sublane-aligned (>= 8 rows)."""
    for bt in range(b // 2, 7, -1):
        if b % bt == 0 and bt % 8 == 0:
            return bt
    return b


# ---------------- parallel row-tiled matmul (+bias, optional fused log_softmax) ----------------
def _rows_matmul_kernel(x_ref, w_ref, b_ref, o_ref, *, apply_log_softmax):
    acc = jnp.dot(x_ref[...], w_ref[...],
                  preferred_element_type=jnp.float32) + b_ref[...]        # (tm, M) f32
    if apply_log_softmax:
        m = jnp.max(acc, axis=-1, keepdims=True)
        s = acc - m
        acc = s - jnp.log(jnp.sum(jnp.exp(s), axis=-1, keepdims=True))
    o_ref[...] = acc.astype(o_ref.dtype)


def rows_matmul_bias(x2d, w_t, b, *, out_dtype, apply_log_softmax=False, row_tile_cap=256):
    """x2d: (N, K) bf16, w_t: (K, M) bf16 (resident), b: (M,) f32 -> (N, M) out_dtype."""
    n, k = x2d.shape
    m = w_t.shape[1]
    tm, n_pad = _pick_row_tile(n, row_tile_cap)
    if n_pad != n:
        x2d = jnp.pad(x2d, ((0, n_pad - n), (0, 0)))
    out = pl.pallas_call(
        functools.partial(_rows_matmul_kernel, apply_log_softmax=apply_log_softmax),
        out_shape=jax.ShapeDtypeStruct((n_pad, m), out_dtype),
        grid_spec=pltpu.PrefetchScalarGridSpec(
            num_scalar_prefetch=0,
            grid=(n_pad // tm,),
            in_specs=[
                pl.BlockSpec((tm, k), lambda i: (i, 0)),   # activation row tile (bf16)
                pl.BlockSpec((k, m), lambda i: (0, 0)),    # resident weight (bf16)
                pl.BlockSpec((1, m), lambda i: (0, 0)),    # resident bias (f32)
            ],
            out_specs=pl.BlockSpec((tm, m), lambda i: (i, 0)),
        ),
        compiler_params=pltpu.CompilerParams(
            dimension_semantics=("parallel",),
            vmem_limit_bytes=_VMEM_LIMIT),
    )(x2d, w_t, b[None, :])
    return out[:n] if n_pad != n else out


# -------------- V-tiled projection + online two-pass log_softmax (large vocab) --------------
def _proj_logsoftmax_streamed_kernel(x_ref, w_ref, b_ref, o_ref, m_scr, l_scr):
    p = pl.program_id(1)   # pass 0: accumulate max / sumexp ; pass 1: write normalized output
    j = pl.program_id(2)   # vocab tile

    logits = jnp.dot(x_ref[...], w_ref[...],
                     preferred_element_type=jnp.float32) + b_ref[...]     # (tm, tv) f32

    @pl.when(jnp.logical_and(p == 0, j == 0))
    def _():
        m_scr[...] = jnp.full_like(m_scr, -1e30)
        l_scr[...] = jnp.zeros_like(l_scr)

    @pl.when(p == 0)
    def _():
        m_new = jnp.maximum(m_scr[...], jnp.max(logits, axis=-1, keepdims=True))
        l_scr[...] = (l_scr[...] * jnp.exp(m_scr[...] - m_new)
                      + jnp.sum(jnp.exp(logits - m_new), axis=-1, keepdims=True))
        m_scr[...] = m_new

    @pl.when(p == 1)
    def _():
        lse = m_scr[...] + jnp.log(l_scr[...])
        o_ref[...] = (logits - lse).astype(o_ref.dtype)


def rows_proj_logsoftmax_streamed(x2d, w_t, b, *, v_tile=512, row_tile_cap=256):
    n, k = x2d.shape
    m = w_t.shape[1]                                  # Vp (multiple of 128)
    tm, n_pad = _pick_row_tile(n, row_tile_cap)
    if n_pad != n:
        x2d = jnp.pad(x2d, ((0, n_pad - n), (0, 0)))
    tv = _largest_divisor_tile(m, v_tile, _LANE)
    out = pl.pallas_call(
        _proj_logsoftmax_streamed_kernel,
        out_shape=jax.ShapeDtypeStruct((n_pad, m), jnp.float32),
        grid_spec=pltpu.PrefetchScalarGridSpec(
            num_scalar_prefetch=0,
            grid=(n_pad // tm, 2, m // tv),
            in_specs=[
                pl.BlockSpec((tm, k), lambda i, p, j: (i, 0)),   # row tile, resident over (p, j)
                pl.BlockSpec((k, tv), lambda i, p, j: (0, j)),   # streamed weight V-tile
                pl.BlockSpec((1, tv), lambda i, p, j: (0, j)),   # streamed bias V-tile
            ],
            # pass 0 parks on block (i, 0) (no write), pass 1 writes (i, j): zero extra writeback
            out_specs=pl.BlockSpec((tm, tv), lambda i, p, j: (i, j * p)),
            scratch_shapes=[pltpu.VMEM((tm, 1), jnp.float32),    # running max
                            pltpu.VMEM((tm, 1), jnp.float32)],   # running sum-exp
        ),
        compiler_params=pltpu.CompilerParams(
            dimension_semantics=("parallel", "arbitrary", "arbitrary"),
            vmem_limit_bytes=_VMEM_LIMIT),
    )(x2d, w_t, b[None, :])
    return out[:n] if n_pad != n else out


def project_logsoftmax(x2d, w_t, b, *, vocab_tile=None, row_tile_cap=256):
    """Pick resident-weight fused kernel vs V-streamed kernel from the VMEM working set."""
    n, k = x2d.shape
    m = w_t.shape[1]
    tm, _ = _pick_row_tile(n, row_tile_cap)
    fused_bytes = 2 * (k * m * 2 + m * 4) + 2 * (tm * k * 2) + 2 * (tm * m * 4)
    if vocab_tile is None and fused_bytes <= _PROJ_FUSED_VMEM_BUDGET:
        return rows_matmul_bias(x2d, w_t, b, out_dtype=jnp.float32, apply_log_softmax=True)
    return rows_proj_logsoftmax_streamed(x2d, w_t, b, v_tile=vocab_tile or 512)


# ----------------------------- GRU recurrence kernel -----------------------------
def _gru_chunk_kernel(gi_ref, whh_ref, bhh_ref, h0_ref, y_ref, hlast_ref, h_scr, *, chunk):
    c = pl.program_id(1)            # time-chunk index (sequential)

    @pl.when(c == 0)
    def _():
        h_scr[...] = h0_ref[...]

    cp = h_scr.shape[-1]
    whh = whh_ref[...]              # (Cp, 3Cp) bf16 — resident, hoisted once per chunk
    bhh = bhh_ref[...]              # (1, 3Cp) f32

    h = h_scr[...]                  # single VMEM scratch read per chunk; h stays in vregs
    # TODO(synk): for large Cp switch this statically-unrolled chunk loop to
    # lax.fori_loop(..., unroll=k) with h as the carry to bound vreg live ranges,
    # and hold W_hh in MXU weight registers (matmul_push_rhs / matmul_acc_lhs).
    for t in range(chunk):
        gi_t = gi_ref[:, t, :].astype(jnp.float32)                      # (bt, 3Cp)
        gh = jnp.dot(h.astype(jnp.bfloat16), whh,
                     preferred_element_type=jnp.float32) + bhh          # (bt, 3Cp)

        # PyTorch gate order: r, z, n — slices are lane-aligned (Cp % 128 == 0)
        i_r, i_z, i_n = gi_t[:, :cp], gi_t[:, cp:2 * cp], gi_t[:, 2 * cp:]
        h_r, h_z, h_n = gh[:, :cp], gh[:, cp:2 * cp], gh[:, 2 * cp:]

        r = jax.nn.sigmoid(i_r + h_r)
        z = jax.nn.sigmoid(i_z + h_z)
        n = jnp.tanh(i_n + r * h_n)
        h = (1.0 - z) * n + z * h

        y_ref[:, t, :] = h.astype(y_ref.dtype)                          # full-lane store

    h_scr[...] = h                  # single VMEM scratch write per chunk

    @pl.when(c == pl.num_programs(1) - 1)
    def _():
        hlast_ref[...] = h.astype(hlast_ref.dtype)


def gru_pallas(gi, h0, whh_t, bhh, *, time_chunk_cap=16):
    """gi: (B, S, 3Cp) bf16 precomputed input gates, h0: (B, Cp) f32,
    whh_t: (Cp, 3Cp) bf16, bhh: (3Cp,) f32 -> (y (B,S,Cp) bf16, h_last (B,Cp) f32)."""
    b, s, g = gi.shape
    cp = h0.shape[-1]
    bt = _batch_tile(b)                                 # 'parallel' batch split (v7x 2-TC)
    t_chunk = _largest_divisor_tile(s, time_chunk_cap, 16)
    kern = functools.partial(_gru_chunk_kernel, chunk=t_chunk)
    return pl.pallas_call(
        kern,
        out_shape=(jax.ShapeDtypeStruct((b, s, cp), jnp.bfloat16),
                   jax.ShapeDtypeStruct((b, cp), jnp.float32)),
        grid_spec=pltpu.PrefetchScalarGridSpec(
            num_scalar_prefetch=0,
            grid=(b // bt, s // t_chunk),
            in_specs=[
                pl.BlockSpec((bt, t_chunk, g), lambda bi, c: (bi, c, 0)),  # gi time-chunk
                pl.BlockSpec((cp, g), lambda bi, c: (0, 0)),               # W_hh^T resident
                pl.BlockSpec((1, g), lambda bi, c: (0, 0)),                # b_hh   resident
                pl.BlockSpec((bt, cp), lambda bi, c: (bi, 0)),             # h0
            ],
            out_specs=(
                pl.BlockSpec((bt, t_chunk, cp), lambda bi, c: (bi, c, 0)),  # y time-chunk
                pl.BlockSpec((bt, cp), lambda bi, c: (bi, 0)),              # final hidden
            ),
            scratch_shapes=[pltpu.VMEM((bt, cp), jnp.float32)],             # hidden carry
        ),
        compiler_params=pltpu.CompilerParams(
            dimension_semantics=("parallel", "arbitrary"),
            vmem_limit_bytes=_VMEM_LIMIT),
    )(gi, whh_t, bhh[None, :], h0)


# --------------------------------- model glue ---------------------------------
def init_params(key, vocabulary_size, context_size):
    k = jax.random.split(key, 7)
    s = 1.0 / float(context_size) ** 0.5
    u = lambda kk, shape: jax.random.uniform(kk, shape, jnp.float32, -s, s)
    return dict(
        embedding=jax.random.normal(k[0], (vocabulary_size, context_size), jnp.float32),
        w_ih=u(k[1], (3 * context_size, context_size)),   # nn.GRU weight_ih_l0
        w_hh=u(k[2], (3 * context_size, context_size)),   # nn.GRU weight_hh_l0
        b_ih=u(k[3], (3 * context_size,)),
        b_hh=u(k[4], (3 * context_size,)),
        w_out=u(k[5], (vocabulary_size, context_size)),   # nn.Linear weight
        b_out=u(k[6], (vocabulary_size,)),
    )


def _pad_gate_params(w, bias, c, cp):
    """Pad PyTorch-stacked [r; z; n] GRU weights (3C, C) / (3C,) to (3Cp, Cp) / (3Cp,)."""
    w3 = w.reshape(3, c, c)
    b3 = bias.reshape(3, c)
    w3p = jnp.zeros((3, cp, cp), w.dtype).at[:, :c, :c].set(w3)
    b3p = jnp.zeros((3, cp), bias.dtype).at[:, :c].set(b3)
    return w3p.reshape(3 * cp, cp), b3p.reshape(3 * cp)


def decoder_forward(params, tokens, hidden, *, vocab_tile=None):
    """tokens: (B, S) int32 ids; hidden: (B, C) f32.
    Returns (log_probs (B, S, V), hidden (1, B, C))."""
    b, s = tokens.shape
    v, c = params["embedding"].shape
    cp = _round_up(c, _LANE)
    vp = _round_up(v, _LANE)

    # ---- lane-dense, bf16 weight prep (in production pre-pack once, not per call) ----
    emb_tbl = jnp.zeros((v, cp), jnp.bfloat16).at[:, :c].set(
        params["embedding"].astype(jnp.bfloat16))
    w_ih_p, b_ih_p = _pad_gate_params(params["w_ih"], params["b_ih"], c, cp)
    w_hh_p, b_hh_p = _pad_gate_params(params["w_hh"], params["b_hh"], c, cp)
    w_ih_t = w_ih_p.T.astype(jnp.bfloat16)                                   # (Cp, 3Cp)
    w_hh_t = w_hh_p.T.astype(jnp.bfloat16)                                   # (Cp, 3Cp)
    w_out_t = jnp.zeros((cp, vp), jnp.bfloat16).at[:c, :v].set(
        params["w_out"].T.astype(jnp.bfloat16))                              # (Cp, Vp)
    b_out_p = jnp.full((vp,), -1e9, jnp.float32).at[:v].set(params["b_out"])  # pad cols vanish

    # Embedding gather directly in batch-major (B, S, Cp) bf16 layout (no activation transposes).
    # TODO(synk): fuse the gather into the gi matmul via scalar-prefetched token ids + manual
    # DMA gather to avoid materializing emb in HBM on bandwidth-limited v5e/v6e.
    emb = jnp.take(emb_tbl, tokens, axis=0)                                  # (B, S, Cp) bf16
    h0 = jnp.zeros((b, cp), jnp.float32).at[:, :c].set(hidden.reshape(b, -1))

    # Hoisted input-gate matmul for ALL timesteps (parallel, row-tiled, bf16 in HBM).
    gi2d = rows_matmul_bias(emb.reshape(b * s, cp), w_ih_t, b_ih_p,
                            out_dtype=jnp.bfloat16)                          # (B*S, 3Cp)
    gi = gi2d.reshape(b, s, 3 * cp)

    # Sequential GRU recurrence, chunked over time, batch-parallel across cores.
    y, h_last = gru_pallas(gi, h0, w_hh_t, b_hh_p)                           # (B,S,Cp), (B,Cp)

    # Output projection + log_softmax over vocab (resident-weight or V-streamed).
    logp2d = project_logsoftmax(y.reshape(b * s, cp), w_out_t, b_out_p,
                                vocab_tile=vocab_tile)                       # (B*S, Vp) f32
    out = logp2d.reshape(b, s, vp)[:, :, :v]                                 # drop padded vocab
    return out, h_last[None, :, :c]                                          # hidden: (1, B, C)


# ------------------------------ pure-JAX reference ------------------------------
def decoder_forward_ref(params, tokens, hidden):
    c = params["embedding"].shape[1]
    emb = jnp.take(params["embedding"], tokens, axis=0)            # (B, S, C)
    x = jnp.transpose(emb, (1, 0, 2))                              # (S, B, C)
    h0 = hidden.reshape(hidden.shape[0], -1)
    w_ih, w_hh = params["w_ih"], params["w_hh"]
    b_ih, b_hh = params["b_ih"], params["b_hh"]

    def step(h, x_t):
        gi = x_t @ w_ih.T + b_ih
        gh = h @ w_hh.T + b_hh
        i_r, i_z, i_n = gi[:, :c], gi[:, c:2 * c], gi[:, 2 * c:]
        h_r, h_z, h_n = gh[:, :c], gh[:, c:2 * c], gh[:, 2 * c:]
        r = jax.nn.sigmoid(i_r + h_r)
        z = jax.nn.sigmoid(i_z + h_z)
        n = jnp.tanh(i_n + r * h_n)
        h_new = (1.0 - z) * n + z * h
        return h_new, h_new

    h_last, y = jax.lax.scan(step, h0, x)                          # (B,C), (S,B,C)
    logits = jnp.einsum("sbc,vc->sbv", y, params["w_out"]) + params["b_out"]
    logp = jax.nn.log_softmax(logits, axis=-1)
    return jnp.transpose(logp, (1, 0, 2)), h_last[None]


if __name__ == "__main__":
    def _run_case(seed, b, s, c, v, vocab_tile=None, label=""):
        key = jax.random.PRNGKey(seed)
        kp, kt, kh = jax.random.split(key, 3)
        params = init_params(kp, v, c)
        tokens = jax.random.randint(kt, (b, s), 0, v, dtype=jnp.int32)
        hidden = jax.random.normal(kh, (b, c), jnp.float32)

        fwd = jax.jit(functools.partial(decoder_forward, vocab_tile=vocab_tile))
        out, h = fwd(params, tokens, hidden)
        jax.block_until_ready((out, h))

        assert out.shape == (b, s, v), label
        assert h.shape == (1, b, c), label
        # log_softmax sanity: each vocab row sums to ~1 in prob space
        assert bool(jnp.allclose(jnp.sum(jnp.exp(out), axis=-1), 1.0, atol=1e-3)), label

        out_ref, h_ref = jax.jit(decoder_forward_ref)(params, tokens, hidden)
        jax.block_until_ready((out_ref, h_ref))
        # bf16 MXU operands (f32 accumulation) -> slightly looser tolerance than pure f32
        assert bool(jnp.allclose(out, out_ref, atol=7e-2, rtol=7e-2)), label
        assert bool(jnp.allclose(h, h_ref, atol=7e-2, rtol=7e-2)), label

    # toy shapes from the spec (exercises padding C=32->128, V=64->128, fused projection)
    _run_case(0, b=2, s=8, c=32, v=64, label="toy")
    # larger case: odd C/V padding, multi-chunk recurrence, and the V-tiled
    # streamed online log_softmax projection path (forced via vocab_tile)
    _run_case(0, b=4, s=16, c=48, v=1000, vocab_tile=256, label="streamed")

    print("KERNEL_OK")
</pallas_src>

<mosaic_0001>
module attributes {stable_mosaic.version = 11 : i64} {
  func.func @_rows_matmul_kernel(%arg0: i32, %arg1: memref<16x128xbf16, #tpu.memory_space<vmem>>, %arg2: memref<128x384xbf16, #tpu.memory_space<vmem>>, %arg3: memref<1x384xf32, #tpu.memory_space<vmem>>, %arg4: memref<16x384xbf16, #tpu.memory_space<vmem>>) attributes {dimension_semantics = [#tpu.dimension_semantics<parallel>], iteration_bounds = array<i64: 1>, scalar_prefetch = 0 : i64, scratch_operands = 0 : i64, tpu.core_type = #tpu.core_type<tc>, window_params = [{transform_indices = @transform_0, window_bounds = array<i64: 16, 128>}, {pipeline_mode = #tpu.pipeline_mode<synchronous>, transform_indices = @transform_1, window_bounds = array<i64: 128, 384>}, {pipeline_mode = #tpu.pipeline_mode<synchronous>, transform_indices = @transform_2, window_bounds = array<i64: 1, 384>}, {transform_indices = @transform_3, window_bounds = array<i64: 16, 384>}]} {
    %c0 = arith.constant 0 : index
    %c0_0 = arith.constant 0 : index
    %0 = vector.load %arg1[%c0, %c0_0] : memref<16x128xbf16, #tpu.memory_space<vmem>>, vector<16x128xbf16>
    %c0_1 = arith.constant 0 : index
    %c0_2 = arith.constant 0 : index
    %1 = vector.load %arg2[%c0_1, %c0_2] : memref<128x384xbf16, #tpu.memory_space<vmem>>, vector<128x384xbf16>
    %cst = arith.constant dense<0.000000e+00> : vector<16x384xf32>
    %2 = tpu.matmul %0, %1, %cst {dimension_numbers = #tpu.dot_dimension_numbers<[1], [0], [0], [1], [0, 0, 1, 1], [], []>} : vector<16x128xbf16>, vector<128x384xbf16>, vector<16x384xf32> -> vector<16x384xf32>
    %c0_3 = arith.constant 0 : index
    %c0_4 = arith.constant 0 : index
    %3 = vector.load %arg3[%c0_3, %c0_4] : memref<1x384xf32, #tpu.memory_space<vmem>>, vector<1x384xf32>
    %4 = vector.broadcast %3 : vector<1x384xf32> to vector<16x384xf32>
    %5 = arith.addf %2, %4 : vector<16x384xf32>
    %6 = arith.truncf %5 : vector<16x384xf32> to vector<16x384xbf16>
    %c0_5 = arith.constant 0 : index
    %c0_6 = arith.constant 0 : index
    %7 = vector.load %arg4[%c0_5, %c0_6] : memref<16x384xbf16, #tpu.memory_space<vmem>>, vector<16x384xbf16>
    tpu.vector_store %arg4[%c0_5, %c0_6], %6 {strides = array<i32>} : memref<16x384xbf16, #tpu.memory_space<vmem>>, vector<16x384xbf16>,
    return
  }
  func.func @transform_0(%arg0: i32) -> (i32, i32) {
    %c0_i32 = arith.constant 0 : i32
    %c0_i32_0 = arith.constant 0 : i32
    return %arg0, %c0_i32 : i32, i32
  }
  func.func @transform_1(%arg0: i32) -> (i32, i32) {
    %c0_i32 = arith.constant 0 : i32
    %c0_i32_0 = arith.constant 0 : i32
    %c0_i32_1 = arith.constant 0 : i32
    return %c0_i32, %c0_i32_0 : i32, i32
  }
  func.func @transform_2(%arg0: i32) -> (i32, i32) {
    %c0_i32 = arith.constant 0 : i32
    %c0_i32_0 = arith.constant 0 : i32
    %c0_i32_1 = arith.constant 0 : i32
    return %c0_i32, %c0_i32_0 : i32, i32
  }
  func.func @transform_3(%arg0: i32) -> (i32, i32) {
    %c0_i32 = arith.constant 0 : i32
    %c0_i32_0 = arith.constant 0 : i32
    return %arg0, %c0_i32 : i32, i32
  }
}

module attributes {stable_mosaic.version = 11 : i64} {
  func.func @_gru_chunk_kernel(%arg0: i32, %arg1: i32, %arg2: memref<2x8x384xbf16, #tpu.memory_space<vmem>>, %arg3: memref<128x384xbf16, #tpu.memory_space<vmem>>, %arg4: memref<1x384xf32, #tpu.memory_space<vmem>>, %arg5: memref<2x128xf32, #tpu.memory_space<vmem>>, %arg6: memref<2x8x128xbf16, #tpu.memory_space<vmem>>, %arg7: memref<2x128xf32, #tpu.memory_space<vmem>>, %arg8: memref<2x128xf32, #tpu.memory_space<vmem>>) attributes {dimension_semantics = [#tpu.dimension_semantics<parallel>, #tpu.dimension_semantics<arbitrary>], iteration_bounds = array<i64: 1, 1>, scalar_prefetch = 0 : i64, scratch_operands = 1 : i64, tpu.core_type = #tpu.core_type<tc>, window_params = [{transform_indices = @transform_0, window_bounds = array<i64: 2, 8, 384>}, {pipeline_mode = #tpu.pipeline_mode<synchronous>, transform_indices = @transform_1, window_bounds = array<i64: 128, 384>}, {pipeline_mode = #tpu.pipeline_mode<synchronous>, transform_indices = @transform_2, window_bounds = array<i64: 1, 384>}, {transform_indices = @transform_3, window_bounds = array<i64: 2, 128>}, {transform_indices = @transform_4, window_bounds = array<i64: 2, 8, 128>}, {transform_indices = @transform_5, window_bounds = array<i64: 2, 128>}]} {
    %c0_i32 = arith.constant 0 : i32
    %0 = arith.cmpi eq, %arg1, %c0_i32 : i32
    %1 = arith.extui %0 : i1 to i32
    %c0_i32_0 = arith.constant 0 : i32
    %2 = arith.cmpi ne, %1, %c0_i32_0 : i32
    scf.if %2 {
      %c0_82 = arith.constant 0 : index
      %c0_83 = arith.constant 0 : index
      %306 = vector.load %arg5[%c0_82, %c0_83] : memref<2x128xf32, #tpu.memory_space<vmem>>, vector<2x128xf32>
      %c0_84 = arith.constant 0 : index
      %c0_85 = arith.constant 0 : index
      %307 = vector.load %arg8[%c0_84, %c0_85] : memref<2x128xf32, #tpu.memory_space<vmem>>, vector<2x128xf32>
      tpu.vector_store %arg8[%c0_84, %c0_85], %306 {strides = array<i32>} : memref<2x128xf32, #tpu.memory_space<vmem>>, vector<2x128xf32>,
    } else {
    }
    %c0 = arith.constant 0 : index
    %c0_1 = arith.constant 0 : index
    %3 = vector.load %arg3[%c0, %c0_1] : memref<128x384xbf16, #tpu.memory_space<vmem>>, vector<128x384xbf16>
    %c0_2 = arith.constant 0 : index
    %c0_3 = arith.constant 0 : index
    %4 = vector.load %arg4[%c0_2, %c0_3] : memref<1x384xf32, #tpu.memory_space<vmem>>, vector<1x384xf32>
    %c0_4 = arith.constant 0 : index
    %c0_5 = arith.constant 0 : index
    %5 = vector.load %arg8[%c0_4, %c0_5] : memref<2x128xf32, #tpu.memory_space<vmem>>, vector<2x128xf32>
    %c0_6 = arith.constant 0 : index
    %c0_7 = arith.constant 0 : index
    %c0_8 = arith.constant 0 : index
    %6 = vector.load %arg2[%c0_6, %c0_7, %c0_8] : memref<2x8x384xbf16, #tpu.memory_space<vmem>>, vector<2x1x384xbf16>
    %7 = vector.shape_cast %6 : vector<2x1x384xbf16> to vector<2x384xbf16>
    %8 = arith.extf %7 : vector<2x384xbf16> to vector<2x384xf32>
    %9 = arith.truncf %5 : vector<2x128xf32> to vector<2x128xbf16>
    %cst = arith.constant dense<0.000000e+00> : vector<2x384xf32>
    %10 = tpu.matmul %9, %3, %cst {dimension_numbers = #tpu.dot_dimension_numbers<[1], [0], [0], [1], [0, 0, 1, 1], [], []>} : vector<2x128xbf16>, vector<128x384xbf16>, vector<2x384xf32> -> vector<2x384xf32>
    %11 = vector.broadcast %4 : vector<1x384xf32> to vector<2x384xf32>
    %12 = arith.addf %10, %11 : vector<2x384xf32>
    %13 = vector.extract_strided_slice %8 {offsets = [0, 0], sizes = [2, 128], strides = [1, 1]} : vector<2x384xf32> to vector<2x128xf32>
    %14 = vector.extract_strided_slice %8 {offsets = [0, 128], sizes = [2, 128], strides = [1, 1]} : vector<2x384xf32> to vector<2x128xf32>
    %15 = vector.extract_strided_slice %8 {offsets = [0, 256], sizes = [2, 128], strides = [1, 1]} : vector<2x384xf32> to vector<2x128xf32>
    %16 = vector.extract_strided_slice %12 {offsets = [0, 0], sizes = [2, 128], strides = [1, 1]} : vector<2x384xf32> to vector<2x128xf32>
    %17 = vector.extract_strided_slice %12 {offsets = [0, 128], sizes = [2, 128], strides = [1, 1]} : vector<2x384xf32> to vector<2x128xf32>
    %18 = vector.extract_strided_slice %12 {offsets = [0, 256], sizes = [2, 128], strides = [1, 1]} : vector<2x384xf32> to vector<2x128xf32>
    %19 = arith.addf %13, %16 : vector<2x128xf32>
    %20 = arith.negf %19 : vector<2x128xf32>
    %21 = math.exp %20 : vector<2x128xf32>
    %cst_9 = arith.constant 1.000000e+00 : f32
    %22 = vector.broadcast %cst_9 : f32 to vector<2x128xf32>
    %23 = arith.addf %22, %21 : vector<2x128xf32>
    %24 = arith.divf %22, %23 : vector<2x128xf32>
    %25 = arith.addf %14, %17 : vector<2x128xf32>
    %26 = arith.negf %25 : vector<2x128xf32>
    %27 = math.exp %26 : vector<2x128xf32>
    %cst_10 = arith.constant 1.000000e+00 : f32
    %28 = vector.broadcast %cst_10 : f32 to vector<2x128xf32>
    %29 = arith.addf %28, %27 : vector<2x128xf32>
    %30 = arith.divf %28, %29 : vector<2x128xf32>
    %31 = arith.mulf %24, %18 : vector<2x128xf32>
    %32 = arith.addf %15, %31 : vector<2x128xf32>
    %33 = math.tanh %32 : vector<2x128xf32>
    %cst_11 = arith.constant 1.000000e+00 : f32
    %34 = vector.broadcast %cst_11 : f32 to vector<2x128xf32>
    %35 = arith.subf %34, %30 : vector<2x128xf32>
    %36 = arith.mulf %35, %33 : vector<2x128xf32>
    %37 = arith.mulf %30, %5 : vector<2x128xf32>
    %38 = arith.addf %36, %37 : vector<2x128xf32>
    %39 = arith.truncf %38 : vector<2x128xf32> to vector<2x128xbf16>
    %c0_12 = arith.constant 0 : index
    %c0_13 = arith.constant 0 : index
    %c0_14 = arith.constant 0 : index
    %40 = vector.load %arg6[%c0_12, %c0_13, %c0_14] : memref<2x8x128xbf16, #tpu.memory_space<vmem>>, vector<2x1x128xbf16>
    %41 = vector.shape_cast %40 : vector<2x1x128xbf16> to vector<2x128xbf16>
    %42 = vector.shape_cast %39 : vector<2x128xbf16> to vector<2x1x128xbf16>
    tpu.vector_store %arg6[%c0_12, %c0_13, %c0_14], %42 {strides = array<i32>} : memref<2x8x128xbf16, #tpu.memory_space<vmem>>, vector<2x1x128xbf16>,
    %c0_15 = arith.constant 0 : index
    %c1 = arith.constant 1 : index
    %c0_16 = arith.constant 0 : index
    %43 = vector.load %arg2[%c0_15, %c1, %c0_16] : memref<2x8x384xbf16, #tpu.memory_space<vmem>>, vector<2x1x384xbf16>
    %44 = vector.shape_cast %43 : vector<2x1x384xbf16> to vector<2x384xbf16>
    %45 = arith.extf %44 : vector<2x384xbf16> to vector<2x384xf32>
    %46 = arith.truncf %38 : vector<2x128xf32> to vector<2x128xbf16>
    %cst_17 = arith.constant dense<0.000000e+00> : vector<2x384xf32>
    %47 = tpu.matmul %46, %3, %cst_17 {dimension_numbers = #tpu.dot_dimension_numbers<[1], [0], [0], [1], [0, 0, 1, 1], [], []>} : vector<2x128xbf16>, vector<128x384xbf16>, vector<2x384xf32> -> vector<2x384xf32>
    %48 = vector.broadcast %4 : vector<1x384xf32> to vector<2x384xf32>
    %49 = arith.addf %47, %48 : vector<2x384xf32>
    %50 = vector.extract_strided_slice %45 {offsets = [0, 0], sizes = [2, 128], strides = [1, 1]} : vector<2x384xf32> to vector<2x128xf32>
    %51 = vector.extract_strided_slice %45 {offsets = [0, 128], sizes = [2, 128], strides = [1, 1]} : vector<2x384xf32> to vector<2x128xf32>
    %52 = vector.extract_strided_slice %45 {offsets = [0, 256], sizes = [2, 128], strides = [1, 1]} : vector<2x384xf32> to vector<2x128xf32>
    %53 = vector.extract_strided_slice %49 {offsets = [0, 0], sizes = [2, 128], strides = [1, 1]} : vector<2x384xf32> to vector<2x128xf32>
    %54 = vector.extract_strided_slice %49 {offsets = [0, 128], sizes = [2, 128], strides = [1, 1]} : vector<2x384xf32> to vector<2x128xf32>
    %55 = vector.extract_strided_slice %49 {offsets = [0, 256], sizes = [2, 128], strides = [1, 1]} : vector<2x384xf32> to vector<2x128xf32>
    %56 = arith.addf %50, %53 : vector<2x128xf32>
    %57 = arith.negf %56 : vector<2x128xf32>
    %58 = math.exp %57 : vector<2x128xf32>
    %cst_18 = arith.constant 1.000000e+00 : f32
    %59 = vector.broadcast %cst_18 : f32 to vector<2x128xf32>
    %60 = arith.addf %59, %58 : vector<2x128xf32>
    %61 = arith.divf %59, %60 : vector<2x128xf32>
    %62 = arith.addf %51, %54 : vector<2x128xf32>
    %63 = arith.negf %62 : vector<2x128xf32>
    %64 = math.exp %63 : vector<2x128xf32>
    %cst_19 = arith.constant 1.000000e+00 : f32
    %65 = vector.broadcast %cst_19 : f32 to vector<2x128xf32>
    %66 = arith.addf %65, %64 : vector<2x128xf32>
    %67 = arith.divf %65, %66 : vector<2x128xf32>
    %68 = arith.mulf %61, %55 : vector<2x128xf32>
    %69 = arith.addf %52, %68 : vector<2x128xf32>
    %70 = math.tanh %69 : vector<2x128xf32>
    %cst_20 = arith.constant 1.000000e+00 : f32
    %71 = vector.broadcast %cst_20 : f32 to vector<2x128xf32>
    %72 = arith.subf %71, %67 : vector<2x128xf32>
    %73 = arith.mulf %72, %70 : vector<2x128xf32>
    %74 = arith.mulf %67, %38 : vector<2x128xf32>
    %75 = arith.addf %73, %74 : vector<2x128xf32>
    %76 = arith.truncf %75 : vector<2x128xf32> to vector<2x128xbf16>
    %c0_21 = arith.constant 0 : index
    %c1_22 = arith.constant 1 : index
    %c0_23 = arith.constant 0 : index
    %77 = vector.load %arg6[%c0_21, %c1_22, %c0_23] : memref<2x8x128xbf16, #tpu.memory_space<vmem>>, vector<2x1x128xbf16>
    %78 = vector.shape_cast %77 : vector<2x1x128xbf16> to vector<2x128xbf16>
    %79 = vector.shape_cast %76 : vector<2x128xbf16> to vector<2x1x128xbf16>
    tpu.vector_store %arg6[%c0_21, %c1_22, %c0_23], %79 {strides = array<i32>} : memref<2x8x128xbf16, #tpu.memory_space<vmem>>, vector<2x1x128xbf16>,
    %c0_24 = arith.constant 0 : index
    %c2 = arith.constant 2 : index
    %c0_25 = arith.constant 0 : index
    %80 = vector.load %arg2[%c0_24, %c2, %c0_25] : memref<2x8x384xbf16, #tpu.memory_space<vmem>>, vector<2x1x384xbf16>
    %81 = vector.shape_cast %80 : vector<2x1x384xbf16> to vector<2x384xbf16>
    %82 = arith.extf %81 : vector<2x384xbf16> to vector<2x384xf32>
    %83 = arith.truncf %75 : vector<2x128xf32> to vector<2x128xbf16>
    %cst_26 = arith.constant dense<0.000000e+00> : vector<2x384xf32>
    %84 = tpu.matmul %83, %3, %cst_26 {dimension_numbers = #tpu.dot_dimension_numbers<[1], [0], [0], [1], [0, 0, 1, 1], [], []>} : vector<2x128xbf16>, vector<128x384xbf16>, vector<2x384xf32> -> vector<2x384xf32>
    %85 = vector.broadcast %4 : vector<1x384xf32> to vector<2x384xf32>
    %86 = arith.addf %84, %85 : vector<2x384xf32>
    %87 = vector.extract_strided_slice %82 {offsets = [0, 0], sizes = [2, 128], strides = [1, 1]} : vector<2x384xf32> to vector<2x128xf32>
    %88 = vector.extract_strided_slice %82 {offsets = [0, 128], sizes = [2, 128], strides = [1, 1]} : vector<2x384xf32> to vector<2x128xf32>
    %89 = vector.extract_strided_slice %82 {offsets = [0, 256], sizes = [2, 128], strides = [1, 1]} : vector<2x384xf32> to vector<2x128xf32>
    %90 = vector.extract_strided_slice %86 {offsets = [0, 0], sizes = [2, 128], strides = [1, 1]} : vector<2x384xf32> to vector<2x128xf32>
    %91 = vector.extract_strided_slice %86 {offsets = [0, 128], sizes = [2, 128], strides = [1, 1]} : vector<2x384xf32> to vector<2x128xf32>
    %92 = vector.extract_strided_slice %86 {offsets = [0, 256], sizes = [2, 128], strides = [1, 1]} : vector<2x384xf32> to vector<2x128xf32>
    %93 = arith.addf %87, %90 : vector<2x128xf32>
    %94 = arith.negf %93 : vector<2x128xf32>
    %95 = math.exp %94 : vector<2x128xf32>
    %cst_27 = arith.constant 1.000000e+00 : f32
    %96 = vector.broadcast %cst_27 : f32 to vector<2x128xf32>
    %97 = arith.addf %96, %95 : vector<2x128xf32>
    %98 = arith.divf %96, %97 : vector<2x128xf32>
    %99 = arith.addf %88, %91 : vector<2x128xf32>
    %100 = arith.negf %99 : vector<2x128xf32>
    %101 = math.exp %100 : vector<2x128xf32>
    %cst_28 = arith.constant 1.000000e+00 : f32
    %102 = vector.broadcast %cst_28 : f32 to vector<2x128xf32>
    %103 = arith.addf %102, %101 : vector<2x128xf32>
    %104 = arith.divf %102, %103 : vector<2x128xf32>
    %105 = arith.mulf %98, %92 : vector<2x128xf32>
    %106 = arith.addf %89, %105 : vector<2x128xf32>
    %107 = math.tanh %106 : vector<2x128xf32>
    %cst_29 = arith.constant 1.000000e+00 : f32
    %108 = vector.broadcast %cst_29 : f32 to vector<2x128xf32>
    %109 = arith.subf %108, %104 : vector<2x128xf32>
    %110 = arith.mulf %109, %107 : vector<2x128xf32>
    %111 = arith.mulf %104, %75 : vector<2x128xf32>
    %112 = arith.addf %110, %111 : vector<2x128xf32>
    %113 = arith.truncf %112 : vector<2x128xf32> to vector<2x128xbf16>
    %c0_30 = arith.constant 0 : index
    %c2_31 = arith.constant 2 : index
    %c0_32 = arith.constant 0 : index
    %114 = vector.load %arg6[%c0_30, %c2_31, %c0_32] : memref<2x8x128xbf16, #tpu.memory_space<vmem>>, vector<2x1x128xbf16>
    %115 = vector.shape_cast %114 : vector<2x1x128xbf16> to vector<2x128xbf16>
    %116 = vector.shape_cast %113 : vector<2x128xbf16> to vector<2x1x128xbf16>
    tpu.vector_store %arg6[%c0_30, %c2_31, %c0_32], %116 {strides = array<i32>} : memref<2x8x128xbf16, #tpu.memory_space<vmem>>, vector<2x1x128xbf16>,
    %c0_33 = arith.constant 0 : index
    %c3 = arith.constant 3 : index
    %c0_34 = arith.constant 0 : index
    %117 = vector.load %arg2[%c0_33, %c3, %c0_34] : memref<2x8x384xbf16, #tpu.memory_space<vmem>>, vector<2x1x384xbf16>
    %118 = vector.shape_cast %117 : vector<2x1x384xbf16> to vector<2x384xbf16>
    %119 = arith.extf %118 : vector<2x384xbf16> to vector<2x384xf32>
    %120 = arith.truncf %112 : vector<2x128xf32> to vector<2x128xbf16>
    %cst_35 = arith.constant dense<0.000000e+00> : vector<2x384xf32>
    %121 = tpu.matmul %120, %3, %cst_35 {dimension_numbers = #tpu.dot_dimension_numbers<[1], [0], [0], [1], [0, 0, 1, 1], [], []>} : vector<2x128xbf16>, vector<128x384xbf16>, vector<2x384xf32> -> vector<2x384xf32>
    %122 = vector.broadcast %4 : vector<1x384xf32> to vector<2x384xf32>
    %123 = arith.addf %121, %122 : vector<2x384xf32>
    %124 = vector.extract_strided_slice %119 {offsets = [0, 0], sizes = [2, 128], strides = [1, 1]} : vector<2x384xf32> to vector<2x128xf32>
    %125 = vector.extract_strided_slice %119 {offsets = [0, 128], sizes = [2, 128], strides = [1, 1]} : vector<2x384xf32> to vector<2x128xf32>
    %126 = vector.extract_strided_slice %119 {offsets = [0, 256], sizes = [2, 128], strides = [1, 1]} : vector<2x384xf32> to vector<2x128xf32>
    %127 = vector.extract_strided_slice %123 {offsets = [0, 0], sizes = [2, 128], strides = [1, 1]} : vector<2x384xf32> to vector<2x128xf32>
    %128 = vector.extract_strided_slice %123 {offsets = [0, 128], sizes = [2, 128], strides = [1, 1]} : vector<2x384xf32> to vector<2x128xf32>
    %129 = vector.extract_strided_slice %123 {offsets = [0, 256], sizes = [2, 128], strides = [1, 1]} : vector<2x384xf32> to vector<2x128xf32>
    %130 = arith.addf %124, %127 : vector<2x128xf32>
    %131 = arith.negf %130 : vector<2x128xf32>
    %132 = math.exp %131 : vector<2x128xf32>
    %cst_36 = arith.constant 1.000000e+00 : f32
    %133 = vector.broadcast %cst_36 : f32 to vector<2x128xf32>
    %134 = arith.addf %133, %132 : vector<2x128xf32>
    %135 = arith.divf %133, %134 : vector<2x128xf32>
    %136 = arith.addf %125, %128 : vector<2x128xf32>
    %137 = arith.negf %136 : vector<2x128xf32>
    %138 = math.exp %137 : vector<2x128xf32>
    %cst_37 = arith.constant 1.000000e+00 : f32
    %139 = vector.broadcast %cst_37 : f32 to vector<2x128xf32>
    %140 = arith.addf %139, %138 : vector<2x128xf32>
    %141 = arith.divf %139, %140 : vector<2x128xf32>
    %142 = arith.mulf %135, %129 : vector<2x128xf32>
    %143 = arith.addf %126, %142 : vector<2x128xf32>
    %144 = math.tanh %143 : vector<2x128xf32>
    %cst_38 = arith.constant 1.000000e+00 : f32
    %145 = vector.broadcast %cst_38 : f32 to vector<2x128xf32>
    %146 = arith.subf %145, %141 : vector<2x128xf32>
    %147 = arith.mulf %146, %144 : vector<2x128xf32>
    %148 = arith.mulf %141, %112 : vector<2x128xf32>
    %149 = arith.addf %147, %148 : vector<2x128xf32>
    %150 = arith.truncf %149 : vector<2x128xf32> to vector<2x128xbf16>
    %c0_39 = arith.constant 0 : index
    %c3_40 = arith.constant 3 : index
    %c0_41 = arith.constant 0 : index
    %151 = vector.load %arg6[%c0_39, %c3_40, %c0_41] : memref<2x8x128xbf16, #tpu.memory_space<vmem>>, vector<2x1x128xbf16>
    %152 = vector.shape_cast %151 : vector<2x1x128xbf16> to vector<2x128xbf16>
    %153 = vector.shape_cast %150 : vector<2x128xbf16> to vector<2x1x128xbf16>
    tpu.vector_store %arg6[%c0_39, %c3_40, %c0_41], %153 {strides = array<i32>} : memref<2x8x128xbf16, #tpu.memory_space<vmem>>, vector<2x1x128xbf16>,
    %c0_42 = arith.constant 0 : index
    %c4 = arith.constant 4 : index
    %c0_43 = arith.constant 0 : index
    %154 = vector.load %arg2[%c0_42, %c4, %c0_43] : memref<2x8x384xbf16, #tpu.memory_space<vmem>>, vector<2x1x384xbf16>
    %155 = vector.shape_cast %154 : vector<2x1x384xbf16> to vector<2x384xbf16>
    %156 = arith.extf %155 : vector<2x384xbf16> to vector<2x384xf32>
    %157 = arith.truncf %149 : vector<2x128xf32> to vector<2x128xbf16>
    %cst_44 = arith.constant dense<0.000000e+00> : vector<2x384xf32>
    %158 = tpu.matmul %157, %3, %cst_44 {dimension_numbers = #tpu.dot_dimension_numbers<[1], [0], [0], [1], [0, 0, 1, 1], [], []>} : vector<2x128xbf16>, vector<128x384xbf16>, vector<2x384xf32> -> vector<2x384xf32>
    %159 = vector.broadcast %4 : vector<1x384xf32> to vector<2x384xf32>
    %160 = arith.addf %158, %159 : vector<2x384xf32>
    %161 = vector.extract_strided_slice %156 {offsets = [0, 0], sizes = [2, 128], strides = [1, 1]} : vector<2x384xf32> to vector<2x128xf32>
    %162 = vector.extract_strided_slice %156 {offsets = [0, 128], sizes = [2, 128], strides = [1, 1]} : vector<2x384xf32> to vector<2x128xf32>
    %163 = vector.extract_strided_slice %156 {offsets = [0, 256], sizes = [2, 128], strides = [1, 1]} : vector<2x384xf32> to vector<2x128xf32>
    %164 = vector.extract_strided_slice %160 {offsets = [0, 0], sizes = [2, 128], strides = [1, 1]} : vector<2x384xf32> to vector<2x128xf32>
    %165 = vector.extract_strided_slice %160 {offsets = [0, 128], sizes = [2, 128], strides = [1, 1]} : vector<2x384xf32> to vector<2x128xf32>
    %166 = vector.extract_strided_slice %160 {offsets = [0, 256], sizes = [2, 128], strides = [1, 1]} : vector<2x384xf32> to vector<2x128xf32>
    %167 = arith.addf %161, %164 : vector<2x128xf32>
    %168 = arith.negf %167 : vector<2x128xf32>
    %169 = math.exp %168 : vector<2x128xf32>
    %cst_45 = arith.constant 1.000000e+00 : f32
    %170 = vector.broadcast %cst_45 : f32 to vector<2x128xf32>
    %171 = arith.addf %170, %169 : vector<2x128xf32>
    %172 = arith.divf %170, %171 : vector<2x128xf32>
    %173 = arith.addf %162, %165 : vector<2x128xf32>
    %174 = arith.negf %173 : vector<2x128xf32>
    %175 = math.exp %174 : vector<2x128xf32>
    %cst_46 = arith.constant 1.000000e+00 : f32
    %176 = vector.broadcast %cst_46 : f32 to vector<2x128xf32>
    %177 = arith.addf %176, %175 : vector<2x128xf32>
    %178 = arith.divf %176, %177 : vector<2x128xf32>
    %179 = arith.mulf %172, %166 : vector<2x128xf32>
    %180 = arith.addf %163, %179 : vector<2x128xf32>
    %181 = math.tanh %180 : vector<2x128xf32>
    %cst_47 = arith.constant 1.000000e+00 : f32
    %182 = vector.broadcast %cst_47 : f32 to vector<2x128xf32>
    %183 = arith.subf %182, %178 : vector<2x128xf32>
    %184 = arith.mulf %183, %181 : vector<2x128xf32>
    %185 = arith.mulf %178, %149 : vector<2x128xf32>
    %186 = arith.addf %184, %185 : vector<2x128xf32>
    %187 = arith.truncf %186 : vector<2x128xf32> to vector<2x128xbf16>
    %c0_48 = arith.constant 0 : index
    %c4_49 = arith.constant 4 : index
    %c0_50 = arith.constant 0 : index
    %188 = vector.load %arg6[%c0_48, %c4_49, %c0_50] : memref<2x8x128xbf16, #tpu.memory_space<vmem>>, vector<2x1x128xbf16>
    %189 = vector.shape_cast %188 : vector<2x1x128xbf16> to vector<2x128xbf16>
    %190 = vector.shape_cast %187 : vector<2x128xbf16> to vector<2x1x128xbf16>
    tpu.vector_store %arg6[%c0_48, %c4_49, %c0_50], %190 {strides = array<i32>} : memref<2x8x128xbf16, #tpu.memory_space<vmem>>, vector<2x1x128xbf16>,
    %c0_51 = arith.constant 0 : index
    %c5 = arith.constant 5 : index
    %c0_52 = arith.constant 0 : index
    %191 = vector.load %arg2[%c0_51, %c5, %c0_52] : memref<2x8x384xbf16, #tpu.memory_space<vmem>>, vector<2x1x384xbf16>
    %192 = vector.shape_cast %191 : vector<2x1x384xbf16> to vector<2x384xbf16>
    %193 = arith.extf %192 : vector<2x384xbf16> to vector<2x384xf32>
    %194 = arith.truncf %186 : vector<2x128xf32> to vector<2x128xbf16>
    %cst_53 = arith.constant dense<0.000000e+00> : vector<2x384xf32>
    %195 = tpu.matmul %194, %3, %cst_53 {dimension_numbers = #tpu.dot_dimension_numbers<[1], [0], [0], [1], [0, 0, 1, 1], [], []>} : vector<2x128xbf16>, vector<128x384xbf16>, vector<2x384xf32> -> vector<2x384xf32>
    %196 = vector.broadcast %4 : vector<1x384xf32> to vector<2x384xf32>
    %197 = arith.addf %195, %196 : vector<2x384xf32>
    %198 = vector.extract_strided_slice %193 {offsets = [0, 0], sizes = [2, 128], strides = [1, 1]} : vector<2x384xf32> to vector<2x128xf32>
    %199 = vector.extract_strided_slice %193 {offsets = [0, 128], sizes = [2, 128], strides = [1, 1]} : vector<2x384xf32> to vector<2x128xf32>
    %200 = vector.extract_strided_slice %193 {offsets = [0, 256], sizes = [2, 128], strides = [1, 1]} : vector<2x384xf32> to vector<2x128xf32>
    %201 = vector.extract_strided_slice %197 {offsets = [0, 0], sizes = [2, 128], strides = [1, 1]} : vector<2x384xf32> to vector<2x128xf32>
    %202 = vector.extract_strided_slice %197 {offsets = [0, 128], sizes = [2, 128], strides = [1, 1]} : vector<2x384xf32> to vector<2x128xf32>
    %203 = vector.extract_strided_slice %197 {offsets = [0, 256], sizes = [2, 128], strides = [1, 1]} : vector<2x384xf32> to vector<2x128xf32>
    %204 = arith.addf %198, %201 : vector<2x128xf32>
    %205 = arith.negf %204 : vector<2x128xf32>
    %206 = math.exp %205 : vector<2x128xf32>
    %cst_54 = arith.constant 1.000000e+00 : f32
    %207 = vector.broadcast %cst_54 : f32 to vector<2x128xf32>
    %208 = arith.addf %207, %206 : vector<2x128xf32>
    %209 = arith.divf %207, %208 : vector<2x128xf32>
    %210 = arith.addf %199, %202 : vector<2x128xf32>
    %211 = arith.negf %210 : vector<2x128xf32>
    %212 = math.exp %211 : vector<2x128xf32>
    %cst_55 = arith.constant 1.000000e+00 : f32
    %213 = vector.broadcast %cst_55 : f32 to vector<2x128xf32>
    %214 = arith.addf %213, %212 : vector<2x128xf32>
    %215 = arith.divf %213, %214 : vector<2x128xf32>
    %216 = arith.mulf %209, %203 : vector<2x128xf32>
    %217 = arith.addf %200, %216 : vector<2x128xf32>
    %218 = math.tanh %217 : vector<2x128xf32>
    %cst_56 = arith.constant 1.000000e+00 : f32
    %219 = vector.broadcast %cst_56 : f32 to vector<2x128xf32>
    %220 = arith.subf %219, %215 : vector<2x128xf32>
    %221 = arith.mulf %220, %218 : vector<2x128xf32>
    %222 = arith.mulf %215, %186 : vector<2x128xf32>
    %223 = arith.addf %221, %222 : vector<2x128xf32>
    %224 = arith.truncf %223 : vector<2x128xf32> to vector<2x128xbf16>
    %c0_57 = arith.constant 0 : index
    %c5_58 = arith.constant 5 : index
    %c0_59 = arith.constant 0 : index
    %225 = vector.load %arg6[%c0_57, %c5_58, %c0_59] : memref<2x8x128xbf16, #tpu.memory_space<vmem>>, vector<2x1x128xbf16>
    %226 = vector.shape_cast %225 : vector<2x1x128xbf16> to vector<2x128xbf16>
    %227 = vector.shape_cast %224 : vector<2x128xbf16> to vector<2x1x128xbf16>
    tpu.vector_store %arg6[%c0_57, %c5_58, %c0_59], %227 {strides = array<i32>} : memref<2x8x128xbf16, #tpu.memory_space<vmem>>, vector<2x1x128xbf16>,
    %c0_60 = arith.constant 0 : index
    %c6 = arith.constant 6 : index
    %c0_61 = arith.constant 0 : index
    %228 = vector.load %arg2[%c0_60, %c6, %c0_61] : memref<2x8x384xbf16, #tpu.memory_space<vmem>>, vector<2x1x384xbf16>
    %229 = vector.shape_cast %228 : vector<2x1x384xbf16> to vector<2x384xbf16>
    %230 = arith.extf %229 : vector<2x384xbf16> to vector<2x384xf32>
    %231 = arith.truncf %223 : vector<2x128xf32> to vector<2x128xbf16>
    %cst_62 = arith.constant dense<0.000000e+00> : vector<2x384xf32>
    %232 = tpu.matmul %231, %3, %cst_62 {dimension_numbers = #tpu.dot_dimension_numbers<[1], [0], [0], [1], [0, 0, 1, 1], [], []>} : vector<2x128xbf16>, vector<128x384xbf16>, vector<2x384xf32> -> vector<2x384xf32>
    %233 = vector.broadcast %4 : vector<1x384xf32> to vector<2x384xf32>
    %234 = arith.addf %232, %233 : vector<2x384xf32>
    %235 = vector.extract_strided_slice %230 {offsets = [0, 0], sizes = [2, 128], strides = [1, 1]} : vector<2x384xf32> to vector<2x128xf32>
    %236 = vector.extract_strided_slice %230 {offsets = [0, 128], sizes = [2, 128], strides = [1, 1]} : vector<2x384xf32> to vector<2x128xf32>
    %237 = vector.extract_strided_slice %230 {offsets = [0, 256], sizes = [2, 128], strides = [1, 1]} : vector<2x384xf32> to vector<2x128xf32>
    %238 = vector.extract_strided_slice %234 {offsets = [0, 0], sizes = [2, 128], strides = [1, 1]} : vector<2x384xf32> to vector<2x128xf32>
    %239 = vector.extract_strided_slice %234 {offsets = [0, 128], sizes = [2, 128], strides = [1, 1]} : vector<2x384xf32> to vector<2x128xf32>
    %240 = vector.extract_strided_slice %234 {offsets = [0, 256], sizes = [2, 128], strides = [1, 1]} : vector<2x384xf32> to vector<2x128xf32>
    %241 = arith.addf %235, %238 : vector<2x128xf32>
    %242 = arith.negf %241 : vector<2x128xf32>
    %243 = math.exp %242 : vector<2x128xf32>
    %cst_63 = arith.constant 1.000000e+00 : f32
    %244 = vector.broadcast %cst_63 : f32 to vector<2x128xf32>
    %245 = arith.addf %244, %243 : vector<2x128xf32>
    %246 = arith.divf %244, %245 : vector<2x128xf32>
    %247 = arith.addf %236, %239 : vector<2x128xf32>
    %248 = arith.negf %247 : vector<2x128xf32>
    %249 = math.exp %248 : vector<2x128xf32>
    %cst_64 = arith.constant 1.000000e+00 : f32
    %250 = vector.broadcast %cst_64 : f32 to vector<2x128xf32>
    %251 = arith.addf %250, %249 : vector<2x128xf32>
    %252 = arith.divf %250, %251 : vector<2x128xf32>
    %253 = arith.mulf %246, %240 : vector<2x128xf32>
    %254 = arith.addf %237, %253 : vector<2x128xf32>
    %255 = math.tanh %254 : vector<2x128xf32>
    %cst_65 = arith.constant 1.000000e+00 : f32
    %256 = vector.broadcast %cst_65 : f32 to vector<2x128xf32>
    %257 = arith.subf %256, %252 : vector<2x128xf32>
    %258 = arith.mulf %257, %255 : vector<2x128xf32>
    %259 = arith.mulf %252, %223 : vector<2x128xf32>
    %260 = arith.addf %258, %259 : vector<2x128xf32>
    %261 = arith.truncf %260 : vector<2x128xf32> to vector<2x128xbf16>
    %c0_66 = arith.constant 0 : index
    %c6_67 = arith.constant 6 : index
    %c0_68 = arith.constant 0 : index
    %262 = vector.load %arg6[%c0_66, %c6_67, %c0_68] : memref<2x8x128xbf16, #tpu.memory_space<vmem>>, vector<2x1x128xbf16>
    %263 = vector.shape_cast %262 : vector<2x1x128xbf16> to vector<2x128xbf16>
    %264 = vector.shape_cast %261 : vector<2x128xbf16> to vector<2x1x128xbf16>
    tpu.vector_store %arg6[%c0_66, %c6_67, %c0_68], %264 {strides = array<i32>} : memref<2x8x128xbf16, #tpu.memory_space<vmem>>, vector<2x1x128xbf16>,
    %c0_69 = arith.constant 0 : index
    %c7 = arith.constant 7 : index
    %c0_70 = arith.constant 0 : index
    %265 = vector.load %arg2[%c0_69, %c7, %c0_70] : memref<2x8x384xbf16, #tpu.memory_space<vmem>>, vector<2x1x384xbf16>
    %266 = vector.shape_cast %265 : vector<2x1x384xbf16> to vector<2x384xbf16>
    %267 = arith.extf %266 : vector<2x384xbf16> to vector<2x384xf32>
    %268 = arith.truncf %260 : vector<2x128xf32> to vector<2x128xbf16>
    %cst_71 = arith.constant dense<0.000000e+00> : vector<2x384xf32>
    %269 = tpu.matmul %268, %3, %cst_71 {dimension_numbers = #tpu.dot_dimension_numbers<[1], [0], [0], [1], [0, 0, 1, 1], [], []>} : vector<2x128xbf16>, vector<128x384xbf16>, vector<2x384xf32> -> vector<2x384xf32>
    %270 = vector.broadcast %4 : vector<1x384xf32> to vector<2x384xf32>
    %271 = arith.addf %269, %270 : vector<2x384xf32>
    %272 = vector.extract_strided_slice %267 {offsets = [0, 0], sizes = [2, 128], strides = [1, 1]} : vector<2x384xf32> to vector<2x128xf32>
    %273 = vector.extract_strided_slice %267 {offsets = [0, 128], sizes = [2, 128], strides = [1, 1]} : vector<2x384xf32> to vector<2x128xf32>
    %274 = vector.extract_strided_slice %267 {offsets = [0, 256], sizes = [2, 128], strides = [1, 1]} : vector<2x384xf32> to vector<2x128xf32>
    %275 = vector.extract_strided_slice %271 {offsets = [0, 0], sizes = [2, 128], strides = [1, 1]} : vector<2x384xf32> to vector<2x128xf32>
    %276 = vector.extract_strided_slice %271 {offsets = [0, 128], sizes = [2, 128], strides = [1, 1]} : vector<2x384xf32> to vector<2x128xf32>
    %277 = vector.extract_strided_slice %271 {offsets = [0, 256], sizes = [2, 128], strides = [1, 1]} : vector<2x384xf32> to vector<2x128xf32>
    %278 = arith.addf %272, %275 : vector<2x128xf32>
    %279 = arith.negf %278 : vector<2x128xf32>
    %280 = math.exp %279 : vector<2x128xf32>
    %cst_72 = arith.constant 1.000000e+00 : f32
    %281 = vector.broadcast %cst_72 : f32 to vector<2x128xf32>
    %282 = arith.addf %281, %280 : vector<2x128xf32>
    %283 = arith.divf %281, %282 : vector<2x128xf32>
    %284 = arith.addf %273, %276 : vector<2x128xf32>
    %285 = arith.negf %284 : vector<2x128xf32>
    %286 = math.exp %285 : vector<2x128xf32>
    %cst_73 = arith.constant 1.000000e+00 : f32
    %287 = vector.broadcast %cst_73 : f32 to vector<2x128xf32>
    %288 = arith.addf %287, %286 : vector<2x128xf32>
    %289 = arith.divf %287, %288 : vector<2x128xf32>
    %290 = arith.mulf %283, %277 : vector<2x128xf32>
    %291 = arith.addf %274, %290 : vector<2x128xf32>
    %292 = math.tanh %291 : vector<2x128xf32>
    %cst_74 = arith.constant 1.000000e+00 : f32
    %293 = vector.broadcast %cst_74 : f32 to vector<2x128xf32>
    %294 = arith.subf %293, %289 : vector<2x128xf32>
    %295 = arith.mulf %294, %292 : vector<2x128xf32>
    %296 = arith.mulf %289, %260 : vector<2x128xf32>
    %297 = arith.addf %295, %296 : vector<2x128xf32>
    %298 = arith.truncf %297 : vector<2x128xf32> to vector<2x128xbf16>
    %c0_75 = arith.constant 0 : index
    %c7_76 = arith.constant 7 : index
    %c0_77 = arith.constant 0 : index
    %299 = vector.load %arg6[%c0_75, %c7_76, %c0_77] : memref<2x8x128xbf16, #tpu.memory_space<vmem>>, vector<2x1x128xbf16>
    %300 = vector.shape_cast %299 : vector<2x1x128xbf16> to vector<2x128xbf16>
    %301 = vector.shape_cast %298 : vector<2x128xbf16> to vector<2x1x128xbf16>
    tpu.vector_store %arg6[%c0_75, %c7_76, %c0_77], %301 {strides = array<i32>} : memref<2x8x128xbf16, #tpu.memory_space<vmem>>, vector<2x1x128xbf16>,
    %c0_78 = arith.constant 0 : index
    %c0_79 = arith.constant 0 : index
    %302 = vector.load %arg8[%c0_78, %c0_79] : memref<2x128xf32, #tpu.memory_space<vmem>>, vector<2x128xf32>
    tpu.vector_store %arg8[%c0_78, %c0_79], %297 {strides = array<i32>} : memref<2x128xf32, #tpu.memory_space<vmem>>, vector<2x128xf32>,
    %c0_i32_80 = arith.constant 0 : i32
    %303 = arith.cmpi eq, %arg1, %c0_i32_80 : i32
    %304 = arith.extui %303 : i1 to i32
    %c0_i32_81 = arith.constant 0 : i32
    %305 = arith.cmpi ne, %304, %c0_i32_81 : i32
    scf.if %305 {
      %c0_82 = arith.constant 0 : index
      %c0_83 = arith.constant 0 : index
      %306 = vector.load %arg7[%c0_82, %c0_83] : memref<2x128xf32, #tpu.memory_space<vmem>>, vector<2x128xf32>
      tpu.vector_store %arg7[%c0_82, %c0_83], %297 {strides = array<i32>} : memref<2x128xf32, #tpu.memory_space<vmem>>, vector<2x128xf32>,
    } else {
    }
    return
  }
  func.func @transform_0(%arg0: i32, %arg1: i32) -> (i32, i32, i32) {
    %c0_i32 = arith.constant 0 : i32
    %c0_i32_0 = arith.constant 0 : i32
    return %arg0, %arg1, %c0_i32 : i32, i32, i32
  }
  func.func @transform_1(%arg0: i32, %arg1: i32) -> (i32, i32) {
    %c0_i32 = arith.constant 0 : i32
    %c0_i32_0 = arith.constant 0 : i32
    %c0_i32_1 = arith.constant 0 : i32
    return %c0_i32, %c0_i32_0 : i32, i32
  }
  func.func @transform_2(%arg0: i32, %arg1: i32) -> (i32, i32) {
    %c0_i32 = arith.constant 0 : i32
    %c0_i32_0 = arith.constant 0 : i32
    %c0_i32_1 = arith.constant 0 : i32
    return %c0_i32, %c0_i32_0 : i32, i32
  }
  func.func @transform_3(%arg0: i32, %arg1: i32) -> (i32, i32) {
    %c0_i32 = arith.constant 0 : i32
    %c0_i32_0 = arith.constant 0 : i32
    return %arg0, %c0_i32 : i32, i32
  }
  func.func @transform_4(%arg0: i32, %arg1: i32) -> (i32, i32, i32) {
    %c0_i32 = arith.constant 0 : i32
    %c0_i32_0 = arith.constant 0 : i32
    return %arg0, %arg1, %c0_i32 : i32, i32, i32
  }
  func.func @transform_5(%arg0: i32, %arg1: i32) -> (i32, i32) {
    %c0_i32 = arith.constant 0 : i32
    %c0_i32_0 = arith.constant 0 : i32
    return %arg0, %c0_i32 : i32, i32
  }
}

module attributes {stable_mosaic.version = 11 : i64} {
  func.func @_rows_matmul_kernel(%arg0: i32, %arg1: memref<16x128xbf16, #tpu.memory_space<vmem>>, %arg2: memref<128x128xbf16, #tpu.memory_space<vmem>>, %arg3: memref<1x128xf32, #tpu.memory_space<vmem>>, %arg4: memref<16x128xf32, #tpu.memory_space<vmem>>) attributes {dimension_semantics = [#tpu.dimension_semantics<parallel>], iteration_bounds = array<i64: 1>, scalar_prefetch = 0 : i64, scratch_operands = 0 : i64, tpu.core_type = #tpu.core_type<tc>, window_params = [{transform_indices = @transform_0, window_bounds = array<i64: 16, 128>}, {pipeline_mode = #tpu.pipeline_mode<synchronous>, transform_indices = @transform_1, window_bounds = array<i64: 128, 128>}, {pipeline_mode = #tpu.pipeline_mode<synchronous>, transform_indices = @transform_2, window_bounds = array<i64: 1, 128>}, {transform_indices = @transform_3, window_bounds = array<i64: 16, 128>}]} {
    %c0 = arith.constant 0 : index
    %c0_0 = arith.constant 0 : index
    %0 = vector.load %arg1[%c0, %c0_0] : memref<16x128xbf16, #tpu.memory_space<vmem>>, vector<16x128xbf16>
    %c0_1 = arith.constant 0 : index
    %c0_2 = arith.constant 0 : index
    %1 = vector.load %arg2[%c0_1, %c0_2] : memref<128x128xbf16, #tpu.memory_space<vmem>>, vector<128x128xbf16>
    %cst = arith.constant dense<0.000000e+00> : vector<16x128xf32>
    %2 = tpu.matmul %0, %1, %cst {dimension_numbers = #tpu.dot_dimension_numbers<[1], [0], [0], [1], [0, 0, 1, 1], [], []>} : vector<16x128xbf16>, vector<128x128xbf16>, vector<16x128xf32> -> vector<16x128xf32>
    %c0_3 = arith.constant 0 : index
    %c0_4 = arith.constant 0 : index
    %3 = vector.load %arg3[%c0_3, %c0_4] : memref<1x128xf32, #tpu.memory_space<vmem>>, vector<1x128xf32>
    %4 = vector.broadcast %3 : vector<1x128xf32> to vector<16x128xf32>
    %5 = arith.addf %2, %4 : vector<16x128xf32>
    %cst_5 = arith.constant dense<0xFF800000> : vector<16xf32>
    %6 = vector.multi_reduction <maximumf>, %5, %cst_5 [1] : vector<16x128xf32> to vector<16xf32>
    %7 = vector.shape_cast %6 : vector<16xf32> to vector<16x1xf32>
    %8 = vector.broadcast %7 : vector<16x1xf32> to vector<16x128xf32>
    %9 = arith.subf %5, %8 : vector<16x128xf32>
    %10 = math.exp %9 : vector<16x128xf32>
    %cst_6 = arith.constant dense<0.000000e+00> : vector<16xf32>
    %11 = vector.multi_reduction <add>, %10, %cst_6 [1] : vector<16x128xf32> to vector<16xf32>
    %12 = vector.shape_cast %11 : vector<16xf32> to vector<16x1xf32>
    %13 = math.log %12 : vector<16x1xf32>
    %14 = vector.broadcast %13 : vector<16x1xf32> to vector<16x128xf32>
    %15 = arith.subf %9, %14 : vector<16x128xf32>
    %c0_7 = arith.constant 0 : index
    %c0_8 = arith.constant 0 : index
    %16 = vector.load %arg4[%c0_7, %c0_8] : memref<16x128xf32, #tpu.memory_space<vmem>>, vector<16x128xf32>
    tpu.vector_store %arg4[%c0_7, %c0_8], %15 {strides = array<i32>} : memref<16x128xf32, #tpu.memory_space<vmem>>, vector<16x128xf32>,
    return
  }
  func.func @transform_0(%arg0: i32) -> (i32, i32) {
    %c0_i32 = arith.constant 0 : i32
    %c0_i32_0 = arith.constant 0 : i32
    return %arg0, %c0_i32 : i32, i32
  }
  func.func @transform_1(%arg0: i32) -> (i32, i32) {
    %c0_i32 = arith.constant 0 : i32
    %c0_i32_0 = arith.constant 0 : i32
    %c0_i32_1 = arith.constant 0 : i32
    return %c0_i32, %c0_i32_0 : i32, i32
  }
  func.func @transform_2(%arg0: i32) -> (i32, i32) {
    %c0_i32 = arith.constant 0 : i32
    %c0_i32_0 = arith.constant 0 : i32
    %c0_i32_1 = arith.constant 0 : i32
    return %c0_i32, %c0_i32_0 : i32, i32
  }
  func.func @transform_3(%arg0: i32) -> (i32, i32) {
    %c0_i32 = arith.constant 0 : i32
    %c0_i32_0 = arith.constant 0 : i32
    return %arg0, %c0_i32 : i32, i32
  }
}

</mosaic_0001>

<bundles_post_ra>
// kernel: decoder_forward.3
= control target key start
LH: loop header
LB: loop body
LE: loop exit
PB: predicated region body
PF: predicated region fallthrough
CT: control target
= control target key end

     0   :  { %s551_s1 = inlined_call_operand.vmem [shape: bf16[128,384], index: 1, kind: input, shape index: {}]   ;;  %s552_s0 = inlined_call_operand.vmem [shape: bf16[16,128], index: 0, kind: input, shape index: {}]   ;;  %s553_s2 = inlined_call_operand.vmem [shape: f32[1,384], index: 2, kind: input, shape index: {}]   ;;  %s554_s3 = inlined_call_operand.vmem [shape: bf16[16,384], index: 3, kind: output, shape index: {}]  }
   0x1   :  { %v334_v0 = vld [vmem:[%s551_s1 + $0xa8] sm:$0xf]  ;;  %v367_v1 = vld [vmem:[%s551_s1 + $0xb0] sm:$0xf0]  ;;  %v366_v2 = vld [vmem:[%s551_s1 + $0xac] sm:$0xf] }
   0x2   :  { %v335_v3 = vor.u32 %v367_v1, %v334_v0  ;;  %v336_v4 = vld [vmem:[%s551_s1 + $0xb4] sm:$0xf0]  ;;  %v342_v5 = vld [vmem:[%s551_s1 + $0xb0] sm:$0xf]  ;;  %v368_v6 = vld [vmem:[%s551_s1 + $0xb8] sm:$0xf0] }
   0x3   :  { %v339_v7 = vor.u32 %v366_v2, %v336_v4  ;;  %v343_v8 = vor.u32 %v368_v6, %v342_v5  ;;  %v322_v9 = vld [vmem:[%s551_s1 + $0x90] sm:$0xf]  ;;  %v364_v10 = vld [vmem:[%s551_s1 + $0x98] sm:$0xf0]  ;;  %v363_v11 = vld [vmem:[%s551_s1 + $0x94] sm:$0xf] }
   0x4   :  { %190 = vmatpush.bf16.msra.mxu0 %v335_v3  ;;  %v323_v12 = vor.u32 %v364_v10, %v322_v9  ;;  %v324_v13 = vld [vmem:[%s551_s1 + $0x9c] sm:$0xf0]  ;;  %v330_v14 = vld [vmem:[%s551_s1 + $0x98] sm:$0xf]  ;;  %v365_v15 = vld [vmem:[%s551_s1 + $0xa0] sm:$0xf0] }
   0x5   :  { %204 = vmatpush.bf16.msra.mxu1 %v339_v7  ;;  %218 = vmatpush.bf16.msra.mxu2 %v343_v8  ;;  %v327_v16 = vor.u32 %v363_v11, %v324_v13  ;;  %v331_v17 = vor.u32 %v365_v15, %v330_v14  ;;  %v310_v18 = vld [vmem:[%s551_s1 + $0x78] sm:$0xf]  ;;  %v361_v19 = vld [vmem:[%s551_s1 + $0x80] sm:$0xf0]  ;;  %v360_v20 = vld [vmem:[%s551_s1 + $0x7c] sm:$0xf] }
   0x6   :  { %v312_v21 = vld [vmem:[%s551_s1 + $0x84] sm:$0xf0]  ;;  %v318_v22 = vld [vmem:[%s551_s1 + $0x80] sm:$0xf]  ;;  %v362_v23 = vld [vmem:[%s551_s1 + $0x88] sm:$0xf0]  ;;  %v311_v24 = vor.u32 %v361_v19, %v310_v18 }
   0x7   :  { %v315_v25 = vor.u32 %v360_v20, %v312_v21  ;;  %v319_v26 = vor.u32 %v362_v23, %v318_v22  ;;  %v298_v27 = vld [vmem:[%s551_s1 + $0x60] sm:$0xf]  ;;  %v358_v28 = vld [vmem:[%s551_s1 + $0x68] sm:$0xf0]  ;;  %v357_v29 = vld [vmem:[%s551_s1 + $0x64] sm:$0xf] }
   0x8   :  { %191 = vmatpush.bf16.msra.mxu0 %v323_v12  ;;  %v300_v30 = vld [vmem:[%s551_s1 + $0x6c] sm:$0xf0]  ;;  %v306_v31 = vld [vmem:[%s551_s1 + $0x68] sm:$0xf]  ;;  %v359_v32 = vld [vmem:[%s551_s1 + $0x70] sm:$0xf0]  ;;  %v299_v33 = vor.u32 %v358_v28, %v298_v27 }
   0x9   :  { %205 = vmatpush.bf16.msra.mxu1 %v327_v16  ;;  %219 = vmatpush.bf16.msra.mxu2 %v331_v17  ;;  %v303_v34 = vor.u32 %v357_v29, %v300_v30  ;;  %v307_v35 = vor.u32 %v359_v32, %v306_v31  ;;  %v286_v36 = vld [vmem:[%s551_s1 + $0x48] sm:$0xf]  ;;  %v355_v37 = vld [vmem:[%s551_s1 + $0x50] sm:$0xf0]  ;;  %v354_v38 = vld [vmem:[%s551_s1 + $0x4c] sm:$0xf] }
   0xa   :  { %v288_v39 = vld [vmem:[%s551_s1 + $0x54] sm:$0xf0]  ;;  %v294_v40 = vld [vmem:[%s551_s1 + $0x50] sm:$0xf]  ;;  %v356_v41 = vld [vmem:[%s551_s1 + $0x58] sm:$0xf0]  ;;  %v287_v42 = vor.u32 %v355_v37, %v286_v36 }
   0xb   :  { %v291_v43 = vor.u32 %v354_v38, %v288_v39  ;;  %v295_v44 = vor.u32 %v356_v41, %v294_v40  ;;  %v274_v45 = vld [vmem:[%s551_s1 + $0x30] sm:$0xf]  ;;  %v352_v46 = vld [vmem:[%s551_s1 + $0x38] sm:$0xf0]  ;;  %v351_v47 = vld [vmem:[%s551_s1 + $0x34] sm:$0xf] }
   0xc   :  { %192 = vmatpush.bf16.msra.mxu0 %v311_v24  ;;  %v276_v48 = vld [vmem:[%s551_s1 + $0x3c] sm:$0xf0]  ;;  %v282_v49 = vld [vmem:[%s551_s1 + $0x38] sm:$0xf]  ;;  %v353_v50 = vld [vmem:[%s551_s1 + $0x40] sm:$0xf0]  ;;  %v275_v51 = vor.u32 %v352_v46, %v274_v45 }
   0xd   :  { %206 = vmatpush.bf16.msra.mxu1 %v315_v25  ;;  %220 = vmatpush.bf16.msra.mxu2 %v319_v26  ;;  %v279_v52 = vor.u32 %v351_v47, %v276_v48  ;;  %v283_v53 = vor.u32 %v353_v50, %v282_v49  ;;  %v262_v54 = vld [vmem:[%s551_s1 + $0x18] sm:$0xf]  ;;  %v349_v55 = vld [vmem:[%s551_s1 + $0x20] sm:$0xf0]  ;;  %v348_v56 = vld [vmem:[%s551_s1 + $0x1c] sm:$0xf] }
   0xe   :  { %v264_v57 = vld [vmem:[%s551_s1 + $0x24] sm:$0xf0]  ;;  %v270_v58 = vld [vmem:[%s551_s1 + $0x20] sm:$0xf]  ;;  %v350_v59 = vld [vmem:[%s551_s1 + $0x28] sm:$0xf0]  ;;  %v263_v60 = vor.u32 %v349_v55, %v262_v54 }
   0xf   :  { %v267_v61 = vor.u32 %v348_v56, %v264_v57  ;;  %v271_v62 = vor.u32 %v350_v59, %v270_v58  ;;  %v250_v63 = vld [vmem:[%s551_s1] sm:$0xf]  ;;  %v346_v0 = vld [vmem:[%s551_s1 + $0x8] sm:$0xf0]  ;;  %v345_v1 = vld [vmem:[%s551_s1 + $0x4] sm:$0xf] }
  0x10   :  { %193 = vmatpush.bf16.msra.mxu0 %v299_v33  ;;  %v252_v2 = vld [vmem:[%s551_s1 + $0xc] sm:$0xf0]  ;;  %v258_v3 = vld [vmem:[%s551_s1 + $0x8] sm:$0xf]  ;;  %v347_v4 = vld [vmem:[%s551_s1 + $0x10] sm:$0xf0]  ;;  %v251_v5 = vor.u32 %v346_v0, %v250_v63 }
  0x11   :  { %207 = vmatpush.bf16.msra.mxu1 %v303_v34  ;;  %221 = vmatpush.bf16.msra.mxu2 %v307_v35  ;;  %v255_v6 = vor.u32 %v345_v1, %v252_v2  ;;  %v259_v7 = vor.u32 %v347_v4, %v258_v3  ;;  %v344_v8 = vld [vmem:[%s552_s0] sm:$0xff] }
  0x12   :  { %v48_v9 = vld [vmem:[%s553_s2] sm:$0x7] }
  0x13   :  { %v50_v10 = vperm.slane %v48_v9, 0  ;;  %v51_v11 = vperm.slane %v48_v9, 1  ;;  %v52_v17 = vperm.slane %v48_v9, 2 }
  0x14   :  { %194 = vmatpush.bf16.msra.mxu0 %v287_v42 }
  0x15   :  { %208 = vmatpush.bf16.msra.mxu1 %v291_v43  ;;  %222 = vmatpush.bf16.msra.mxu2 %v295_v44 }
  0x18   :  { %195 = vmatpush.bf16.msra.mxu0 %v275_v51 }
  0x19   :  { %209 = vmatpush.bf16.msra.mxu1 %v279_v52  ;;  %223 = vmatpush.bf16.msra.mxu2 %v283_v53 }
  0x1c   :  { %196 = vmatpush.bf16.msra.mxu0 %v263_v60 }
  0x1d   :  { %210 = vmatpush.bf16.msra.mxu1 %v267_v61  ;;  %224 = vmatpush.bf16.msra.mxu2 %v271_v62 }
  0x20   :  { %197 = vmatpush.bf16.msra.mxu0 %v251_v5 }
  0x21   :  { %211 = vmatpush.bf16.msra.mxu1 %v255_v6  ;;  %225 = vmatpush.bf16.msra.mxu2 %v259_v7 }
  0x23   :  { %198 = vmatmul.bf16.vlgmr.msra.gmra.mxu0 %v344_v8 }
  0x24   :  { %212 = vmatmul.bf16.vlgmr.msra.gmra.mxu1 %v344_v8  ;;  %226 = vmatmul.bf16.vlgmr.msra.gmra.mxu2 %v344_v8 }
  0xa0   :  { %v199_v12 = vpop.f32.mrf.mxu0 }
  0xa1   :  { %v200_v13 = vadd.f32 %v199_v12, %v50_v10  ;;  %v213_v14 = vpop.f32.mrf.mxu1 }
  0xa2   :  { %v214_v15 = vadd.f32 %v213_v14, %v51_v11 }
  0xa4   :  { %v232_v16 = vpack.c.bf16 %v214_v15, %v200_v13 }
  0xa6   :  { %236 = vst [vmem:[%s554_s3] sm:$0xff] %v232_v16 }
  0xa7   :  { %v227_v18 = vpop.f32.mrf.mxu2 }
  0xa8   :  { %v228_v19 = vadd.f32 %v227_v18, %v52_v17  ;;  %v201_v20 = vpop.f32.mrf.mxu0 }
  0xa9   :  { %v202_v21 = vadd.f32 %v201_v20, %v50_v10  ;;  %v215_v22 = vpop.f32.mrf.mxu1 }
  0xaa   :  { %v233_v23 = vpack.c.bf16 %v228_v19, %v228_v19  ;;  %v216_v24 = vadd.f32 %v215_v22, %v51_v11 }
  0xac   :  { %237 = vst [vmem:[%s554_s3 + $0x8] sm:$0xf] %v233_v23  ;;  %v234_v25 = vpack.c.bf16 %v216_v24, %v202_v21 }
  0xae   :  { %238 = vst [vmem:[%s554_s3 + $0xc] sm:$0xff] %v234_v25 }
  0xaf   :  { %v229_v26 = vpop.f32.mrf.mxu2 }
  0xb0   :  { %v230_v27 = vadd.f32 %v229_v26, %v52_v17 }
  0xb2   :  { %v235_v28 = vpack.c.bf16 %v230_v27, %v230_v27 }
  0xb4   :  { %239 = vst [vmem:[%s554_s3 + $0x14] sm:$0xf] %v235_v28 }

// kernel: decoder_forward.5
= control target key start
LH: loop header
LB: loop body
LE: loop exit
PB: predicated region body
PF: predicated region fallthrough
CT: control target
= control target key end

     0   :  { %s284_s0 = inlined_call_operand.vmem [shape: bf16[16,128], index: 0, kind: input, shape index: {}]   ;;  %s285_s1 = inlined_call_operand.vmem [shape: bf16[128,128], index: 1, kind: input, shape index: {}]   ;;  %s286_s2 = inlined_call_operand.vmem [shape: f32[1,128], index: 2, kind: input, shape index: {}]   ;;  %s287_s3 = inlined_call_operand.hbm [shape: f32[16,128], index: 3, kind: output, shape index: {}]  }
   0x1   :  { %v189_v0 = vld [vmem:[%s285_s1 + $0x38] sm:$0xff]  ;;  %v188_v1 = vld [vmem:[%s285_s1 + $0x30] sm:$0xff] }
   0x2   :  { %91 = vmatpush.bf16.msra.mxu0 %v189_v0 }
   0x3   :  { %8 = vsyncpa [#allocation3], 0  ;;  %v187_v2 = vld [vmem:[%s285_s1 + $0x28] sm:$0xff]  ;;  %v186_v3 = vld [vmem:[%s285_s1 + $0x20] sm:$0xff]  ;;  %s133_s6 = sshll.u32 %s287_s3, 4  ;;  %s229_s7 = smov 128   ;;  %s134_s6 = int_to_ptr.hbm [resolvable:$true] %s133_s6 }
   0x4   :  { %v185_v4 = vld [vmem:[%s285_s1 + $0x18] sm:$0xff]  ;;  %v184_v5 = vld [vmem:[%s285_s1 + $0x10] sm:$0xff]  ;;  %v183_v6 = vld [vmem:[%s285_s1 + $0x8] sm:$0xff]  ;;  %s230_s8 = smov 8  }
   0x5   :  { %v182_v7 = vld [vmem:[%s285_s1] sm:$0xff] }
   0x6   :  { %92 = vmatpush.bf16.msra.mxu0 %v188_v1  ;;  %v181_v8 = vld [vmem:[%s284_s0] sm:$0xff]  ;;  %s228_s0 = smov [#allocation2]  }
   0x7   :  { %v193_v9 = vld [vmem:[%s286_s2] ss:$0 sm:$0xff]  ;;  %s131_s1 = sshll.u32 %s228_s0, 4  ;;  %s132_s1 = int_to_ptr.vmem [resolvable:$true] %s131_s1 }
   0xa   :  { %93 = vmatpush.bf16.msra.mxu0 %v187_v2 }
   0xe   :  { %94 = vmatpush.bf16.msra.mxu0 %v186_v3 }
  0x12   :  { %95 = vmatpush.bf16.msra.mxu0 %v185_v4 }
  0x16   :  { %96 = vmatpush.bf16.msra.mxu0 %v184_v5 }
  0x1a   :  { %97 = vmatpush.bf16.msra.mxu0 %v183_v6 }
  0x1e   :  { %98 = vmatpush.bf16.msra.mxu0 %v182_v7 }
  0x21   :  { %99 = vmatmul.bf16.vlgmr.msra.gmra.mxu0 %v181_v8 }
  0x9e   :  { %v100_v10 = vpop.f32.mrf.mxu0 }
  0x9f   :  { %v101_v11 = vadd.f32 %v193_v9, %v100_v10 }
  0xa1   :  { %105 = vmax.xlane.f32.xlu0 %v101_v11 }
  0xa6   :  { %v102_v12 = vpop.f32.mrf.mxu0 }
  0xa7   :  { %v103_v13 = vadd.f32 %v193_v9, %v102_v12 }
  0xa9   :  { %107 = vmax.xlane.f32.xlu0 %v103_v13 }
 0x114   :  { %v106_v14 = vpop.xlane.xlu0 %105 }
 0x115   :  { %v109_v15 = vsub.f32 %v101_v11, %v106_v14 }
 0x117   :  { %v111_v16 = vmul.f32 1.442695, %v109_v15 }
 0x119   :  { %194 = vpow2.f32 %v111_v16 }
 0x11c   :  { %v108_v17 = vpop.xlane.xlu0 %107 }
 0x11d   :  { %v110_v18 = vsub.f32 %v103_v13, %v108_v17 }
 0x11f   :  { %v195_v19 = vpop.eup %194  ;;  %v113_v20 = vmul.f32 1.442695, %v110_v18 }
 0x120   :  { %115 = vadd.xlane.f32.xlu1 %v195_v19 }
 0x121   :  { %196 = vpow2.f32 %v113_v20 }
 0x127   :  { %v197_v21 = vpop.eup %196 }
 0x128   :  { %117 = vadd.xlane.f32.xlu1 %v197_v21 }
 0x193   :  { %v116_v22 = vpop.xlane.xlu1 %115 }
 0x194   :  { %198 = vlog2.f32 %v116_v22 }
 0x19a   :  { %v199_v23 = vpop.eup %198 }
 0x19b   :  { %v120_v24 = vmul.f32 0.6931472, %v199_v23  ;;  %v118_v25 = vpop.xlane.xlu1 %117 }
 0x19c   :  { %200 = vlog2.f32 %v118_v25 }
 0x19d   :  { %v123_v26 = vsub.f32 %v109_v15, %v120_v24 }
 0x19f   :  { %125 = vst [vmem:[#allocation2] sm:$0xff] %v123_v26 }
 0x1a2   :  { %v201_v27 = vpop.eup %200 }
 0x1a3   :  { %v122_v28 = vmul.f32 0.6931472, %v201_v27 }
 0x1a5   :  { %v124_v29 = vsub.f32 %v110_v18, %v122_v28 }
 0x1a7   :  { %126 = vst [vmem:[#allocation2 + $0x8] sm:$0xff] %v124_v29 }
 0x1a8   :  { %139 = dma.vmem_to_hbm [thread:$0]  %s132_s1, 256, %s134_s6, [#allocation3], %s229_s7, %s229_s7, %s230_s8  }
 0x1a9   :  { %226 = dma.done.wait [#allocation3], 256  }
 0x1aa   :  { %227 = vsyncadd [#allocation3], 4294967040 }
 0x1ab   :  { %144 = vsyncpa [#allocation3], 1 }

// kernel: decoder_forward.4
= control target key start
LH: loop header
LB: loop body
LE: loop exit
PB: predicated region body
PF: predicated region fallthrough
CT: control target
= control target key end

     0   :  { %s2919_s1 = inlined_call_operand.vmem [shape: bf16[128,384], index: 1, kind: input, shape index: {}]   ;;  %s2920_s3 = inlined_call_operand.vmem [shape: f32[2,128], index: 3, kind: input, shape index: {}]   ;;  %s2921_s2 = inlined_call_operand.vmem [shape: f32[1,384], index: 2, kind: input, shape index: {}]   ;;  %s2922_s0 = inlined_call_operand.vmem [shape: bf16[2,8,384], index: 0, kind: input, shape index: {}]   ;;  %s2923_s4 = inlined_call_operand.vmem [shape: bf16[2,8,128], index: 4, kind: output, shape index: {0}]   ;;  %s2924_s5 = inlined_call_operand.vmem [shape: f32[2,128], index: 5, kind: output, shape index: {1}]  }
   0x1   :  { %v1779_v0 = vld [vmem:[%s2919_s1 + $0xa8] sm:$0xf]  ;;  %v1857_v1 = vld [vmem:[%s2919_s1 + $0xb0] sm:$0xf0]  ;;  %v1856_v2 = vld [vmem:[%s2919_s1 + $0xac] sm:$0xf] }
   0x2   :  { %v2058_v3 = vor.u32 %v1857_v1, %v1779_v0  ;;  %v1781_v4 = vld [vmem:[%s2919_s1 + $0xb4] sm:$0xf0]  ;;  %v1767_v5 = vld [vmem:[%s2919_s1 + $0x90] sm:$0xf]  ;;  %v1854_v6 = vld [vmem:[%s2919_s1 + $0x98] sm:$0xf0] }
   0x3   :  { %v2069_v7 = vor.u32 %v1856_v2, %v1781_v4  ;;  %v1853_v8 = vld [vmem:[%s2919_s1 + $0x94] sm:$0xf]  ;;  %v1769_v9 = vld [vmem:[%s2919_s1 + $0x9c] sm:$0xf0]  ;;  %v2078_v10 = vor.u32 %v1854_v6, %v1767_v5  ;;  %v1755_v12 = vld [vmem:[%s2919_s1 + $0x78] sm:$0xf] }
   0x4   :  { %205 = vmatpush.bf16.msra.mxu0 %v2058_v3  ;;  %388 = vmatpush.bf16.msra.mxu3 %v2058_v3  ;;  %v2082_v11 = vor.u32 %v1853_v8, %v1769_v9  ;;  %v1851_v13 = vld [vmem:[%s2919_s1 + $0x80] sm:$0xf0]  ;;  %v1850_v14 = vld [vmem:[%s2919_s1 + $0x7c] sm:$0xf]  ;;  %v1757_v15 = vld [vmem:[%s2919_s1 + $0x84] sm:$0xf0] }
   0x5   :  { %218 = vmatpush.bf16.msra.mxu1 %v2069_v7  ;;  %v1787_v16 = vld [vmem:[%s2919_s1 + $0xb0] sm:$0xf]  ;;  %v2100_v17 = vor.u32 %v1851_v13, %v1755_v12  ;;  %v1858_v18 = vld [vmem:[%s2919_s1 + $0xb8] sm:$0xf0]  ;;  %v2107_v19 = vor.u32 %v1850_v14, %v1757_v15  ;;  %v1743_v20 = vld [vmem:[%s2919_s1 + $0x60] sm:$0xf] }
   0x6   :  { %v1848_v21 = vld [vmem:[%s2919_s1 + $0x68] sm:$0xf0]  ;;  %v2115_v22 = vor.u32 %v1858_v18, %v1787_v16  ;;  %v1775_v23 = vld [vmem:[%s2919_s1 + $0x98] sm:$0xf]  ;;  %v1847_v24 = vld [vmem:[%s2919_s1 + $0x64] sm:$0xf] }
   0x7   :  { %v1745_v25 = vld [vmem:[%s2919_s1 + $0x6c] sm:$0xf0]  ;;  %v1855_v26 = vld [vmem:[%s2919_s1 + $0xa0] sm:$0xf0]  ;;  %v2133_v28 = vor.u32 %v1848_v21, %v1743_v20  ;;  %v1763_v29 = vld [vmem:[%s2919_s1 + $0x80] sm:$0xf] }
   0x8   :  { %206 = vmatpush.bf16.msra.mxu0 %v2078_v10  ;;  %389 = vmatpush.bf16.msra.mxu3 %v2078_v10  ;;  %v2130_v27 = vor.u32 %v1855_v26, %v1775_v23  ;;  %v1852_v30 = vld [vmem:[%s2919_s1 + $0x88] sm:$0xf0]  ;;  %v2143_v31 = vor.u32 %v1847_v24, %v1745_v25  ;;  %v1731_v32 = vld [vmem:[%s2919_s1 + $0x48] sm:$0xf]  ;;  %v1845_v33 = vld [vmem:[%s2919_s1 + $0x50] sm:$0xf0] }
   0x9   :  { %219 = vmatpush.bf16.msra.mxu1 %v2082_v11  ;;  %231 = vmatpush.bf16.msra.mxu2 %v2115_v22  ;;  %v1844_v34 = vld [vmem:[%s2919_s1 + $0x4c] sm:$0xf]  ;;  %v1733_v35 = vld [vmem:[%s2919_s1 + $0x54] sm:$0xf0]  ;;  %v23_v36 = vld [vmem:[%s2920_s3] sm:$0x3]  ;;  %v2161_v37 = vor.u32 %v1852_v30, %v1763_v29  ;;  %v2164_v38 = vor.u32 %v1845_v33, %v1731_v32 }
   0xa   :  { %24 = vst [vmem:[#allocation2] sm:$0x3] %v23_v36  ;;  %v1751_v39 = vld [vmem:[%s2919_s1 + $0x68] sm:$0xf]  ;;  %v1849_v40 = vld [vmem:[%s2919_s1 + $0x70] sm:$0xf0]  ;;  %v2174_v41 = vor.u32 %v1844_v34, %v1733_v35 }
   0xb   :  { %v1719_v42 = vld [vmem:[%s2919_s1 + $0x30] sm:$0xf]  ;;  %v1842_v43 = vld [vmem:[%s2919_s1 + $0x38] sm:$0xf0]  ;;  %v1841_v44 = vld [vmem:[%s2919_s1 + $0x34] sm:$0xf]  ;;  %v2189_v46 = vor.u32 %v1849_v40, %v1751_v39 }
   0xc   :  { %207 = vmatpush.bf16.msra.mxu0 %v2100_v17  ;;  %390 = vmatpush.bf16.msra.mxu3 %v2100_v17  ;;  %v1721_v45 = vld [vmem:[%s2919_s1 + $0x3c] sm:$0xf0]  ;;  %v2192_v47 = vor.u32 %v1842_v43, %v1719_v42  ;;  %v1739_v48 = vld [vmem:[%s2919_s1 + $0x50] sm:$0xf]  ;;  %v1846_v49 = vld [vmem:[%s2919_s1 + $0x58] sm:$0xf0] }
   0xd   :  { %220 = vmatpush.bf16.msra.mxu1 %v2107_v19  ;;  %232 = vmatpush.bf16.msra.mxu2 %v2130_v27  ;;  %v2202_v50 = vor.u32 %v1841_v44, %v1721_v45  ;;  %v1707_v51 = vld [vmem:[%s2919_s1 + $0x18] sm:$0xf]  ;;  %v1839_v52 = vld [vmem:[%s2919_s1 + $0x20] sm:$0xf0]  ;;  %v1838_v53 = vld [vmem:[%s2919_s1 + $0x1c] sm:$0xf]  ;;  %v2217_v55 = vor.u32 %v1846_v49, %v1739_v48 }
   0xe   :  { %v1709_v54 = vld [vmem:[%s2919_s1 + $0x24] sm:$0xf0]  ;;  %v2220_v56 = vor.u32 %v1839_v52, %v1707_v51  ;;  %v1727_v57 = vld [vmem:[%s2919_s1 + $0x38] sm:$0xf]  ;;  %v1843_v58 = vld [vmem:[%s2919_s1 + $0x40] sm:$0xf0] }
   0xf   :  { %v2230_v59 = vor.u32 %v1838_v53, %v1709_v54  ;;  %v1695_v60 = vld [vmem:[%s2919_s1] sm:$0xf]  ;;  %v1836_v61 = vld [vmem:[%s2919_s1 + $0x8] sm:$0xf0]  ;;  %v1835_v62 = vld [vmem:[%s2919_s1 + $0x4] sm:$0xf]  ;;  %v2245_v0 = vor.u32 %v1843_v58, %v1727_v57 }
  0x10   :  { %208 = vmatpush.bf16.msra.mxu0 %v2133_v28  ;;  %391 = vmatpush.bf16.msra.mxu3 %v2133_v28  ;;  %v1697_v63 = vld [vmem:[%s2919_s1 + $0xc] sm:$0xf0]  ;;  %v2248_v1 = vor.u32 %v1836_v61, %v1695_v60  ;;  %v1715_v4 = vld [vmem:[%s2919_s1 + $0x20] sm:$0xf]  ;;  %v1840_v5 = vld [vmem:[%s2919_s1 + $0x28] sm:$0xf0] }
  0x11   :  { %221 = vmatpush.bf16.msra.mxu1 %v2143_v31  ;;  %233 = vmatpush.bf16.msra.mxu2 %v2161_v37  ;;  %v2250_v2 = vld [vmem:[#allocation2] sm:$0x3]  ;;  %v2260_v6 = vor.u32 %v1835_v62, %v1697_v63  ;;  %v2265_v9 = vor.u32 %v1840_v5, %v1715_v4  ;;  %v1703_v12 = vld [vmem:[%s2919_s1 + $0x8] sm:$0xf]  ;;  %v1837_v13 = vld [vmem:[%s2919_s1 + $0x10] sm:$0xf0] }
  0x12   :  { %v69_v8 = vpack.c.bf16 %v2250_v2, %v2250_v2  ;;  %v2280_v14 = vor.u32 %v1837_v13, %v1703_v12  ;;  %v57_v15 = vld [vmem:[%s2921_s2] sm:$0x7]  ;;  %v61_v20 = vld [vmem:[%s2922_s0 + $0xc] sm:$0x11]  ;;  %v60_v4 = vld [vmem:[%s2922_s0 + $0x8] sm:$0x1] }
  0x13   :  { %v59_v16 = vld [vmem:[%s2922_s0] sm:$0x11]  ;;  %v2342_v18 = vperm.slane %v57_v15, 0  ;;  %v2347_v21 = vperm.slane %v57_v15, 1  ;;  %v66_v26 = vunpack.c.l.bf16 %v61_v20  ;;  %v67_v32 = vunpack.c.h.bf16 %v61_v20  ;;  %v62_v13 = vld [vmem:[%s2922_s0 + $0x14] sm:$0x1] }
  0x14   :  { %209 = vmatpush.bf16.msra.mxu0 %v2164_v38  ;;  %392 = vmatpush.bf16.msra.mxu3 %v2164_v38  ;;  %v63_v23 = vunpack.c.l.bf16 %v59_v16  ;;  %v64_v25 = vunpack.c.h.bf16 %v59_v16  ;;  %v2360_v5 = vperm.slane %v57_v15, 2 }
  0x15   :  { %222 = vmatpush.bf16.msra.mxu1 %v2174_v41  ;;  %234 = vmatpush.bf16.msra.mxu2 %v2189_v46 }
  0x18   :  { %210 = vmatpush.bf16.msra.mxu0 %v2192_v47  ;;  %393 = vmatpush.bf16.msra.mxu3 %v2192_v47 }
  0x19   :  { %223 = vmatpush.bf16.msra.mxu1 %v2202_v50  ;;  %235 = vmatpush.bf16.msra.mxu2 %v2217_v55 }
  0x1c   :  { %211 = vmatpush.bf16.msra.mxu0 %v2220_v56  ;;  %394 = vmatpush.bf16.msra.mxu3 %v2220_v56 }
  0x1d   :  { %224 = vmatpush.bf16.msra.mxu1 %v2230_v59  ;;  %236 = vmatpush.bf16.msra.mxu2 %v2245_v0 }
  0x20   :  { %212 = vmatpush.bf16.msra.mxu0 %v2248_v1  ;;  %395 = vmatpush.bf16.msra.mxu3 %v2248_v1 }
  0x21   :  { %225 = vmatpush.bf16.msra.mxu1 %v2260_v6  ;;  %237 = vmatpush.bf16.msra.mxu2 %v2265_v9 }
  0x23   :  { %213 = vmatmul.bf16.vlgmr.msra.gmra.mxu0 %v69_v8 }
  0x24   :  { %401 = vmatpush.bf16.msrb.mxu0 %v2069_v7  ;;  %584 = vmatpush.bf16.msrb.mxu3 %v2069_v7 }
  0x25   :  { %414 = vmatpush.bf16.msrb.mxu1 %v2115_v22  ;;  %238 = vmatpush.bf16.msra.mxu2 %v2280_v14 }
  0x26   :  { %226 = vmatmul.bf16.vlgmr.msra.gmra.mxu1 %v69_v8 }
  0x28   :  { %402 = vmatpush.bf16.msrb.mxu0 %v2082_v11  ;;  %585 = vmatpush.bf16.msrb.mxu3 %v2082_v11 }
  0x29   :  { %415 = vmatpush.bf16.msrb.mxu1 %v2130_v27  ;;  %571 = vmatpush.bf16.msrb.mxu2 %v2058_v3 }
  0x2a   :  { %239 = vmatmul.bf16.vlgmr.msra.gmra.mxu2 %v69_v8 }
  0x2c   :  { %403 = vmatpush.bf16.msrb.mxu0 %v2107_v19  ;;  %586 = vmatpush.bf16.msrb.mxu3 %v2107_v19 }
  0x2d   :  { %416 = vmatpush.bf16.msrb.mxu1 %v2161_v37  ;;  %572 = vmatpush.bf16.msrb.mxu2 %v2078_v10 }
  0x30   :  { %404 = vmatpush.bf16.msrb.mxu0 %v2143_v31  ;;  %587 = vmatpush.bf16.msrb.mxu3 %v2143_v31 }
  0x31   :  { %417 = vmatpush.bf16.msrb.mxu1 %v2189_v46  ;;  %573 = vmatpush.bf16.msrb.mxu2 %v2100_v17 }
  0x34   :  { %405 = vmatpush.bf16.msrb.mxu0 %v2174_v41  ;;  %588 = vmatpush.bf16.msrb.mxu3 %v2174_v41 }
  0x35   :  { %418 = vmatpush.bf16.msrb.mxu1 %v2217_v55  ;;  %574 = vmatpush.bf16.msrb.mxu2 %v2133_v28 }
  0x38   :  { %406 = vmatpush.bf16.msrb.mxu0 %v2202_v50  ;;  %589 = vmatpush.bf16.msrb.mxu3 %v2202_v50 }
  0x39   :  { %419 = vmatpush.bf16.msrb.mxu1 %v2245_v0  ;;  %575 = vmatpush.bf16.msrb.mxu2 %v2164_v38 }
  0x3c   :  { %407 = vmatpush.bf16.msrb.mxu0 %v2230_v59  ;;  %590 = vmatpush.bf16.msrb.mxu3 %v2230_v59 }
  0x3d   :  { %420 = vmatpush.bf16.msrb.mxu1 %v2265_v9  ;;  %576 = vmatpush.bf16.msrb.mxu2 %v2192_v47 }
  0x40   :  { %408 = vmatpush.bf16.msrb.mxu0 %v2260_v6  ;;  %591 = vmatpush.bf16.msrb.mxu3 %v2260_v6 }
  0x41   :  { %421 = vmatpush.bf16.msrb.mxu1 %v2280_v14  ;;  %577 = vmatpush.bf16.msrb.mxu2 %v2220_v56 }
  0x44   :  { %597 = vmatpush.bf16.msra.mxu0 %v2115_v22 }
  0x45   :  { %759 = vmatpush.bf16.msra.mxu1 %v2058_v3  ;;  %578 = vmatpush.bf16.msrb.mxu2 %v2248_v1 }
  0x48   :  { %598 = vmatpush.bf16.msra.mxu0 %v2130_v27 }
  0x49   :  { %760 = vmatpush.bf16.msra.mxu1 %v2078_v10  ;;  %772 = vmatpush.bf16.msra.mxu2 %v2069_v7 }
  0x4c   :  { %599 = vmatpush.bf16.msra.mxu0 %v2161_v37 }
  0x4d   :  { %761 = vmatpush.bf16.msra.mxu1 %v2100_v17  ;;  %773 = vmatpush.bf16.msra.mxu2 %v2082_v11 }
  0x50   :  { %600 = vmatpush.bf16.msra.mxu0 %v2189_v46 }
  0x51   :  { %762 = vmatpush.bf16.msra.mxu1 %v2133_v28  ;;  %774 = vmatpush.bf16.msra.mxu2 %v2107_v19 }
  0x54   :  { %601 = vmatpush.bf16.msra.mxu0 %v2217_v55 }
  0x55   :  { %763 = vmatpush.bf16.msra.mxu1 %v2164_v38  ;;  %775 = vmatpush.bf16.msra.mxu2 %v2143_v31 }
  0x58   :  { %602 = vmatpush.bf16.msra.mxu0 %v2245_v0 }
  0x59   :  { %764 = vmatpush.bf16.msra.mxu1 %v2192_v47  ;;  %776 = vmatpush.bf16.msra.mxu2 %v2174_v41 }
  0x5c   :  { %603 = vmatpush.bf16.msra.mxu0 %v2265_v9 }
  0x5d   :  { %765 = vmatpush.bf16.msra.mxu1 %v2220_v56  ;;  %777 = vmatpush.bf16.msra.mxu2 %v2202_v50 }
  0x60   :  { %604 = vmatpush.bf16.msra.mxu0 %v2280_v14 }
  0x61   :  { %766 = vmatpush.bf16.msra.mxu1 %v2248_v1  ;;  %778 = vmatpush.bf16.msra.mxu2 %v2230_v59 }
  0x65   :  { %779 = vmatpush.bf16.msra.mxu2 %v2260_v6 }
  0xa0   :  { %v214_v24 = vpop.f32.mrf.mxu0 }
  0xa1   :  { %v215_v29 = vadd.f32 %v214_v24, %v2342_v18 }
  0xa3   :  { %v227_v30 = vpop.f32.mrf.mxu1  ;;  %v245_v34 = vrot.slane %v215_v29, 1  ;;  %v248_v35 = vadd.f32 %v215_v29, %v63_v23  ;;  %v68_v29 = vunpack.c.l.bf16 %v62_v13 }
  0xa4   :  { %v228_v33 = vadd.f32 %v227_v30, %v2347_v21 }
  0xa5   :  { %v249_v40 = vadd.f32 %v245_v34, %v66_v26  ;;  %v1789_v42 = vmul.f32 -1.442695, %v248_v35 }
  0xa6   :  { %v289_v36 = vrot.slane %v228_v33, 1  ;;  %v292_v39 = vadd.f32 %v228_v33, %v64_v25  ;;  %v65_v25 = vunpack.c.l.bf16 %v60_v4 }
  0xa7   :  { %1859 = vpow2.f32 %v1789_v42  ;;  %v1790_v45 = vmul.f32 -1.442695, %v249_v40 }
  0xa8   :  { %v293_v43 = vadd.f32 %v289_v36, %v67_v32  ;;  %v1791_v44 = vmul.f32 -1.442695, %v292_v39  ;;  %v216_v49 = vpop.f32.mrf.mxu0 }
  0xaa   :  { %1861 = vpow2.f32 %v1791_v44  ;;  %v1792_v48 = vmul.f32 -1.442695, %v293_v43 }
  0xab   :  { %1863 = vpow2.f32 %v1790_v45  ;;  %v229_v51 = vpop.f32.mrf.mxu1 }
  0xac   :  { %1865 = vpow2.f32 %v1792_v48 }
  0xad   :  { %v1860_v52 = vpop.eup %1859  ;;  %v240_v53 = vpop.f32.mrf.mxu2 }
  0xae   :  { %v256_v57 = vadd.f32 1.0, %v1860_v52  ;;  %v241_v30 = vadd.f32 %v240_v53, %v2360_v5 }
  0xb0   :  { %v1862_v54 = vpop.eup %1861  ;;  %1867 = vrcp.f32 %v256_v57  ;;  %v267_v35 = vand.u32 2147483647, %v256_v57  ;;  %v269_v36 = vand.u32 2147483648, %v256_v57  ;;  %vm263_vm0 = vweird.f32 %v256_v57 }
  0xb1   :  { %v1864_v58 = vpop.eup %1863  ;;  %v2351_v60 = vadd.f32 1.0, %v1862_v54 }
  0xb2   :  { %v1866_v61 = vpop.eup %1865  ;;  %v257_v62 = vadd.f32 1.0, %v1864_v58  ;;  %vm268_vm5 = vcmp.eq.f32.partialorder %v267_v35, 8.507059e+37  ;;  %v270_v53 = vor.u32 1.1754944e-38, %v269_v36  ;;  %v333_v58 = vrot.slane %v241_v30, 1 }
  0xb3   :  { %v2353_v63 = vadd.f32 1.0, %v1866_v61  ;;  %1869 = vrcp.f32 %v2351_v60  ;;  %vm307_vm2 = vweird.f32 %v2351_v60  ;;  %v313_v51 = vand.u32 2147483648, %v2351_v60 }
  0xb4   :  { %1871 = vrcp.f32 %v257_v62  ;;  %v284_v44 = vand.u32 2147483648, %v257_v62  ;;  %v282_v49 = vand.u32 2147483647, %v257_v62  ;;  %vm278_vm6 = vweird.f32 %v257_v62 }
  0xb5   :  { %1873 = vrcp.f32 %v2353_v63  ;;  %v242_v8 = vpop.f32.mrf.mxu2  ;;  %vm322_vm9 = vweird.f32 %v2353_v63  ;;  %v326_v35 = vand.u32 2147483647, %v2353_v63  ;;  %v314_v36 = vor.u32 1.1754944e-38, %v313_v51 }
  0xb6   :  { %v1868_v12 = vpop.eup %1867  ;;  %v285_v4 = vor.u32 1.1754944e-38, %v284_v44  ;;  %vm283_vm10 = vcmp.eq.f32.partialorder %v282_v49, 8.507059e+37 }
  0xb7   :  { %v259_v20 = vmul.f32 %v1868_v12, %v256_v57  ;;  %vm264_vm1 = vweird.f32 %v1868_v12  ;;  %vm327_vm15 = vcmp.eq.f32.partialorder %v326_v35, 8.507059e+37 }
  0xb8   :  { %vm265_vm4 = vmor %vm263_vm0, %vm264_vm1  ;;  %vm356_vm0 = vcmask 1040384   ;;  %vm357_vm1 = vsmask.f32 256 }
  0xb9   :  { %v2365_v16 = vpop.eup %1869  ;;  %v260_v15 = vsub.f32 1.0, %v259_v20 }
  0xba   :  { %v1872_v23 = vpop.eup %1871  ;;  %v303_v24 = vmul.f32 %v2365_v16, %v2351_v60  ;;  %vm308_vm7 = vweird.f32 %v2365_v16 }
  0xbb   :  { %v1874_v26 = vpop.eup %1873  ;;  %v274_v32 = vmul.f32 %v1872_v23, %v257_v62  ;;  %v261_v39 = vmul.f32 %v1868_v12, %v260_v15  ;;  %vm279_vm3 = vweird.f32 %v1872_v23  ;;  %v311_v15 = vand.u32 2147483647, %v2351_v60  ;;  %vm309_vm12 = vmor %vm307_vm2, %vm308_vm7 }
  0xbc   :  { %v304_v33 = vsub.f32 1.0, %v303_v24  ;;  %v318_v34 = vmul.f32 %v1874_v26, %v2353_v63  ;;  %vm280_vm8 = vmor %vm278_vm6, %vm279_vm3  ;;  %vm323_vm11 = vweird.f32 %v1874_v26  ;;  %v328_v62 = vand.u32 2147483648, %v2353_v63 }
  0xbd   :  { %v275_v40 = vsub.f32 1.0, %v274_v32  ;;  %v262_v45 = vadd.f32 %v1868_v12, %v261_v39  ;;  %vm324_vm13 = vmor %vm322_vm9, %vm323_vm11  ;;  %vm312_vm14 = vcmp.eq.f32.partialorder %v311_v15, 8.507059e+37  ;;  %vm384_vm3 = vcmask 1041409   ;;  %v367_v15 = vld [vmem:[%s2922_s0 + $0xc] sm:$0x11] }
  0xbe   :  { %v305_v42 = vmul.f32 %v2365_v16, %v304_v33  ;;  %v319_v43 = vsub.f32 1.0, %v318_v34  ;;  %v329_v39 = vor.u32 1.1754944e-38, %v328_v62  ;;  %vm358_vm2 = vmand %vm356_vm0, %vm357_vm1  ;;  %v373_v62 = vunpack.c.h.bf16 %v367_v15 }
  0xbf   :  { %v276_v48 = vmul.f32 %v1872_v23, %v275_v40  ;;  %v266_v54 = vsel %vm265_vm4, %v1868_v12, %v262_v45 }
  0xc0   :  { %v320_v52 = vmul.f32 %v1874_v26, %v319_v43  ;;  %v271_v61 = vsel %vm268_vm5, %v270_v53, %v266_v54  ;;  %v306_v8 = vadd.f32 %v2365_v16, %v305_v42  ;;  %v347_v42 = vrot.slane %v2250_v2, 1 }
  0xc1   :  { %v277_v57 = vadd.f32 %v1872_v23, %v276_v48  ;;  %v336_v20 = vmul.f32 %v271_v61, %v241_v30 }
  0xc2   :  { %v321_v12 = vadd.f32 %v1874_v26, %v320_v52  ;;  %v310_v34 = vsel %vm309_vm12, %v2365_v16, %v306_v8 }
  0xc3   :  { %v281_v13 = vsel %vm280_vm8, %v1872_v23, %v277_v57  ;;  %v338_v33 = vadd.f32 %v336_v20, %v65_v25  ;;  %v315_v40 = vsel %vm312_vm14, %v314_v36, %v310_v34 }
  0xc4   :  { %v286_v24 = vsel %vm283_vm10, %v285_v4, %v281_v13  ;;  %v325_v30 = vsel %vm324_vm13, %v1874_v26, %v321_v12  ;;  %v342_v25 = vsub.f32 1.0, %v315_v40  ;;  %v350_v45 = vmul.f32 %v315_v40, %v2250_v2  ;;  %v359_v26 = vld [vmem:[%s2923_s4] sm:$0x1]  ;;  %v362_v2 = vld [vmem:[%s2923_s4 + $0x4] sm:$0x1] }
  0xc5   :  { %v337_v32 = vmul.f32 %v333_v58, %v286_v24  ;;  %1875 = vtanh.f32 %v338_v33  ;;  %v330_v60 = vsel %vm327_vm15, %v329_v39, %v325_v30  ;;  %v365_v12 = vld [vmem:[%s2922_s0] sm:$0x11]  ;;  %v372_v40 = vunpack.c.l.bf16 %v367_v15 }
  0xc6   :  { %v343_v16 = vsub.f32 1.0, %v330_v60  ;;  %v351_v48 = vmul.f32 %v347_v42, %v330_v60  ;;  %v370_v33 = vunpack.c.h.bf16 %v365_v12 }
  0xc7   :  { %v339_v23 = vadd.f32 %v337_v32, %v68_v29 }
  0xc9   :  { %1877 = vtanh.f32 %v339_v23 }
  0xcb   :  { %v1876_v43 = vpop.eup %1875 }
  0xcc   :  { %v344_v44 = vmul.f32 %v1876_v43, %v342_v25  ;;  %v369_v25 = vunpack.c.l.bf16 %v365_v12 }
  0xce   :  { %v2387_v49 = vadd.f32 %v350_v45, %v344_v44 }
  0xcf   :  { %v1878_v63 = vpop.eup %1877 }
  0xd0   :  { %v345_v29 = vmul.f32 %v1878_v63, %v343_v16  ;;  %v354_v52 = vpack.c.bf16 %v2387_v49, %v2387_v49 }
  0xd2   :  { %v2393_v51 = vadd.f32 %v351_v48, %v345_v29  ;;  %v360_v54 = vsel %vm358_vm2, %v354_v52, %v359_v26  ;;  %v377_v58 = vunpack.c.l.b16 %v354_v52 }
  0xd3   :  { %361 = vst [vmem:[%s2923_s4] sm:$0x1] %v360_v54 }
  0xd4   :  { %v355_v53 = vpack.c.bf16 %v2393_v51, %v2393_v51  ;;  %v1793_v8 = vunpack.i.l.s16 %v377_v58 }
  0xd6   :  { %v363_v57 = vsel %vm358_vm2, %v355_v53, %v362_v2  ;;  %v378_v61 = vunpack.c.l.b16 %v355_v53 }
  0xd7   :  { %364 = vst [vmem:[%s2923_s4 + $0x4] sm:$0x1] %v363_v57 }
  0xd8   :  { %v1794_v4 = vunpack.i.l.s16 %v378_v61 }
  0xda   :  { %v383_v13 = vrot.slane %v1794_v4, 7 }
  0xdc   :  { %v385_v20 = vsel %vm384_vm3, %v383_v13, %v1793_v8 }
  0xdd   :  { %v386_v24 = vpack.c.b16 %v385_v20, %v385_v20 }
  0xdf   :  { %396 = vmatmul.bf16.vlgmr.msra.gmra.mxu3 %v386_v24  ;;  %409 = vmatmul.bf16.vlgmr.msrb.gmra.mxu0 %v386_v24 }
  0xe0   :  { %422 = vmatmul.bf16.vlgmr.msrb.gmra.mxu1 %v386_v24  ;;  %785 = vmatpush.bf16.msra.mxu3 %v2115_v22 }
  0xe1   :  { %946 = vmatpush.bf16.msrb.mxu0 %v2058_v3  ;;  %959 = vmatpush.bf16.msrb.mxu1 %v2069_v7 }
  0xe4   :  { %786 = vmatpush.bf16.msra.mxu3 %v2130_v27 }
  0xe5   :  { %947 = vmatpush.bf16.msrb.mxu0 %v2078_v10  ;;  %960 = vmatpush.bf16.msrb.mxu1 %v2082_v11 }
  0xe8   :  { %787 = vmatpush.bf16.msra.mxu3 %v2161_v37 }
  0xe9   :  { %948 = vmatpush.bf16.msrb.mxu0 %v2100_v17  ;;  %961 = vmatpush.bf16.msrb.mxu1 %v2107_v19 }
  0xec   :  { %788 = vmatpush.bf16.msra.mxu3 %v2189_v46 }
  0xed   :  { %949 = vmatpush.bf16.msrb.mxu0 %v2133_v28  ;;  %962 = vmatpush.bf16.msrb.mxu1 %v2143_v31 }
  0xf0   :  { %789 = vmatpush.bf16.msra.mxu3 %v2217_v55 }
  0xf1   :  { %950 = vmatpush.bf16.msrb.mxu0 %v2164_v38  ;;  %963 = vmatpush.bf16.msrb.mxu1 %v2174_v41 }
  0xf4   :  { %790 = vmatpush.bf16.msra.mxu3 %v2245_v0 }
  0xf5   :  { %951 = vmatpush.bf16.msrb.mxu0 %v2192_v47  ;;  %964 = vmatpush.bf16.msrb.mxu1 %v2202_v50 }
  0xf8   :  { %791 = vmatpush.bf16.msra.mxu3 %v2265_v9 }
  0xf9   :  { %952 = vmatpush.bf16.msrb.mxu0 %v2220_v56  ;;  %965 = vmatpush.bf16.msrb.mxu1 %v2230_v59 }
  0xfc   :  { %792 = vmatpush.bf16.msra.mxu3 %v2280_v14 }
  0xfd   :  { %953 = vmatpush.bf16.msrb.mxu0 %v2248_v1  ;;  %966 = vmatpush.bf16.msrb.mxu1 %v2260_v6 }
 0x15c   :  { %v410_v32 = vpop.f32.mrf.mxu0 }
 0x15d   :  { %v411_v34 = vadd.f32 %v410_v32, %v2347_v21  ;;  %v423_v35 = vpop.f32.mrf.mxu1 }
 0x15f   :  { %v472_v36 = vrot.slane %v411_v34, 7  ;;  %v476_v23 = vadd.f32 %v411_v34, %v373_v62  ;;  %v424_v62 = vadd.f32 %v423_v35, %v2360_v5  ;;  %v366_v35 = vld [vmem:[%s2922_s0 + $0x8] sm:$0x1] }
 0x161   :  { %v475_v30 = vadd.f32 %v472_v36, %v370_v33  ;;  %v1798_v39 = vmul.f32 -1.442695, %v476_v23 }
 0x162   :  { %v397_v60 = vpop.f32.mrf.mxu3 }
 0x163   :  { %v1797_v42 = vmul.f32 -1.442695, %v475_v30  ;;  %1879 = vpow2.f32 %v1798_v39  ;;  %v398_v43 = vadd.f32 %v397_v60, %v2342_v18  ;;  %v368_v30 = vld [vmem:[%s2922_s0 + $0x14] sm:$0x1] }
 0x164   :  { %v412_v16 = vpop.f32.mrf.mxu0 }
 0x165   :  { %1881 = vpow2.f32 %v1797_v42  ;;  %v428_v44 = vrot.slane %v398_v43, 7  ;;  %v432_v45 = vadd.f32 %v398_v43, %v372_v40  ;;  %v425_v63 = vpop.f32.mrf.mxu1  ;;  %v516_v40 = vrot.slane %v424_v62, 7 }
 0x167   :  { %v431_v29 = vadd.f32 %v428_v44, %v369_v25  ;;  %v1796_v48 = vmul.f32 -1.442695, %v432_v45  ;;  %v374_v45 = vunpack.c.l.bf16 %v368_v30 }
 0x169   :  { %v1880_v26 = vpop.eup %1879  ;;  %v1795_v52 = vmul.f32 -1.442695, %v431_v29  ;;  %1883 = vpow2.f32 %v1796_v48 }
 0x16a   :  { %v2441_v2 = vadd.f32 1.0, %v1880_v26  ;;  %v399_v53 = vpop.f32.mrf.mxu3 }
 0x16b   :  { %v1882_v54 = vpop.eup %1881  ;;  %1885 = vpow2.f32 %v1795_v52  ;;  %v371_v53 = vunpack.c.l.bf16 %v366_v35 }
 0x16c   :  { %v2443_v57 = vadd.f32 1.0, %v1882_v54  ;;  %1887 = vrcp.f32 %v2441_v2  ;;  %vm505_vm7 = vweird.f32 %v2441_v2 }
 0x16e   :  { %1889 = vrcp.f32 %v2443_v57  ;;  %vm490_vm1 = vweird.f32 %v2443_v57 }
 0x16f   :  { %v1884_v58 = vpop.eup %1883 }
 0x170   :  { %v440_v61 = vadd.f32 1.0, %v1884_v58 }
 0x171   :  { %v1886_v4 = vpop.eup %1885 }
 0x172   :  { %v439_v8 = vadd.f32 1.0, %v1886_v4  ;;  %1891 = vrcp.f32 %v440_v61  ;;  %v2447_v13 = vpop.eup %1887  ;;  %v467_v60 = vand.u32 2147483648, %v440_v61  ;;  %v465_v43 = vand.u32 2147483647, %v440_v61 }
 0x173   :  { %v501_v24 = vmul.f32 %v2447_v13, %v2441_v2  ;;  %vm461_vm5 = vweird.f32 %v440_v61  ;;  %vm506_vm11 = vweird.f32 %v2447_v13 }
 0x174   :  { %1893 = vrcp.f32 %v439_v8  ;;  %v2449_v20 = vpop.eup %1889  ;;  %v452_v44 = vand.u32 2147483648, %v439_v8  ;;  %v450_v29 = vand.u32 2147483647, %v439_v8  ;;  %v468_v52 = vor.u32 1.1754944e-38, %v467_v60  ;;  %vm507_vm15 = vmor %vm505_vm7, %vm506_vm11 }
 0x175   :  { %v486_v12 = vmul.f32 %v2449_v20, %v2443_v57  ;;  %v502_v34 = vsub.f32 1.0, %v501_v24  ;;  %vm446_vm9 = vweird.f32 %v439_v8  ;;  %vm466_vm10 = vcmp.eq.f32.partialorder %v465_v43, 8.507059e+37 }
 0x176   :  { %vm451_vm13 = vcmp.eq.f32.partialorder %v450_v29, 8.507059e+37  ;;  %vm491_vm14 = vweird.f32 %v2449_v20 }
 0x177   :  { %v487_v39 = vsub.f32 1.0, %v486_v12  ;;  %v503_v16 = vmul.f32 %v2447_v13, %v502_v34  ;;  %v511_v12 = vand.u32 2147483648, %v2441_v2  ;;  %vm492_vm2 = vmor %vm490_vm1, %vm491_vm14 }
 0x178   :  { %v1892_v15 = vpop.eup %1891 }
 0x179   :  { %v457_v32 = vmul.f32 %v1892_v15, %v440_v61  ;;  %vm462_vm4 = vweird.f32 %v1892_v15  ;;  %v488_v26 = vmul.f32 %v2449_v20, %v487_v39  ;;  %v504_v4 = vadd.f32 %v2447_v13, %v503_v16 }
 0x17a   :  { %v1894_v33 = vpop.eup %1893  ;;  %vm463_vm8 = vmor %vm461_vm5, %vm462_vm4  ;;  %v453_v61 = vor.u32 1.1754944e-38, %v452_v44  ;;  %v512_v60 = vor.u32 1.1754944e-38, %v511_v12 }
 0x17b   :  { %v442_v36 = vmul.f32 %v1894_v33, %v439_v8  ;;  %v458_v23 = vsub.f32 1.0, %v457_v32  ;;  %vm447_vm6 = vweird.f32 %v1894_v33  ;;  %v489_v8 = vadd.f32 %v2449_v20, %v488_v26 }
 0x17c   :  { %vm448_vm12 = vmor %vm446_vm9, %vm447_vm6  ;;  %vm541_vm6 = vsmask.f32 7938 }
 0x17d   :  { %v443_v42 = vsub.f32 1.0, %v442_v36  ;;  %v459_v25 = vmul.f32 %v1892_v15, %v458_v23  ;;  %v509_v36 = vand.u32 2147483647, %v2441_v2  ;;  %vm542_vm7 = vmand %vm356_vm0, %vm541_vm6 }
 0x17f   :  { %v444_v63 = vmul.f32 %v1894_v33, %v443_v42  ;;  %v460_v48 = vadd.f32 %v1892_v15, %v459_v25  ;;  %vm510_vm4 = vcmp.eq.f32.partialorder %v509_v36, 8.507059e+37  ;;  %v493_v25 = vsel %vm492_vm2, %v2449_v20, %v489_v8 }
 0x181   :  { %v445_v54 = vadd.f32 %v1894_v33, %v444_v63  ;;  %v464_v58 = vsel %vm463_vm8, %v1892_v15, %v460_v48  ;;  %v496_v15 = vand.u32 2147483648, %v2443_v57 }
 0x182   :  { %v469_v24 = vsel %vm466_vm10, %v468_v52, %v464_v58  ;;  %v543_v58 = vld [vmem:[%s2923_s4] sm:$0x1] }
 0x183   :  { %v449_v32 = vsel %vm448_vm12, %v1894_v33, %v445_v54  ;;  %v520_v34 = vmul.f32 %v469_v24, %v424_v62  ;;  %v494_v33 = vand.u32 2147483647, %v2443_v57  ;;  %v508_v62 = vsel %vm507_vm15, %v2447_v13, %v504_v4 }
 0x184   :  { %v454_v23 = vsel %vm451_vm13, %v453_v61, %v449_v32  ;;  %v497_v43 = vor.u32 1.1754944e-38, %v496_v15  ;;  %v513_v35 = vsel %vm510_vm4, %v512_v60, %v508_v62  ;;  %v531_v57 = vrot.slane %v2387_v49, 7  ;;  %v546_v49 = vld [vmem:[%s2923_s4 + $0x4] sm:$0x1]  ;;  %v549_v15 = vld [vmem:[%s2922_s0] sm:$0x22] }
 0x185   :  { %v519_v30 = vmul.f32 %v516_v40, %v454_v23  ;;  %v522_v39 = vadd.f32 %v520_v34, %v374_v45  ;;  %vm495_vm5 = vcmp.eq.f32.partialorder %v494_v33, 8.507059e+37  ;;  %v532_v40 = vrot.slane %v2393_v51, 7 }
 0x186   :  { %v498_v2 = vsel %vm495_vm5, %v497_v43, %v493_v25  ;;  %v526_v16 = vsub.f32 1.0, %v513_v35  ;;  %v554_v25 = vunpack.c.h.bf16 %v549_v15 }
 0x187   :  { %v521_v42 = vadd.f32 %v519_v30, %v371_v53  ;;  %1895 = vtanh.f32 %v522_v39  ;;  %v525_v45 = vsub.f32 1.0, %v498_v2  ;;  %v536_v63 = vmul.f32 %v532_v40, %v513_v35  ;;  %v551_v30 = vld [vmem:[%s2922_s0 + $0xc] sm:$0x22] }
 0x188   :  { %v535_v26 = vmul.f32 %v531_v57, %v498_v2  ;;  %v553_v39 = vunpack.c.l.bf16 %v549_v15  ;;  %v556_v33 = vunpack.c.l.bf16 %v551_v30  ;;  %v557_v43 = vunpack.c.h.bf16 %v551_v30  ;;  %v550_v15 = vld [vmem:[%s2922_s0 + $0x8] sm:$0x2]  ;;  %v552_v30 = vld [vmem:[%s2922_s0 + $0x14] sm:$0x2] }
 0x189   :  { %1897 = vtanh.f32 %v521_v42 }
 0x18d   :  { %v1896_v44 = vpop.eup %1895 }
 0x18e   :  { %v528_v13 = vmul.f32 %v1896_v44, %v526_v16 }
 0x18f   :  { %v1898_v29 = vpop.eup %1897 }
 0x190   :  { %v527_v48 = vmul.f32 %v1898_v29, %v525_v45  ;;  %v2480_v52 = vadd.f32 %v536_v63, %v528_v13 }
 0x192   :  { %v2483_v20 = vadd.f32 %v535_v26, %v527_v48  ;;  %v540_v51 = vpack.c.bf16 %v2480_v52, %v2480_v52 }
 0x194   :  { %v539_v53 = vpack.c.bf16 %v2483_v20, %v2483_v20  ;;  %v547_v54 = vsel %vm542_vm7, %v540_v51, %v546_v49  ;;  %v562_v24 = vunpack.c.l.b16 %v540_v51 }
 0x195   :  { %548 = vst [vmem:[%s2923_s4 + $0x4] sm:$0x1] %v547_v54 }
 0x196   :  { %v544_v4 = vsel %vm542_vm7, %v539_v53, %v543_v58  ;;  %v561_v61 = vunpack.c.l.b16 %v539_v53  ;;  %v1800_v32 = vunpack.i.l.s16 %v562_v24 }
 0x197   :  { %545 = vst [vmem:[%s2923_s4] sm:$0x1] %v544_v4 }
 0x198   :  { %v1799_v12 = vunpack.i.l.s16 %v561_v61 }
 0x19a   :  { %v567_v34 = vrot.slane %v1799_v12, 1 }
 0x19c   :  { %v568_v36 = vsel %vm384_vm3, %v1800_v32, %v567_v34 }
 0x19d   :  { %v569_v23 = vpack.c.b16 %v568_v36, %v568_v36 }
 0x19f   :  { %579 = vmatmul.bf16.vlgmr.msrb.gmra.mxu2 %v569_v23  ;;  %592 = vmatmul.bf16.vlgmr.msrb.gmra.mxu3 %v569_v23 }
 0x1a0   :  { %605 = vmatmul.bf16.vlgmr.msra.gmra.mxu0 %v569_v23  ;;  %972 = vmatpush.bf16.msrb.mxu2 %v2115_v22 }
 0x1a1   :  { %1134 = vmatpush.bf16.msrb.mxu3 %v2058_v3  ;;  %1147 = vmatpush.bf16.msra.mxu0 %v2069_v7 }
 0x1a4   :  { %973 = vmatpush.bf16.msrb.mxu2 %v2130_v27 }
 0x1a5   :  { %1135 = vmatpush.bf16.msrb.mxu3 %v2078_v10  ;;  %1148 = vmatpush.bf16.msra.mxu0 %v2082_v11 }
 0x1a8   :  { %974 = vmatpush.bf16.msrb.mxu2 %v2161_v37 }
 0x1a9   :  { %1136 = vmatpush.bf16.msrb.mxu3 %v2100_v17  ;;  %1149 = vmatpush.bf16.msra.mxu0 %v2107_v19 }
 0x1ac   :  { %975 = vmatpush.bf16.msrb.mxu2 %v2189_v46 }
 0x1ad   :  { %1137 = vmatpush.bf16.msrb.mxu3 %v2133_v28  ;;  %1150 = vmatpush.bf16.msra.mxu0 %v2143_v31 }
 0x1b0   :  { %976 = vmatpush.bf16.msrb.mxu2 %v2217_v55 }
 0x1b1   :  { %1138 = vmatpush.bf16.msrb.mxu3 %v2164_v38  ;;  %1151 = vmatpush.bf16.msra.mxu0 %v2174_v41 }
 0x1b4   :  { %977 = vmatpush.bf16.msrb.mxu2 %v2245_v0 }
 0x1b5   :  { %1139 = vmatpush.bf16.msrb.mxu3 %v2192_v47  ;;  %1152 = vmatpush.bf16.msra.mxu0 %v2202_v50 }
 0x1b8   :  { %978 = vmatpush.bf16.msrb.mxu2 %v2265_v9 }
 0x1b9   :  { %1140 = vmatpush.bf16.msrb.mxu3 %v2220_v56  ;;  %1153 = vmatpush.bf16.msra.mxu0 %v2230_v59 }
 0x1bc   :  { %979 = vmatpush.bf16.msrb.mxu2 %v2280_v14 }
 0x1bd   :  { %1141 = vmatpush.bf16.msrb.mxu3 %v2248_v1  ;;  %1154 = vmatpush.bf16.msra.mxu0 %v2260_v6 }
 0x21d   :  { %v606_v8 = vpop.f32.mrf.mxu0 }
 0x21e   :  { %v607_v23 = vadd.f32 %v606_v8, %v2360_v5 }
 0x222   :  { %v580_v62 = vpop.f32.mrf.mxu2  ;;  %v593_v60 = vpop.f32.mrf.mxu3 }
 0x223   :  { %v581_v42 = vadd.f32 %v580_v62, %v2342_v18  ;;  %v594_v35 = vadd.f32 %v593_v60, %v2347_v21  ;;  %v555_v60 = vunpack.c.l.bf16 %v550_v15 }
 0x225   :  { %v611_v2 = vrot.slane %v581_v42, 6  ;;  %v612_v40 = vrot.slane %v581_v42, 7  ;;  %v656_v16 = vrot.slane %v594_v35, 6  ;;  %v657_v44 = vrot.slane %v594_v35, 7  ;;  %v608_v57 = vpop.f32.mrf.mxu0 }
 0x226   :  { %v558_v42 = vunpack.c.l.bf16 %v552_v30 }
 0x227   :  { %v615_v45 = vadd.f32 %v611_v2, %v553_v39  ;;  %v616_v13 = vadd.f32 %v612_v40, %v556_v33  ;;  %v660_v63 = vadd.f32 %v656_v16, %v554_v25  ;;  %v661_v29 = vadd.f32 %v657_v44, %v557_v43 }
 0x228   :  { %v701_v43 = vrot.slane %v607_v23, 6  ;;  %v702_v16 = vrot.slane %v607_v23, 7 }
 0x229   :  { %v1801_v48 = vmul.f32 -1.442695, %v615_v45  ;;  %v1802_v26 = vmul.f32 -1.442695, %v616_v13  ;;  %v1803_v51 = vmul.f32 -1.442695, %v660_v63 }
 0x22a   :  { %v1804_v49 = vmul.f32 -1.442695, %v661_v29  ;;  %v582_v53 = vpop.f32.mrf.mxu2  ;;  %v595_v54 = vpop.f32.mrf.mxu3 }
 0x22b   :  { %1899 = vpow2.f32 %v1801_v48 }
 0x22c   :  { %1901 = vpow2.f32 %v1802_v26 }
 0x22d   :  { %1903 = vpow2.f32 %v1803_v51 }
 0x22e   :  { %1905 = vpow2.f32 %v1804_v49 }
 0x231   :  { %v1900_v58 = vpop.eup %1899 }
 0x232   :  { %v1902_v4 = vpop.eup %1901  ;;  %v623_v61 = vadd.f32 1.0, %v1900_v58 }
 0x233   :  { %v1904_v24 = vpop.eup %1903  ;;  %v624_v12 = vadd.f32 1.0, %v1902_v4 }
 0x234   :  { %v1906_v32 = vpop.eup %1905  ;;  %1907 = vrcp.f32 %v623_v61  ;;  %v2534_v34 = vadd.f32 1.0, %v1904_v24  ;;  %v634_v2 = vand.u32 2147483647, %v623_v61  ;;  %v636_v8 = vand.u32 2147483648, %v623_v61 }
 0x235   :  { %1909 = vrcp.f32 %v624_v12  ;;  %v2536_v36 = vadd.f32 1.0, %v1906_v32  ;;  %v649_v57 = vand.u32 2147483647, %v624_v12  ;;  %v651_v45 = vand.u32 2147483648, %v624_v12 }
 0x236   :  { %1911 = vrcp.f32 %v2534_v34  ;;  %vm630_vm0 = vweird.f32 %v623_v61  ;;  %vm645_vm9 = vweird.f32 %v624_v12  ;;  %vm635_vm11 = vcmp.eq.f32.partialorder %v634_v2, 8.507059e+37 }
 0x237   :  { %1913 = vrcp.f32 %v2536_v36  ;;  %v637_v49 = vor.u32 1.1754944e-38, %v636_v8  ;;  %vm650_vm13 = vcmp.eq.f32.partialorder %v649_v57, 8.507059e+37  ;;  %v652_v58 = vor.u32 1.1754944e-38, %v651_v45 }
 0x238   :  { %vm675_vm15 = vweird.f32 %v2534_v34  ;;  %v681_v32 = vand.u32 2147483648, %v2534_v34  ;;  %v679_v2 = vand.u32 2147483647, %v2534_v34  ;;  %vm690_vm5 = vweird.f32 %v2536_v36 }
 0x23a   :  { %v1908_v39 = vpop.eup %1907  ;;  %vm680_vm7 = vcmp.eq.f32.partialorder %v679_v2, 8.507059e+37 }
 0x23b   :  { %v1910_v33 = vpop.eup %1909  ;;  %v626_v62 = vmul.f32 %v1908_v39, %v623_v61  ;;  %vm631_vm8 = vweird.f32 %v1908_v39 }
 0x23c   :  { %v641_v25 = vmul.f32 %v1910_v33, %v624_v12  ;;  %v1912_v40 = vpop.eup %1911  ;;  %vm646_vm10 = vweird.f32 %v1910_v33  ;;  %vm632_vm12 = vmor %vm630_vm0, %vm631_vm8  ;;  %vm728_vm8 = vsmask.f32 1280 }
 0x23d   :  { %v627_v35 = vsub.f32 1.0, %v626_v62  ;;  %v1914_v13 = vpop.eup %1913  ;;  %v671_v29 = vmul.f32 %v1912_v40, %v2534_v34  ;;  %vm647_vm14 = vmor %vm645_vm9, %vm646_vm10  ;;  %vm676_vm1 = vweird.f32 %v1912_v40 }
 0x23e   :  { %v642_v44 = vsub.f32 1.0, %v641_v25  ;;  %v686_v26 = vmul.f32 %v1914_v13, %v2536_v36  ;;  %vm691_vm2 = vweird.f32 %v1914_v13  ;;  %vm677_vm4 = vmor %vm675_vm15, %vm676_vm1 }
 0x23f   :  { %v628_v63 = vmul.f32 %v1908_v39, %v627_v35  ;;  %v672_v53 = vsub.f32 1.0, %v671_v29  ;;  %vm692_vm6 = vmor %vm690_vm5, %vm691_vm2 }
 0x240   :  { %v643_v48 = vmul.f32 %v1910_v33, %v642_v44  ;;  %v687_v4 = vsub.f32 1.0, %v686_v26  ;;  %vm729_vm9 = vmand %vm384_vm3, %vm728_vm8 }
 0x241   :  { %v629_v51 = vadd.f32 %v1908_v39, %v628_v63  ;;  %v673_v61 = vmul.f32 %v1912_v40, %v672_v53 }
 0x242   :  { %v644_v54 = vadd.f32 %v1910_v33, %v643_v48  ;;  %v688_v15 = vmul.f32 %v1914_v13, %v687_v4  ;;  %v733_v4 = vld [vmem:[%s2923_s4 + $0x4] sm:$0x2] }
 0x243   :  { %v633_v24 = vsel %vm632_vm12, %v1908_v39, %v629_v51  ;;  %v674_v25 = vadd.f32 %v1912_v40, %v673_v61  ;;  %v696_v39 = vand.u32 2147483648, %v2536_v36  ;;  %v718_v51 = vrot.slane %v2480_v52, 7 }
 0x244   :  { %v638_v12 = vsel %vm635_vm11, %v637_v49, %v633_v24  ;;  %v648_v23 = vsel %vm647_vm14, %v1910_v33, %v644_v54  ;;  %v689_v8 = vadd.f32 %v1914_v13, %v688_v15  ;;  %v694_v33 = vand.u32 2147483647, %v2536_v36 }
 0x245   :  { %v653_v30 = vsel %vm650_vm13, %v652_v58, %v648_v23  ;;  %v705_v62 = vmul.f32 %v701_v43, %v638_v12  ;;  %v678_v45 = vsel %vm677_vm4, %v1912_v40, %v674_v25  ;;  %v682_v43 = vor.u32 1.1754944e-38, %v681_v32 }
 0x246   :  { %v706_v35 = vmul.f32 %v702_v16, %v653_v30  ;;  %v693_v63 = vsel %vm692_vm6, %v1914_v13, %v689_v8  ;;  %v697_v16 = vor.u32 1.1754944e-38, %v696_v39  ;;  %vm695_vm0 = vcmp.eq.f32.partialorder %v694_v33, 8.507059e+37  ;;  %v736_v8 = vld [vmem:[%s2922_s0] sm:$0x22]  ;;  %v738_v39 = vld [vmem:[%s2922_s0 + $0xc] sm:$0x22] }
 0x247   :  { %v707_v44 = vadd.f32 %v705_v62, %v555_v60  ;;  %v683_v29 = vsel %vm680_vm7, %v682_v43, %v678_v45  ;;  %v717_v60 = vrot.slane %v2483_v20, 7  ;;  %v730_v20 = vld [vmem:[%s2923_s4] sm:$0x2]  ;;  %v740_v33 = vunpack.c.l.bf16 %v736_v8 }
 0x248   :  { %v708_v57 = vadd.f32 %v706_v35, %v558_v42  ;;  %v698_v48 = vsel %vm695_vm0, %v697_v16, %v693_v63  ;;  %v711_v34 = vsub.f32 1.0, %v683_v29 }
 0x249   :  { %1915 = vtanh.f32 %v707_v44  ;;  %v712_v49 = vsub.f32 1.0, %v698_v48  ;;  %v721_v53 = vmul.f32 %v717_v60, %v683_v29  ;;  %v722_v54 = vmul.f32 %v718_v51, %v698_v48 }
 0x24a   :  { %1917 = vtanh.f32 %v708_v57  ;;  %v743_v57 = vunpack.c.l.bf16 %v738_v39  ;;  %v741_v48 = vunpack.c.h.bf16 %v736_v8  ;;  %v744_v51 = vunpack.c.h.bf16 %v738_v39  ;;  %v737_v8 = vld [vmem:[%s2922_s0 + $0x8] sm:$0x2] }
 0x24f   :  { %v1916_v26 = vpop.eup %1915 }
 0x250   :  { %v1918_v36 = vpop.eup %1917  ;;  %v713_v42 = vmul.f32 %v1916_v26, %v711_v34 }
 0x251   :  { %v714_v40 = vmul.f32 %v1918_v36, %v712_v49 }
 0x252   :  { %v2559_v13 = vadd.f32 %v721_v53, %v713_v42 }
 0x253   :  { %v2561_v58 = vadd.f32 %v722_v54, %v714_v40 }
 0x254   :  { %v725_v52 = vpack.c.bf16 %v2559_v13, %v2559_v13 }
 0x255   :  { %v726_v24 = vpack.c.bf16 %v2561_v58, %v2561_v58 }
 0x256   :  { %v731_v61 = vsel %vm729_vm9, %v725_v52, %v730_v20  ;;  %v748_v32 = vunpack.c.l.b16 %v725_v52 }
 0x257   :  { %732 = vst [vmem:[%s2923_s4] sm:$0x2] %v731_v61  ;;  %v734_v12 = vsel %vm729_vm9, %v726_v24, %v733_v4  ;;  %v749_v23 = vunpack.c.l.b16 %v726_v24 }
 0x258   :  { %735 = vst [vmem:[%s2923_s4 + $0x4] sm:$0x2] %v734_v12  ;;  %v1805_v15 = vunpack.i.l.s16 %v748_v32 }
 0x259   :  { %v1806_v30 = vunpack.i.l.s16 %v749_v23 }
 0x25a   :  { %v754_v62 = vrot.slane %v1805_v15, 2 }
 0x25b   :  { %v755_v25 = vrot.slane %v1806_v30, 1 }
 0x25d   :  { %v756_v35 = vsel %vm384_vm3, %v755_v25, %v754_v62 }
 0x25e   :  { %v757_v2 = vpack.c.b16 %v756_v35, %v756_v35 }
 0x260   :  { %767 = vmatmul.bf16.vlgmr.msra.gmra.mxu1 %v757_v2  ;;  %780 = vmatmul.bf16.vlgmr.msra.gmra.mxu2 %v757_v2 }
 0x261   :  { %793 = vmatmul.bf16.vlgmr.msra.gmra.mxu3 %v757_v2  ;;  %1160 = vmatpush.bf16.msra.mxu1 %v2115_v22 }
 0x262   :  { %1321 = vmatpush.bf16.msra.mxu2 %v2058_v3  ;;  %1334 = vmatpush.bf16.msra.mxu3 %v2069_v7 }
 0x265   :  { %1161 = vmatpush.bf16.msra.mxu1 %v2130_v27 }
 0x266   :  { %1322 = vmatpush.bf16.msra.mxu2 %v2078_v10  ;;  %1335 = vmatpush.bf16.msra.mxu3 %v2082_v11 }
 0x269   :  { %1162 = vmatpush.bf16.msra.mxu1 %v2161_v37 }
 0x26a   :  { %1323 = vmatpush.bf16.msra.mxu2 %v2100_v17  ;;  %1336 = vmatpush.bf16.msra.mxu3 %v2107_v19 }
 0x26d   :  { %1163 = vmatpush.bf16.msra.mxu1 %v2189_v46 }
 0x26e   :  { %1324 = vmatpush.bf16.msra.mxu2 %v2133_v28  ;;  %1337 = vmatpush.bf16.msra.mxu3 %v2143_v31 }
 0x271   :  { %1164 = vmatpush.bf16.msra.mxu1 %v2217_v55 }
 0x272   :  { %1325 = vmatpush.bf16.msra.mxu2 %v2164_v38  ;;  %1338 = vmatpush.bf16.msra.mxu3 %v2174_v41 }
 0x275   :  { %1165 = vmatpush.bf16.msra.mxu1 %v2245_v0 }
 0x276   :  { %1326 = vmatpush.bf16.msra.mxu2 %v2192_v47  ;;  %1339 = vmatpush.bf16.msra.mxu3 %v2202_v50 }
 0x279   :  { %1166 = vmatpush.bf16.msra.mxu1 %v2265_v9 }
 0x27a   :  { %1327 = vmatpush.bf16.msra.mxu2 %v2220_v56  ;;  %1340 = vmatpush.bf16.msra.mxu3 %v2230_v59 }
 0x27d   :  { %1167 = vmatpush.bf16.msra.mxu1 %v2280_v14 }
 0x27e   :  { %1328 = vmatpush.bf16.msra.mxu2 %v2248_v1  ;;  %1341 = vmatpush.bf16.msra.mxu3 %v2260_v6 }
 0x2dd   :  { %v768_v44 = vpop.f32.mrf.mxu1 }
 0x2de   :  { %v769_v45 = vadd.f32 %v768_v44, %v2342_v18  ;;  %v739_v44 = vld [vmem:[%s2922_s0 + $0x14] sm:$0x2] }
 0x2e0   :  { %v799_v43 = vrot.slane %v769_v45, 5  ;;  %v800_v63 = vrot.slane %v769_v45, 6 }
 0x2e2   :  { %v803_v16 = vadd.f32 %v799_v43, %v740_v33  ;;  %v804_v29 = vadd.f32 %v800_v63, %v743_v57  ;;  %v742_v43 = vunpack.c.l.bf16 %v737_v8 }
 0x2e3   :  { %v781_v60 = vpop.f32.mrf.mxu2 }
 0x2e4   :  { %v1807_v34 = vmul.f32 -1.442695, %v803_v16  ;;  %v1808_v26 = vmul.f32 -1.442695, %v804_v29  ;;  %v782_v49 = vadd.f32 %v781_v60, %v2347_v21  ;;  %v794_v36 = vpop.f32.mrf.mxu3  ;;  %v745_v29 = vunpack.c.l.bf16 %v739_v44 }
 0x2e5   :  { %v770_v42 = vpop.f32.mrf.mxu1  ;;  %v795_v33 = vadd.f32 %v794_v36, %v2360_v5 }
 0x2e6   :  { %1919 = vpow2.f32 %v1807_v34  ;;  %v844_v53 = vrot.slane %v782_v49, 5  ;;  %v845_v40 = vrot.slane %v782_v49, 6 }
 0x2e7   :  { %1921 = vpow2.f32 %v1808_v26  ;;  %v889_v49 = vrot.slane %v795_v33, 5 }
 0x2e8   :  { %v848_v54 = vadd.f32 %v844_v53, %v741_v48  ;;  %v849_v20 = vadd.f32 %v845_v40, %v744_v51  ;;  %v890_v40 = vrot.slane %v795_v33, 6 }
 0x2ea   :  { %v1809_v52 = vmul.f32 -1.442695, %v848_v54  ;;  %v1810_v4 = vmul.f32 -1.442695, %v849_v20 }
 0x2eb   :  { %v783_v24 = vpop.f32.mrf.mxu2 }
 0x2ec   :  { %v1920_v61 = vpop.eup %1919  ;;  %1923 = vpow2.f32 %v1809_v52  ;;  %v796_v32 = vpop.f32.mrf.mxu3 }
 0x2ed   :  { %v1922_v12 = vpop.eup %1921  ;;  %v811_v23 = vadd.f32 1.0, %v1920_v61  ;;  %1925 = vpow2.f32 %v1810_v4 }
 0x2ee   :  { %v812_v15 = vadd.f32 1.0, %v1922_v12 }
 0x2ef   :  { %1927 = vrcp.f32 %v811_v23  ;;  %v822_v16 = vand.u32 2147483647, %v811_v23  ;;  %v824_v48 = vand.u32 2147483648, %v811_v23  ;;  %vm818_vm11 = vweird.f32 %v811_v23 }
 0x2f0   :  { %1929 = vrcp.f32 %v812_v15  ;;  %v837_v34 = vand.u32 2147483647, %v812_v15  ;;  %v839_v51 = vand.u32 2147483648, %v812_v15  ;;  %vm833_vm14 = vweird.f32 %v812_v15 }
 0x2f1   :  { %vm823_vm13 = vcmp.eq.f32.partialorder %v822_v16, 8.507059e+37  ;;  %v825_v4 = vor.u32 1.1754944e-38, %v824_v48 }
 0x2f2   :  { %v1924_v30 = vpop.eup %1923  ;;  %vm838_vm1 = vcmp.eq.f32.partialorder %v837_v34, 8.507059e+37 }
 0x2f3   :  { %v1926_v62 = vpop.eup %1925  ;;  %v2613_v25 = vadd.f32 1.0, %v1924_v30 }
 0x2f4   :  { %v2615_v35 = vadd.f32 1.0, %v1926_v62 }
 0x2f5   :  { %v1928_v2 = vpop.eup %1927  ;;  %1931 = vrcp.f32 %v2613_v25  ;;  %v869_v32 = vand.u32 2147483648, %v2613_v25  ;;  %v867_v44 = vand.u32 2147483647, %v2613_v25  ;;  %vm863_vm6 = vweird.f32 %v2613_v25 }
 0x2f6   :  { %v1930_v39 = vpop.eup %1929  ;;  %1933 = vrcp.f32 %v2615_v35  ;;  %v814_v57 = vmul.f32 %v1928_v2, %v811_v23  ;;  %vm819_vm10 = vweird.f32 %v1928_v2  ;;  %v840_v23 = vor.u32 1.1754944e-38, %v839_v51 }
 0x2f7   :  { %v829_v45 = vmul.f32 %v1930_v39, %v812_v15  ;;  %vm834_vm12 = vweird.f32 %v1930_v39  ;;  %vm820_vm15 = vmor %vm818_vm11, %vm819_vm10  ;;  %v882_v48 = vand.u32 2147483647, %v2615_v35  ;;  %vm878_vm0 = vweird.f32 %v2615_v35 }
 0x2f8   :  { %v815_v63 = vsub.f32 1.0, %v814_v57  ;;  %vm835_vm2 = vmor %vm833_vm14, %vm834_vm12  ;;  %vm868_vm9 = vcmp.eq.f32.partialorder %v867_v44, 8.507059e+37  ;;  %vm915_vm11 = vsmask.f32 7942 }
 0x2f9   :  { %v830_v60 = vsub.f32 1.0, %v829_v45  ;;  %vm883_vm10 = vcmp.eq.f32.partialorder %v882_v48, 8.507059e+37  ;;  %vm916_vm12 = vmand %vm384_vm3, %vm915_vm11 }
 0x2fa   :  { %v816_v26 = vmul.f32 %v1928_v2, %v815_v63  ;;  %v884_v63 = vand.u32 2147483648, %v2615_v35 }
 0x2fb   :  { %v1932_v42 = vpop.eup %1931  ;;  %v831_v53 = vmul.f32 %v1930_v39, %v830_v60 }
 0x2fc   :  { %v1934_v54 = vpop.eup %1933  ;;  %v859_v36 = vmul.f32 %v1932_v42, %v2613_v25  ;;  %v817_v20 = vadd.f32 %v1928_v2, %v816_v26  ;;  %vm864_vm4 = vweird.f32 %v1932_v42  ;;  %v870_v26 = vor.u32 1.1754944e-38, %v869_v32 }
 0x2fd   :  { %v874_v52 = vmul.f32 %v1934_v54, %v2615_v35  ;;  %v832_v24 = vadd.f32 %v1930_v39, %v831_v53  ;;  %vm879_vm5 = vweird.f32 %v1934_v54  ;;  %vm865_vm7 = vmor %vm863_vm6, %vm864_vm4 }
 0x2fe   :  { %v860_v61 = vsub.f32 1.0, %v859_v36  ;;  %v821_v12 = vsel %vm820_vm15, %v1928_v2, %v817_v20  ;;  %vm880_vm8 = vmor %vm878_vm0, %vm879_vm5  ;;  %v905_v36 = vrot.slane %v2559_v13, 7 }
 0x2ff   :  { %v875_v30 = vsub.f32 1.0, %v874_v52  ;;  %v826_v62 = vsel %vm823_vm13, %v825_v4, %v821_v12  ;;  %v836_v8 = vsel %vm835_vm2, %v1930_v39, %v832_v24  ;;  %v906_v52 = vrot.slane %v2561_v58, 7  ;;  %v917_v58 = vld [vmem:[%s2923_s4] sm:$0x2] }
 0x300   :  { %v861_v33 = vmul.f32 %v1932_v42, %v860_v61  ;;  %v841_v15 = vsel %vm838_vm1, %v840_v23, %v836_v8  ;;  %v893_v57 = vmul.f32 %v889_v49, %v826_v62  ;;  %v885_v49 = vor.u32 1.1754944e-38, %v884_v63 }
 0x301   :  { %v876_v45 = vmul.f32 %v1934_v54, %v875_v30  ;;  %v894_v16 = vmul.f32 %v890_v40, %v841_v15  ;;  %v920_v30 = vld [vmem:[%s2923_s4 + $0x4] sm:$0x2] }
 0x302   :  { %v862_v2 = vadd.f32 %v1932_v42, %v861_v33  ;;  %v895_v60 = vadd.f32 %v893_v57, %v742_v43 }
 0x303   :  { %v877_v39 = vadd.f32 %v1934_v54, %v876_v45  ;;  %v896_v34 = vadd.f32 %v894_v16, %v745_v29 }
 0x304   :  { %v866_v51 = vsel %vm865_vm7, %v1932_v42, %v862_v2  ;;  %1935 = vtanh.f32 %v895_v60 }
 0x305   :  { %v881_v53 = vsel %vm880_vm8, %v1934_v54, %v877_v39  ;;  %1937 = vtanh.f32 %v896_v34  ;;  %v871_v40 = vsel %vm868_vm9, %v870_v26, %v866_v51 }
 0x306   :  { %v886_v25 = vsel %vm883_vm10, %v885_v49, %v881_v53  ;;  %v899_v20 = vsub.f32 1.0, %v871_v40  ;;  %v909_v24 = vmul.f32 %v905_v36, %v871_v40 }
 0x307   :  { %v900_v35 = vsub.f32 1.0, %v886_v25  ;;  %v910_v61 = vmul.f32 %v906_v52, %v886_v25 }
 0x30a   :  { %v1936_v43 = vpop.eup %1935 }
 0x30b   :  { %v1938_v4 = vpop.eup %1937  ;;  %v901_v29 = vmul.f32 %v1936_v43, %v899_v20 }
 0x30c   :  { %v902_v42 = vmul.f32 %v1938_v4, %v900_v35 }
 0x30d   :  { %v2637_v32 = vadd.f32 %v909_v24, %v901_v29  ;;  %v924_v24 = vld [vmem:[%s2922_s0 + $0x8] sm:$0x4] }
 0x30e   :  { %v2639_v54 = vadd.f32 %v910_v61, %v902_v42  ;;  %v926_v42 = vld [vmem:[%s2922_s0 + $0x14] sm:$0x4] }
 0x30f   :  { %v913_v13 = vpack.c.bf16 %v2637_v32, %v2637_v32 }
 0x310   :  { %v914_v12 = vpack.c.bf16 %v2639_v54, %v2639_v54 }
 0x311   :  { %v918_v23 = vsel %vm916_vm12, %v913_v13, %v917_v58  ;;  %v935_v62 = vunpack.c.l.b16 %v913_v13 }
 0x312   :  { %919 = vst [vmem:[%s2923_s4] sm:$0x2] %v918_v23  ;;  %v921_v8 = vsel %vm916_vm12, %v914_v12, %v920_v30  ;;  %v936_v44 = vunpack.c.l.b16 %v914_v12  ;;  %v929_v30 = vunpack.c.l.bf16 %v924_v24 }
 0x313   :  { %922 = vst [vmem:[%s2923_s4 + $0x4] sm:$0x2] %v921_v8  ;;  %v1811_v33 = vunpack.i.l.s16 %v935_v62  ;;  %v932_v62 = vunpack.c.l.bf16 %v926_v42 }
 0x314   :  { %v1812_v15 = vunpack.i.l.s16 %v936_v44 }
 0x315   :  { %v941_v57 = vrot.slane %v1811_v33, 3 }
 0x316   :  { %v942_v45 = vrot.slane %v1812_v15, 2 }
 0x318   :  { %v943_v63 = vsel %vm384_vm3, %v942_v45, %v941_v57 }
 0x319   :  { %v944_v16 = vpack.c.b16 %v943_v63, %v943_v63 }
 0x31b   :  { %954 = vmatmul.bf16.vlgmr.msrb.gmra.mxu0 %v944_v16  ;;  %967 = vmatmul.bf16.vlgmr.msrb.gmra.mxu1 %v944_v16 }
 0x31c   :  { %980 = vmatmul.bf16.vlgmr.msrb.gmra.mxu2 %v944_v16  ;;  %1347 = vmatpush.bf16.msrb.mxu0 %v2115_v22 }
 0x31d   :  { %1509 = vmatpush.bf16.msrb.mxu1 %v2058_v3  ;;  %1522 = vmatpush.bf16.msrb.mxu2 %v2069_v7  ;;  %v923_v3 = vld [vmem:[%s2922_s0] sm:$0x44]  ;;  %v925_v7 = vld [vmem:[%s2922_s0 + $0xc] sm:$0x44] }
 0x320   :  { %1348 = vmatpush.bf16.msrb.mxu0 %v2130_v27 }
 0x321   :  { %1510 = vmatpush.bf16.msrb.mxu1 %v2078_v10  ;;  %1523 = vmatpush.bf16.msrb.mxu2 %v2082_v11  ;;  %v927_v10 = vunpack.c.l.bf16 %v923_v3  ;;  %v930_v11 = vunpack.c.l.bf16 %v925_v7 }
 0x324   :  { %1349 = vmatpush.bf16.msrb.mxu0 %v2161_v37 }
 0x325   :  { %1511 = vmatpush.bf16.msrb.mxu1 %v2100_v17  ;;  %1524 = vmatpush.bf16.msrb.mxu2 %v2107_v19 }
 0x328   :  { %1350 = vmatpush.bf16.msrb.mxu0 %v2189_v46 }
 0x329   :  { %1512 = vmatpush.bf16.msrb.mxu1 %v2133_v28  ;;  %1525 = vmatpush.bf16.msrb.mxu2 %v2143_v31  ;;  %v928_v31 = vunpack.c.h.bf16 %v923_v3 }
 0x32c   :  { %1351 = vmatpush.bf16.msrb.mxu0 %v2217_v55 }
 0x32d   :  { %1513 = vmatpush.bf16.msrb.mxu1 %v2164_v38  ;;  %1526 = vmatpush.bf16.msrb.mxu2 %v2174_v41  ;;  %v931_v38 = vunpack.c.h.bf16 %v925_v7 }
 0x330   :  { %1352 = vmatpush.bf16.msrb.mxu0 %v2245_v0 }
 0x331   :  { %1514 = vmatpush.bf16.msrb.mxu1 %v2192_v47  ;;  %1527 = vmatpush.bf16.msrb.mxu2 %v2202_v50 }
 0x334   :  { %1353 = vmatpush.bf16.msrb.mxu0 %v2265_v9 }
 0x335   :  { %1515 = vmatpush.bf16.msrb.mxu1 %v2220_v56  ;;  %1528 = vmatpush.bf16.msrb.mxu2 %v2230_v59 }
 0x338   :  { %1354 = vmatpush.bf16.msrb.mxu0 %v2280_v14 }
 0x339   :  { %1516 = vmatpush.bf16.msrb.mxu1 %v2248_v1  ;;  %1529 = vmatpush.bf16.msrb.mxu2 %v2260_v6 }
 0x398   :  { %v955_v17 = vpop.f32.mrf.mxu0  ;;  %v968_v19 = vpop.f32.mrf.mxu1 }
 0x399   :  { %v956_v28 = vadd.f32 %v955_v17, %v2342_v18  ;;  %v969_v41 = vadd.f32 %v968_v19, %v2347_v21 }
 0x39b   :  { %v986_v47 = vrot.slane %v956_v28, 4  ;;  %v987_v50 = vrot.slane %v956_v28, 5  ;;  %v1031_v56 = vrot.slane %v969_v41, 4  ;;  %v1032_v59 = vrot.slane %v969_v41, 5 }
 0x39d   :  { %v990_v1 = vadd.f32 %v986_v47, %v927_v10  ;;  %v991_v6 = vadd.f32 %v987_v50, %v930_v11  ;;  %v1035_v2 = vadd.f32 %v1031_v56, %v928_v31  ;;  %v1036_v48 = vadd.f32 %v1032_v59, %v931_v38 }
 0x39f   :  { %v1813_v60 = vmul.f32 -1.442695, %v990_v1  ;;  %v1814_v39 = vmul.f32 -1.442695, %v991_v6  ;;  %v1815_v34 = vmul.f32 -1.442695, %v1035_v2  ;;  %v981_v26 = vpop.f32.mrf.mxu2 }
 0x3a0   :  { %v1816_v51 = vmul.f32 -1.442695, %v1036_v48  ;;  %v957_v49 = vpop.f32.mrf.mxu0  ;;  %v970_v53 = vpop.f32.mrf.mxu1  ;;  %v982_v61 = vadd.f32 %v981_v26, %v2360_v5 }
 0x3a1   :  { %1939 = vpow2.f32 %v1813_v60 }
 0x3a2   :  { %1941 = vpow2.f32 %v1814_v39  ;;  %v1076_v45 = vrot.slane %v982_v61, 4  ;;  %v1077_v31 = vrot.slane %v982_v61, 5 }
 0x3a3   :  { %1943 = vpow2.f32 %v1815_v34 }
 0x3a4   :  { %1945 = vpow2.f32 %v1816_v51 }
 0x3a7   :  { %v1940_v40 = vpop.eup %1939  ;;  %v983_v25 = vpop.f32.mrf.mxu2 }
 0x3a8   :  { %v1942_v36 = vpop.eup %1941  ;;  %v998_v20 = vadd.f32 1.0, %v1940_v40 }
 0x3a9   :  { %v1944_v43 = vpop.eup %1943  ;;  %v999_v52 = vadd.f32 1.0, %v1942_v36 }
 0x3aa   :  { %v1946_v35 = vpop.eup %1945  ;;  %1947 = vrcp.f32 %v998_v20  ;;  %v2691_v4 = vadd.f32 1.0, %v1944_v43  ;;  %v1009_v57 = vand.u32 2147483647, %v998_v20  ;;  %v1011_v16 = vand.u32 2147483648, %v998_v20 }
 0x3ab   :  { %1949 = vrcp.f32 %v999_v52  ;;  %v2693_v29 = vadd.f32 1.0, %v1946_v35  ;;  %v1024_v7 = vand.u32 2147483647, %v999_v52  ;;  %v1026_v17 = vand.u32 2147483648, %v999_v52 }
 0x3ac   :  { %1951 = vrcp.f32 %v2691_v4  ;;  %vm1005_vm15 = vweird.f32 %v998_v20  ;;  %vm1020_vm1 = vweird.f32 %v999_v52  ;;  %v1056_v47 = vand.u32 2147483648, %v2691_v4 }
 0x3ad   :  { %1953 = vrcp.f32 %v2693_v29  ;;  %v1012_v56 = vor.u32 1.1754944e-38, %v1011_v16  ;;  %vm1010_vm4 = vcmp.eq.f32.partialorder %v1009_v57, 8.507059e+37  ;;  %vm1025_vm6 = vcmp.eq.f32.partialorder %v1024_v7, 8.507059e+37 }
 0x3ae   :  { %v1027_v6 = vor.u32 1.1754944e-38, %v1026_v17  ;;  %vm1050_vm8 = vweird.f32 %v2691_v4  ;;  %v1071_v51 = vand.u32 2147483648, %v2693_v29  ;;  %v1054_v49 = vand.u32 2147483647, %v2691_v4 }
 0x3af   :  { %vm1065_vm10 = vweird.f32 %v2693_v29  ;;  %v1069_v40 = vand.u32 2147483647, %v2693_v29  ;;  %v1057_v43 = vor.u32 1.1754944e-38, %v1056_v47 }
 0x3b0   :  { %v1948_v13 = vpop.eup %1947  ;;  %v1072_v35 = vor.u32 1.1754944e-38, %v1071_v51  ;;  %vm1055_vm12 = vcmp.eq.f32.partialorder %v1054_v49, 8.507059e+37 }
 0x3b1   :  { %v1950_v12 = vpop.eup %1949  ;;  %v1001_v58 = vmul.f32 %v1948_v13, %v998_v20  ;;  %vm1006_vm13 = vweird.f32 %v1948_v13 }
 0x3b2   :  { %v1952_v23 = vpop.eup %1951  ;;  %v1016_v8 = vmul.f32 %v1950_v12, %v999_v52  ;;  %vm1021_vm14 = vweird.f32 %v1950_v12  ;;  %vm1007_vm2 = vmor %vm1005_vm15, %vm1006_vm13  ;;  %vm1070_vm13 = vcmp.eq.f32.partialorder %v1069_v40, 8.507059e+37  ;;  %vm1103_vm15 = vsmask.f32 2304 }
 0x3b3   :  { %v1954_v44 = vpop.eup %1953  ;;  %v1046_v33 = vmul.f32 %v1952_v23, %v2691_v4  ;;  %v1002_v15 = vsub.f32 1.0, %v1001_v58  ;;  %vm1022_vm5 = vmor %vm1020_vm1, %vm1021_vm14  ;;  %vm1051_vm7 = vweird.f32 %v1952_v23  ;;  %v1092_v4 = vrot.slane %v2637_v32, 7  ;;  %v1105_v32 = vld [vmem:[%s2923_s4] sm:$0x4] }
 0x3b4   :  { %v1061_v63 = vmul.f32 %v1954_v44, %v2693_v29  ;;  %v1017_v3 = vsub.f32 1.0, %v1016_v8  ;;  %vm1066_vm0 = vweird.f32 %v1954_v44  ;;  %vm1052_vm9 = vmor %vm1050_vm8, %vm1051_vm7  ;;  %vm1102_vm14 = vcmask 1042434  }
 0x3b5   :  { %v1047_v10 = vsub.f32 1.0, %v1046_v33  ;;  %v1003_v11 = vmul.f32 %v1948_v13, %v1002_v15  ;;  %vm1067_vm11 = vmor %vm1065_vm10, %vm1066_vm0  ;;  %v1108_v15 = vld [vmem:[%s2923_s4 + $0x4] sm:$0x4] }
 0x3b6   :  { %v1062_v19 = vsub.f32 1.0, %v1061_v63  ;;  %v1018_v28 = vmul.f32 %v1950_v12, %v1017_v3  ;;  %vm1104_vm1 = vmand %vm1102_vm14, %vm1103_vm15 }
 0x3b7   :  { %v1048_v38 = vmul.f32 %v1952_v23, %v1047_v10  ;;  %v1004_v41 = vadd.f32 %v1948_v13, %v1003_v11 }
 0x3b8   :  { %v1063_v50 = vmul.f32 %v1954_v44, %v1062_v19  ;;  %v1019_v59 = vadd.f32 %v1950_v12, %v1018_v28 }
 0x3b9   :  { %v1008_v1 = vsel %vm1007_vm2, %v1948_v13, %v1004_v41  ;;  %v1049_v60 = vadd.f32 %v1952_v23, %v1048_v38 }
 0x3ba   :  { %v1013_v2 = vsel %vm1010_vm4, %v1012_v56, %v1008_v1  ;;  %v1023_v48 = vsel %vm1022_vm5, %v1950_v12, %v1019_v59  ;;  %v1064_v34 = vadd.f32 %v1954_v44, %v1063_v50  ;;  %v1093_v12 = vrot.slane %v2639_v54, 7 }
 0x3bb   :  { %v1028_v39 = vsel %vm1025_vm6, %v1027_v6, %v1023_v48  ;;  %v1080_v26 = vmul.f32 %v1076_v45, %v1013_v2  ;;  %v1053_v36 = vsel %vm1052_vm9, %v1952_v23, %v1049_v60 }
 0x3bc   :  { %v1081_v53 = vmul.f32 %v1077_v31, %v1028_v39  ;;  %v1068_v52 = vsel %vm1067_vm11, %v1954_v44, %v1064_v34  ;;  %v1058_v24 = vsel %vm1055_vm12, %v1057_v43, %v1053_v36  ;;  %v1111_v31 = vld [vmem:[%s2922_s0] sm:$0x44] }
 0x3bd   :  { %v1082_v25 = vadd.f32 %v1080_v26, %v929_v30  ;;  %v1073_v42 = vsel %vm1070_vm13, %v1072_v35, %v1068_v52  ;;  %v1086_v61 = vsub.f32 1.0, %v1058_v24  ;;  %v1096_v23 = vmul.f32 %v1092_v4, %v1058_v24 }
 0x3be   :  { %v1083_v20 = vadd.f32 %v1081_v53, %v932_v62  ;;  %v1087_v29 = vsub.f32 1.0, %v1073_v42  ;;  %v1097_v8 = vmul.f32 %v1093_v12, %v1073_v42  ;;  %v1115_v50 = vunpack.c.l.bf16 %v1111_v31 }
 0x3bf   :  { %1955 = vtanh.f32 %v1082_v25 }
 0x3c0   :  { %1957 = vtanh.f32 %v1083_v20 }
 0x3c5   :  { %v1956_v13 = vpop.eup %1955 }
 0x3c6   :  { %v1958_v58 = vpop.eup %1957  ;;  %v1088_v30 = vmul.f32 %v1956_v13, %v1086_v61 }
 0x3c7   :  { %v1089_v62 = vmul.f32 %v1958_v58, %v1087_v29  ;;  %v1112_v58 = vld [vmem:[%s2922_s0 + $0x8] sm:$0x4] }
 0x3c8   :  { %v2714_v44 = vadd.f32 %v1096_v23, %v1088_v30  ;;  %v1114_v23 = vld [vmem:[%s2922_s0 + $0x14] sm:$0x4] }
 0x3c9   :  { %v2716_v33 = vadd.f32 %v1097_v8, %v1089_v62 }
 0x3ca   :  { %v1100_v54 = vpack.c.bf16 %v2714_v44, %v2714_v44 }
 0x3cb   :  { %v1101_v57 = vpack.c.bf16 %v2716_v33, %v2716_v33 }
 0x3cc   :  { %v1106_v45 = vsel %vm1104_vm1, %v1100_v54, %v1105_v32  ;;  %v1123_v63 = vunpack.c.l.b16 %v1100_v54 }
 0x3cd   :  { %1107 = vst [vmem:[%s2923_s4] sm:$0x4] %v1106_v45  ;;  %v1109_v16 = vsel %vm1104_vm1, %v1101_v57, %v1108_v15  ;;  %v1124_v3 = vunpack.c.l.b16 %v1101_v57  ;;  %v1117_v15 = vunpack.c.l.bf16 %v1112_v58 }
 0x3ce   :  { %1110 = vst [vmem:[%s2923_s4 + $0x4] sm:$0x4] %v1109_v16  ;;  %v1817_v7 = vunpack.i.l.s16 %v1123_v63  ;;  %v1120_v63 = vunpack.c.l.bf16 %v1114_v23 }
 0x3cf   :  { %v1818_v10 = vunpack.i.l.s16 %v1124_v3 }
 0x3d0   :  { %v1129_v11 = vrot.slane %v1817_v7, 4 }
 0x3d1   :  { %v1130_v17 = vrot.slane %v1818_v10, 3 }
 0x3d3   :  { %v1131_v19 = vsel %vm384_vm3, %v1130_v17, %v1129_v11 }
 0x3d4   :  { %v1132_v28 = vpack.c.b16 %v1131_v19, %v1131_v19 }
 0x3d5   :  { %v1295_v58 = vld [vmem:[%s2923_s4 + $0x4] sm:$0x4] }
 0x3d6   :  { %1142 = vmatmul.bf16.vlgmr.msrb.gmra.mxu3 %v1132_v28  ;;  %1155 = vmatmul.bf16.vlgmr.msra.gmra.mxu0 %v1132_v28 }
 0x3d7   :  { %1168 = vmatmul.bf16.vlgmr.msra.gmra.mxu1 %v1132_v28  ;;  %1535 = vmatpush.bf16.msrb.mxu3 %v2115_v22  ;;  %v1113_v22 = vld [vmem:[%s2922_s0 + $0xc] sm:$0x44] }
 0x3d8   :  { %v1119_v38 = vunpack.c.h.bf16 %v1113_v22  ;;  %v1118_v1 = vunpack.c.l.bf16 %v1113_v22 }
 0x3db   :  { %1536 = vmatpush.bf16.msrb.mxu3 %v2130_v27 }
 0x3df   :  { %1537 = vmatpush.bf16.msrb.mxu3 %v2161_v37  ;;  %v1116_v37 = vunpack.c.h.bf16 %v1111_v31 }
 0x3e3   :  { %1538 = vmatpush.bf16.msrb.mxu3 %v2189_v46 }
 0x3e7   :  { %1539 = vmatpush.bf16.msrb.mxu3 %v2217_v55 }
 0x3eb   :  { %1540 = vmatpush.bf16.msrb.mxu3 %v2245_v0 }
 0x3ef   :  { %1541 = vmatpush.bf16.msrb.mxu3 %v2265_v9 }
 0x3f3   :  { %1542 = vmatpush.bf16.msrb.mxu3 %v2280_v14 }
 0x453   :  { %v1156_v27 = vpop.f32.mrf.mxu0 }
 0x454   :  { %v1157_v46 = vadd.f32 %v1156_v27, %v2347_v21  ;;  %v1169_v55 = vpop.f32.mrf.mxu1 }
 0x455   :  { %v1170_v29 = vadd.f32 %v1169_v55, %v2360_v5 }
 0x456   :  { %v1219_v41 = vrot.slane %v1157_v46, 3  ;;  %v1220_v0 = vrot.slane %v1157_v46, 4 }
 0x457   :  { %v1264_v45 = vrot.slane %v1170_v29, 3  ;;  %v1265_v22 = vrot.slane %v1170_v29, 4 }
 0x458   :  { %v1223_v47 = vadd.f32 %v1219_v41, %v1116_v37  ;;  %v1224_v9 = vadd.f32 %v1220_v0, %v1119_v38 }
 0x459   :  { %v1143_v14 = vpop.f32.mrf.mxu3 }
 0x45a   :  { %v1821_v56 = vmul.f32 -1.442695, %v1223_v47  ;;  %v1822_v59 = vmul.f32 -1.442695, %v1224_v9  ;;  %v1144_v6 = vadd.f32 %v1143_v14, %v2342_v18 }
 0x45b   :  { %v1158_v2 = vpop.f32.mrf.mxu0 }
 0x45c   :  { %1959 = vpow2.f32 %v1821_v56  ;;  %v1174_v48 = vrot.slane %v1144_v6, 3  ;;  %v1175_v60 = vrot.slane %v1144_v6, 4  ;;  %v1171_v39 = vpop.f32.mrf.mxu1 }
 0x45d   :  { %1961 = vpow2.f32 %v1822_v59 }
 0x45e   :  { %v1178_v34 = vadd.f32 %v1174_v48, %v1115_v50  ;;  %v1179_v26 = vadd.f32 %v1175_v60, %v1118_v1 }
 0x460   :  { %v1819_v51 = vmul.f32 -1.442695, %v1178_v34  ;;  %v1820_v49 = vmul.f32 -1.442695, %v1179_v26 }
 0x461   :  { %v1145_v53 = vpop.f32.mrf.mxu3 }
 0x462   :  { %v1960_v40 = vpop.eup %1959  ;;  %1963 = vpow2.f32 %v1819_v51 }
 0x463   :  { %v1962_v25 = vpop.eup %1961  ;;  %v2752_v36 = vadd.f32 1.0, %v1960_v40  ;;  %1965 = vpow2.f32 %v1820_v49  ;;  %v1280_v40 = vrot.slane %v2714_v44, 7 }
 0x464   :  { %v2754_v20 = vadd.f32 1.0, %v1962_v25 }
 0x465   :  { %1967 = vrcp.f32 %v2752_v36  ;;  %v1244_v37 = vand.u32 2147483648, %v2752_v36  ;;  %vm1238_vm12 = vweird.f32 %v2752_v36  ;;  %v1242_v59 = vand.u32 2147483647, %v2752_v36 }
 0x466   :  { %1969 = vrcp.f32 %v2754_v20  ;;  %v1259_v1 = vand.u32 2147483648, %v2754_v20  ;;  %vm1253_vm15 = vweird.f32 %v2754_v20  ;;  %v1257_v2 = vand.u32 2147483647, %v2754_v20 }
 0x467   :  { %v1245_v34 = vor.u32 1.1754944e-38, %v1244_v37 }
 0x468   :  { %v1964_v43 = vpop.eup %1963  ;;  %v1260_v51 = vor.u32 1.1754944e-38, %v1259_v1 }
 0x469   :  { %v1966_v52 = vpop.eup %1965  ;;  %v1186_v35 = vadd.f32 1.0, %v1964_v43 }
 0x46a   :  { %v1187_v24 = vadd.f32 1.0, %v1966_v52 }
 0x46b   :  { %1971 = vrcp.f32 %v1186_v35  ;;  %v2758_v42 = vpop.eup %1967  ;;  %v1199_v16 = vand.u32 2147483648, %v1186_v35  ;;  %v1197_v10 = vand.u32 2147483647, %v1186_v35  ;;  %vm1193_vm5 = vweird.f32 %v1186_v35 }
 0x46c   :  { %1973 = vrcp.f32 %v1187_v24  ;;  %v2760_v4 = vpop.eup %1969  ;;  %v1234_v61 = vmul.f32 %v2758_v42, %v2752_v36  ;;  %v1214_v11 = vand.u32 2147483648, %v1187_v24  ;;  %v1212_v28 = vand.u32 2147483647, %v1187_v24 }
 0x46d   :  { %v1249_v13 = vmul.f32 %v2760_v4, %v2754_v20  ;;  %v1200_v38 = vor.u32 1.1754944e-38, %v1199_v16  ;;  %vm1208_vm7 = vweird.f32 %v1187_v24  ;;  %vm1239_vm0 = vweird.f32 %v2758_v42  ;;  %v1298_v16 = vld [vmem:[%s2922_s0] sm:$0x88] }
 0x46e   :  { %v1235_v8 = vsub.f32 1.0, %v1234_v61  ;;  %vm1198_vm8 = vcmp.eq.f32.partialorder %v1197_v10, 8.507059e+37  ;;  %v1215_v41 = vor.u32 1.1754944e-38, %v1214_v11  ;;  %vm1213_vm10 = vcmp.eq.f32.partialorder %v1212_v28, 8.507059e+37  ;;  %vm1240_vm13 = vmor %vm1238_vm12, %vm1239_vm0 }
 0x46f   :  { %v1250_v54 = vsub.f32 1.0, %v1249_v13  ;;  %vm1254_vm11 = vweird.f32 %v2760_v4  ;;  %v1281_v20 = vrot.slane %v2716_v33, 7  ;;  %v1292_v33 = vld [vmem:[%s2923_s4] sm:$0x4]  ;;  %v1303_v28 = vunpack.c.h.bf16 %v1298_v16 }
 0x470   :  { %v1236_v17 = vmul.f32 %v2758_v42, %v1235_v8  ;;  %vm1255_vm1 = vmor %vm1253_vm15, %vm1254_vm11 }
 0x471   :  { %v1972_v12 = vpop.eup %1971  ;;  %v1251_v31 = vmul.f32 %v2760_v4, %v1250_v54 }
 0x472   :  { %v1974_v30 = vpop.eup %1973  ;;  %v1189_v62 = vmul.f32 %v1972_v12, %v1186_v35  ;;  %vm1194_vm2 = vweird.f32 %v1972_v12  ;;  %v1237_v0 = vadd.f32 %v2758_v42, %v1236_v17 }
 0x473   :  { %v1204_v32 = vmul.f32 %v1974_v30, %v1187_v24  ;;  %vm1209_vm4 = vweird.f32 %v1974_v30  ;;  %vm1195_vm6 = vmor %vm1193_vm5, %vm1194_vm2  ;;  %v1252_v50 = vadd.f32 %v2760_v4, %v1251_v31  ;;  %vm1243_vm2 = vcmp.eq.f32.partialorder %v1242_v59, 8.507059e+37 }
 0x474   :  { %v1190_v57 = vsub.f32 1.0, %v1189_v62  ;;  %vm1210_vm9 = vmor %vm1208_vm7, %vm1209_vm4  ;;  %v1241_v39 = vsel %vm1240_vm13, %v2758_v42, %v1237_v0  ;;  %vm1258_vm4 = vcmp.eq.f32.partialorder %v1257_v2, 8.507059e+37  ;;  %vm1290_vm5 = vsmask.f32 7946 }
 0x475   :  { %v1205_v3 = vsub.f32 1.0, %v1204_v32  ;;  %v1256_v26 = vsel %vm1255_vm1, %v2760_v4, %v1252_v50  ;;  %v1246_v49 = vsel %vm1243_vm2, %v1245_v34, %v1241_v39 }
 0x476   :  { %v1191_v7 = vmul.f32 %v1972_v12, %v1190_v57  ;;  %v1261_v53 = vsel %vm1258_vm4, %v1260_v51, %v1256_v26  ;;  %v1274_v25 = vsub.f32 1.0, %v1246_v49  ;;  %v1284_v24 = vmul.f32 %v1280_v40, %v1246_v49  ;;  %v1299_v40 = vld [vmem:[%s2922_s0 + $0x8] sm:$0x8] }
 0x477   :  { %v1206_v19 = vmul.f32 %v1974_v30, %v1205_v3  ;;  %v1275_v43 = vsub.f32 1.0, %v1261_v53  ;;  %v1285_v61 = vmul.f32 %v1281_v20, %v1261_v53  ;;  %v1300_v3 = vld [vmem:[%s2922_s0 + $0xc] sm:$0x88] }
 0x478   :  { %v1192_v27 = vadd.f32 %v1972_v12, %v1191_v7  ;;  %v1302_v7 = vunpack.c.l.bf16 %v1298_v16  ;;  %v1305_v10 = vunpack.c.l.bf16 %v1300_v3  ;;  %v1306_v31 = vunpack.c.h.bf16 %v1300_v3 }
 0x479   :  { %v1207_v46 = vadd.f32 %v1974_v30, %v1206_v19 }
 0x47a   :  { %v1196_v55 = vsel %vm1195_vm6, %v1972_v12, %v1192_v27  ;;  %vm1291_vm6 = vmand %vm1102_vm14, %vm1290_vm5 }
 0x47b   :  { %v1201_v47 = vsel %vm1198_vm8, %v1200_v38, %v1196_v55  ;;  %v1211_v9 = vsel %vm1210_vm9, %v1974_v30, %v1207_v46 }
 0x47c   :  { %v1216_v14 = vsel %vm1213_vm10, %v1215_v41, %v1211_v9  ;;  %v1268_v56 = vmul.f32 %v1264_v45, %v1201_v47 }
 0x47d   :  { %v1269_v6 = vmul.f32 %v1265_v22, %v1216_v14 }
 0x47e   :  { %v1270_v48 = vadd.f32 %v1268_v56, %v1117_v15 }
 0x47f   :  { %v1271_v60 = vadd.f32 %v1269_v6, %v1120_v63 }
 0x480   :  { %1975 = vtanh.f32 %v1270_v48 }
 0x481   :  { %1977 = vtanh.f32 %v1271_v60 }
 0x486   :  { %v1976_v36 = vpop.eup %1975 }
 0x487   :  { %v1978_v52 = vpop.eup %1977  ;;  %v1276_v35 = vmul.f32 %v1976_v36, %v1274_v25  ;;  %v1301_v25 = vld [vmem:[%s2922_s0 + $0x14] sm:$0x8] }
 0x488   :  { %v1277_v42 = vmul.f32 %v1978_v52, %v1275_v43  ;;  %v1304_v52 = vunpack.c.l.bf16 %v1299_v40 }
 0x489   :  { %v2791_v4 = vadd.f32 %v1284_v24, %v1276_v35  ;;  %v1307_v35 = vunpack.c.l.bf16 %v1301_v25 }
 0x48a   :  { %v2793_v13 = vadd.f32 %v1285_v61, %v1277_v42 }
 0x48b   :  { %v1288_v44 = vpack.c.bf16 %v2791_v4, %v2791_v4 }
 0x48c   :  { %v1289_v12 = vpack.c.bf16 %v2793_v13, %v2793_v13 }
 0x48d   :  { %v1293_v29 = vsel %vm1291_vm6, %v1288_v44, %v1292_v33  ;;  %v1310_v30 = vunpack.c.l.b16 %v1288_v44 }
 0x48e   :  { %1294 = vst [vmem:[%s2923_s4] sm:$0x4] %v1293_v29  ;;  %v1296_v23 = vsel %vm1291_vm6, %v1289_v12, %v1295_v58  ;;  %v1311_v62 = vunpack.c.l.b16 %v1289_v12 }
 0x48f   :  { %1297 = vst [vmem:[%s2923_s4 + $0x4] sm:$0x4] %v1296_v23  ;;  %v1823_v8 = vunpack.i.l.s16 %v1310_v30 }
 0x490   :  { %v1824_v32 = vunpack.i.l.s16 %v1311_v62 }
 0x491   :  { %v1316_v54 = vrot.slane %v1823_v8, 5 }
 0x492   :  { %v1317_v15 = vrot.slane %v1824_v32, 4 }
 0x494   :  { %v1318_v57 = vsel %vm384_vm3, %v1317_v15, %v1316_v54 }
 0x495   :  { %v1319_v45 = vpack.c.b16 %v1318_v57, %v1318_v57 }
 0x497   :  { %1329 = vmatmul.bf16.vlgmr.msra.gmra.mxu2 %v1319_v45  ;;  %1342 = vmatmul.bf16.vlgmr.msra.gmra.mxu3 %v1319_v45 }
 0x498   :  { %1355 = vmatmul.bf16.vlgmr.msrb.gmra.mxu0 %v1319_v45 }
 0x515   :  { %v1356_v63 = vpop.f32.mrf.mxu0 }
 0x516   :  { %v1357_v53 = vadd.f32 %v1356_v63, %v2360_v5 }
 0x518   :  { %v1451_v42 = vrot.slane %v1357_v53, 2  ;;  %v1452_v29 = vrot.slane %v1357_v53, 3 }
 0x51a   :  { %v1330_v11 = vpop.f32.mrf.mxu2  ;;  %v1343_v17 = vpop.f32.mrf.mxu3 }
 0x51b   :  { %v1331_v19 = vadd.f32 %v1330_v11, %v2342_v18  ;;  %v1344_v22 = vadd.f32 %v1343_v17, %v2347_v21 }
 0x51d   :  { %v1361_v27 = vrot.slane %v1331_v19, 2  ;;  %v1362_v37 = vrot.slane %v1331_v19, 3  ;;  %v1406_v38 = vrot.slane %v1344_v22, 2  ;;  %v1407_v46 = vrot.slane %v1344_v22, 3  ;;  %v1358_v55 = vpop.f32.mrf.mxu0 }
 0x51f   :  { %v1365_v41 = vadd.f32 %v1361_v27, %v1302_v7  ;;  %v1366_v0 = vadd.f32 %v1362_v37, %v1305_v10  ;;  %v1410_v47 = vadd.f32 %v1406_v38, %v1303_v28  ;;  %v1411_v9 = vadd.f32 %v1407_v46, %v1306_v31 }
 0x521   :  { %v1825_v50 = vmul.f32 -1.442695, %v1365_v41  ;;  %v1826_v14 = vmul.f32 -1.442695, %v1366_v0  ;;  %v1827_v56 = vmul.f32 -1.442695, %v1410_v47 }
 0x522   :  { %v1828_v59 = vmul.f32 -1.442695, %v1411_v9  ;;  %v1332_v1 = vpop.f32.mrf.mxu2  ;;  %v1345_v6 = vpop.f32.mrf.mxu3 }
 0x523   :  { %1979 = vpow2.f32 %v1825_v50 }
 0x524   :  { %1981 = vpow2.f32 %v1826_v14 }
 0x525   :  { %1983 = vpow2.f32 %v1827_v56 }
 0x526   :  { %1985 = vpow2.f32 %v1828_v59 }
 0x529   :  { %v1980_v2 = vpop.eup %1979 }
 0x52a   :  { %v1982_v48 = vpop.eup %1981  ;;  %v1373_v60 = vadd.f32 1.0, %v1980_v2  ;;  %v1467_v2 = vrot.slane %v2791_v4, 7  ;;  %v1480_v4 = vld [vmem:[%s2923_s4] sm:$0x8] }
 0x52b   :  { %v1984_v39 = vpop.eup %1983  ;;  %v1374_v34 = vadd.f32 1.0, %v1982_v48 }
 0x52c   :  { %v1986_v26 = vpop.eup %1985  ;;  %1987 = vrcp.f32 %v1373_v60  ;;  %v2821_v51 = vadd.f32 1.0, %v1984_v39  ;;  %v1384_v44 = vand.u32 2147483647, %v1373_v60  ;;  %v1386_v12 = vand.u32 2147483648, %v1373_v60 }
 0x52d   :  { %1989 = vrcp.f32 %v1374_v34  ;;  %v2823_v49 = vadd.f32 1.0, %v1986_v26  ;;  %v1399_v30 = vand.u32 2147483647, %v1374_v34  ;;  %v1401_v23 = vand.u32 2147483648, %v1374_v34 }
 0x52e   :  { %1991 = vrcp.f32 %v2821_v51  ;;  %vm1380_vm14 = vweird.f32 %v1373_v60  ;;  %vm1395_vm0 = vweird.f32 %v1374_v34  ;;  %vm1385_vm9 = vcmp.eq.f32.partialorder %v1384_v44, 8.507059e+37 }
 0x52f   :  { %1993 = vrcp.f32 %v2823_v49  ;;  %v1387_v45 = vor.u32 1.1754944e-38, %v1386_v12  ;;  %vm1400_vm11 = vcmp.eq.f32.partialorder %v1399_v30, 8.507059e+37  ;;  %v1402_v3 = vor.u32 1.1754944e-38, %v1401_v23  ;;  %v1486_v30 = vld [vmem:[%s2922_s0] sm:$0x88] }
 0x530   :  { %vm1425_vm13 = vweird.f32 %v2821_v51  ;;  %v1431_v17 = vand.u32 2147483648, %v2821_v51  ;;  %v1429_v46 = vand.u32 2147483647, %v2821_v51  ;;  %v1446_v41 = vand.u32 2147483648, %v2823_v49  ;;  %v1488_v23 = vld [vmem:[%s2922_s0 + $0xc] sm:$0x88] }
 0x531   :  { %vm1440_vm4 = vweird.f32 %v2823_v49  ;;  %v1444_v47 = vand.u32 2147483647, %v2823_v49  ;;  %v1468_v39 = vrot.slane %v2793_v13, 7 }
 0x532   :  { %v1988_v36 = vpop.eup %1987  ;;  %v1432_v14 = vor.u32 1.1754944e-38, %v1431_v17  ;;  %vm1430_vm6 = vcmp.eq.f32.partialorder %v1429_v46, 8.507059e+37  ;;  %v1447_v59 = vor.u32 1.1754944e-38, %v1446_v41 }
 0x533   :  { %v1990_v20 = vpop.eup %1989  ;;  %v1376_v43 = vmul.f32 %v1988_v36, %v1373_v60  ;;  %vm1381_vm7 = vweird.f32 %v1988_v36 }
 0x534   :  { %v1391_v24 = vmul.f32 %v1990_v20, %v1374_v34  ;;  %v1992_v33 = vpop.eup %1991  ;;  %vm1396_vm8 = vweird.f32 %v1990_v20  ;;  %vm1382_vm10 = vmor %vm1380_vm14, %vm1381_vm7  ;;  %vm1445_vm14 = vcmp.eq.f32.partialorder %v1444_v47, 8.507059e+37  ;;  %vm1477_vm7 = vcmask 1043459  }
 0x535   :  { %v1377_v61 = vsub.f32 1.0, %v1376_v43  ;;  %v1994_v62 = vpop.eup %1993  ;;  %v1421_v32 = vmul.f32 %v1992_v33, %v2821_v51  ;;  %vm1397_vm12 = vmor %vm1395_vm0, %vm1396_vm8  ;;  %vm1426_vm15 = vweird.f32 %v1992_v33  ;;  %vm1478_vm0 = vsmask.f32 3328 }
 0x536   :  { %v1392_v58 = vsub.f32 1.0, %v1391_v24  ;;  %v1436_v15 = vmul.f32 %v1994_v62, %v2823_v49  ;;  %vm1441_vm1 = vweird.f32 %v1994_v62  ;;  %vm1427_vm2 = vmor %vm1425_vm13, %vm1426_vm15 }
 0x537   :  { %v1378_v8 = vmul.f32 %v1988_v36, %v1377_v61  ;;  %v1422_v63 = vsub.f32 1.0, %v1421_v32  ;;  %vm1442_vm5 = vmor %vm1440_vm4, %vm1441_vm1  ;;  %v1493_v32 = vunpack.c.l.bf16 %v1488_v23 }
 0x538   :  { %v1393_v54 = vmul.f32 %v1990_v20, %v1392_v58  ;;  %v1437_v7 = vsub.f32 1.0, %v1436_v15  ;;  %vm1479_vm8 = vmand %vm1477_vm7, %vm1478_vm0 }
 0x539   :  { %v1379_v57 = vadd.f32 %v1988_v36, %v1378_v8  ;;  %v1423_v11 = vmul.f32 %v1992_v33, %v1422_v63  ;;  %v1490_v8 = vunpack.c.l.bf16 %v1486_v30 }
 0x53a   :  { %v1394_v16 = vadd.f32 %v1990_v20, %v1393_v54  ;;  %v1438_v31 = vmul.f32 %v1994_v62, %v1437_v7 }
 0x53b   :  { %v1383_v10 = vsel %vm1382_vm10, %v1988_v36, %v1379_v57  ;;  %v1424_v37 = vadd.f32 %v1992_v33, %v1423_v11  ;;  %v1494_v11 = vunpack.c.h.bf16 %v1488_v23 }
 0x53c   :  { %v1388_v19 = vsel %vm1385_vm9, %v1387_v45, %v1383_v10  ;;  %v1398_v28 = vsel %vm1397_vm12, %v1990_v20, %v1394_v16  ;;  %v1439_v55 = vadd.f32 %v1994_v62, %v1438_v31  ;;  %v1483_v20 = vld [vmem:[%s2923_s4 + $0x4] sm:$0x8]  ;;  %v1491_v16 = vunpack.c.h.bf16 %v1486_v30 }
 0x53d   :  { %v1403_v22 = vsel %vm1400_vm11, %v1402_v3, %v1398_v28  ;;  %v1455_v27 = vmul.f32 %v1451_v42, %v1388_v19  ;;  %v1428_v50 = vsel %vm1427_vm2, %v1992_v33, %v1424_v37 }
 0x53e   :  { %v1456_v38 = vmul.f32 %v1452_v29, %v1403_v22  ;;  %v1443_v56 = vsel %vm1442_vm5, %v1994_v62, %v1439_v55  ;;  %v1433_v1 = vsel %vm1430_vm6, %v1432_v14, %v1428_v50 }
 0x53f   :  { %v1457_v0 = vadd.f32 %v1455_v27, %v1304_v52  ;;  %v1448_v6 = vsel %vm1445_vm14, %v1447_v59, %v1443_v56  ;;  %v1461_v48 = vsub.f32 1.0, %v1433_v1  ;;  %v1471_v49 = vmul.f32 %v1467_v2, %v1433_v1  ;;  %v1487_v1 = vld [vmem:[%s2922_s0 + $0x8] sm:$0x8]  ;;  %v1489_v2 = vld [vmem:[%s2922_s0 + $0x14] sm:$0x8] }
 0x540   :  { %v1458_v9 = vadd.f32 %v1456_v38, %v1307_v35  ;;  %v1462_v34 = vsub.f32 1.0, %v1448_v6  ;;  %v1472_v40 = vmul.f32 %v1468_v39, %v1448_v6 }
 0x541   :  { %1995 = vtanh.f32 %v1457_v0 }
 0x542   :  { %1997 = vtanh.f32 %v1458_v9 }
 0x547   :  { %v1996_v60 = vpop.eup %1995 }
 0x548   :  { %v1998_v26 = vpop.eup %1997  ;;  %v1463_v51 = vmul.f32 %v1996_v60, %v1461_v48 }
 0x549   :  { %v1464_v53 = vmul.f32 %v1998_v26, %v1462_v34  ;;  %v1492_v34 = vunpack.c.l.bf16 %v1487_v1 }
 0x54a   :  { %v2846_v25 = vadd.f32 %v1471_v49, %v1463_v51  ;;  %v1495_v49 = vunpack.c.l.bf16 %v1489_v2 }
 0x54b   :  { %v2848_v36 = vadd.f32 %v1472_v40, %v1464_v53 }
 0x54c   :  { %v1475_v13 = vpack.c.bf16 %v2846_v25, %v2846_v25 }
 0x54d   :  { %v1476_v43 = vpack.c.bf16 %v2848_v36, %v2848_v36 }
 0x54e   :  { %v1481_v52 = vsel %vm1479_vm8, %v1475_v13, %v1480_v4  ;;  %v1498_v35 = vunpack.c.l.b16 %v1475_v13 }
 0x54f   :  { %1482 = vst [vmem:[%s2923_s4] sm:$0x8] %v1481_v52  ;;  %v1484_v24 = vsel %vm1479_vm8, %v1476_v43, %v1483_v20  ;;  %v1499_v42 = vunpack.c.l.b16 %v1476_v43 }
 0x550   :  { %1485 = vst [vmem:[%s2923_s4 + $0x4] sm:$0x8] %v1484_v24  ;;  %v1829_v61 = vunpack.i.l.s16 %v1498_v35 }
 0x551   :  { %v1830_v44 = vunpack.i.l.s16 %v1499_v42 }
 0x552   :  { %v1504_v12 = vrot.slane %v1829_v61, 6 }
 0x553   :  { %v1505_v33 = vrot.slane %v1830_v44, 5 }
 0x555   :  { %v1506_v29 = vsel %vm384_vm3, %v1505_v33, %v1504_v12 }
 0x556   :  { %v1507_v58 = vpack.c.b16 %v1506_v29, %v1506_v29 }
 0x558   :  { %1517 = vmatmul.bf16.vlgmr.msrb.gmra.mxu1 %v1507_v58  ;;  %1530 = vmatmul.bf16.vlgmr.msrb.gmra.mxu2 %v1507_v58 }
 0x559   :  { %1543 = vmatmul.bf16.vlgmr.msrb.gmra.mxu3 %v1507_v58 }
 0x5d5   :  { %v1518_v62 = vpop.f32.mrf.mxu1 }
 0x5d6   :  { %v1519_v54 = vadd.f32 %v1518_v62, %v2342_v18 }
 0x5d8   :  { %v1549_v15 = vrot.slane %v1519_v54, 1  ;;  %v1550_v57 = vrot.slane %v1519_v54, 2 }
 0x5da   :  { %v1553_v45 = vadd.f32 %v1549_v15, %v1490_v8  ;;  %v1554_v63 = vadd.f32 %v1550_v57, %v1493_v32 }
 0x5db   :  { %v1531_v3 = vpop.f32.mrf.mxu2 }
 0x5dc   :  { %v1831_v7 = vmul.f32 -1.442695, %v1553_v45  ;;  %v1832_v10 = vmul.f32 -1.442695, %v1554_v63  ;;  %v1532_v17 = vadd.f32 %v1531_v3, %v2347_v21  ;;  %v1544_v19 = vpop.f32.mrf.mxu3 }
 0x5dd   :  { %v1520_v28 = vpop.f32.mrf.mxu1  ;;  %v1545_v48 = vadd.f32 %v1544_v19, %v2360_v5 }
 0x5de   :  { %1999 = vpow2.f32 %v1831_v7  ;;  %v1594_v31 = vrot.slane %v1532_v17, 1  ;;  %v1595_v22 = vrot.slane %v1532_v17, 2 }
 0x5df   :  { %2001 = vpow2.f32 %v1832_v10  ;;  %v1639_v43 = vrot.slane %v1545_v48, 1  ;;  %v1640_v24 = vrot.slane %v1545_v48, 2  ;;  %v1670_v48 = vld [vmem:[%s2923_s4 + $0x4] sm:$0x8] }
 0x5e0   :  { %v1598_v27 = vadd.f32 %v1594_v31, %v1491_v16  ;;  %v1599_v37 = vadd.f32 %v1595_v22, %v1494_v11 }
 0x5e2   :  { %v1833_v18 = vmul.f32 -1.442695, %v1598_v27  ;;  %v1834_v38 = vmul.f32 -1.442695, %v1599_v37 }
 0x5e3   :  { %v1533_v46 = vpop.f32.mrf.mxu2 }
 0x5e4   :  { %v2000_v55 = vpop.eup %1999  ;;  %2003 = vpow2.f32 %v1833_v18  ;;  %v1546_v41 = vpop.f32.mrf.mxu3 }
 0x5e5   :  { %v2002_v0 = vpop.eup %2001  ;;  %v1561_v47 = vadd.f32 1.0, %v2000_v55  ;;  %2005 = vpow2.f32 %v1834_v38  ;;  %v1655_v38 = vrot.slane %v2846_v25, 7  ;;  %v1656_v41 = vrot.slane %v2848_v36, 7  ;;  %v1667_v25 = vld [vmem:[%s2923_s4] sm:$0x8] }
 0x5e6   :  { %v1562_v9 = vadd.f32 1.0, %v2002_v0 }
 0x5e7   :  { %2007 = vrcp.f32 %v1561_v47  ;;  %v1572_v51 = vand.u32 2147483647, %v1561_v47  ;;  %v1574_v53 = vand.u32 2147483648, %v1561_v47  ;;  %vm1568_vm9 = vweird.f32 %v1561_v47 }
 0x5e8   :  { %2009 = vrcp.f32 %v1562_v9  ;;  %v1587_v4 = vand.u32 2147483647, %v1562_v9  ;;  %v1589_v20 = vand.u32 2147483648, %v1562_v9  ;;  %vm1583_vm12 = vweird.f32 %v1562_v9 }
 0x5e9   :  { %vm1573_vm11 = vcmp.eq.f32.partialorder %v1572_v51, 8.507059e+37  ;;  %v1575_v12 = vor.u32 1.1754944e-38, %v1574_v53 }
 0x5ea   :  { %v2004_v21 = vpop.eup %2003  ;;  %vm1588_vm15 = vcmp.eq.f32.partialorder %v1587_v4, 8.507059e+37  ;;  %v1590_v23 = vor.u32 1.1754944e-38, %v1589_v20 }
 0x5eb   :  { %v2006_v50 = vpop.eup %2005  ;;  %v2876_v14 = vadd.f32 1.0, %v2004_v21 }
 0x5ec   :  { %v2878_v56 = vadd.f32 1.0, %v2006_v50 }
 0x5ed   :  { %v2008_v59 = vpop.eup %2007  ;;  %2011 = vrcp.f32 %v2876_v14  ;;  %v1619_v58 = vand.u32 2147483648, %v2876_v14  ;;  %v1617_v54 = vand.u32 2147483647, %v2876_v14  ;;  %vm1613_vm5 = vweird.f32 %v2876_v14 }
 0x5ee   :  { %v2010_v6 = vpop.eup %2009  ;;  %2013 = vrcp.f32 %v2878_v56  ;;  %v1564_v60 = vmul.f32 %v2008_v59, %v1561_v47  ;;  %vm1569_vm3 = vweird.f32 %v2008_v59  ;;  %v1634_v16 = vand.u32 2147483648, %v2878_v56 }
 0x5ef   :  { %v1579_v39 = vmul.f32 %v2010_v6, %v1562_v9  ;;  %vm1584_vm10 = vweird.f32 %v2010_v6  ;;  %vm1570_vm13 = vmor %vm1568_vm9, %vm1569_vm3  ;;  %v1632_v10 = vand.u32 2147483647, %v2878_v56  ;;  %vm1628_vm14 = vweird.f32 %v2878_v56 }
 0x5f0   :  { %v1565_v26 = vsub.f32 1.0, %v1564_v60  ;;  %vm1585_vm1 = vmor %vm1583_vm12, %vm1584_vm10  ;;  %v1620_v28 = vor.u32 1.1754944e-38, %v1619_v58  ;;  %v1635_v22 = vor.u32 1.1754944e-38, %v1634_v16  ;;  %vm1618_vm8 = vcmp.eq.f32.partialorder %v1617_v54, 8.507059e+37 }
 0x5f1   :  { %v1580_v40 = vsub.f32 1.0, %v1579_v39  ;;  %vm1633_vm3 = vcmp.eq.f32.partialorder %v1632_v10, 8.507059e+37  ;;  %vm1665_vm9 = vsmask.f32 7950 }
 0x5f2   :  { %v1566_v13 = vmul.f32 %v2008_v59, %v1565_v26  ;;  %vm1666_vm10 = vmand %vm1477_vm7, %vm1665_vm9 }
 0x5f3   :  { %v2012_v52 = vpop.eup %2011  ;;  %v1581_v35 = vmul.f32 %v2010_v6, %v1580_v40 }
 0x5f4   :  { %v2014_v42 = vpop.eup %2013  ;;  %v1609_v5 = vmul.f32 %v2012_v52, %v2876_v14  ;;  %v1567_v61 = vadd.f32 %v2008_v59, %v1566_v13  ;;  %vm1614_vm2 = vweird.f32 %v2012_v52 }
 0x5f5   :  { %v1624_v44 = vmul.f32 %v2014_v42, %v2878_v56  ;;  %v1582_v33 = vadd.f32 %v2010_v6, %v1581_v35  ;;  %vm1629_vm4 = vweird.f32 %v2014_v42  ;;  %vm1615_vm6 = vmor %vm1613_vm5, %vm1614_vm2 }
 0x5f6   :  { %v1610_v29 = vsub.f32 1.0, %v1609_v5  ;;  %v1571_v30 = vsel %vm1570_vm13, %v2008_v59, %v1567_v61  ;;  %vm1630_vm0 = vmor %vm1628_vm14, %vm1629_vm4 }
 0x5f7   :  { %v1625_v62 = vsub.f32 1.0, %v1624_v44  ;;  %v1576_v8 = vsel %vm1573_vm11, %v1575_v12, %v1571_v30  ;;  %v1586_v32 = vsel %vm1585_vm1, %v2010_v6, %v1582_v33 }
 0x5f8   :  { %v1611_v15 = vmul.f32 %v2012_v52, %v1610_v29  ;;  %v1591_v57 = vsel %vm1588_vm15, %v1590_v23, %v1586_v32  ;;  %v1643_v45 = vmul.f32 %v1639_v43, %v1576_v8 }
 0x5f9   :  { %v1626_v63 = vmul.f32 %v2014_v42, %v1625_v62  ;;  %v1644_v3 = vmul.f32 %v1640_v24, %v1591_v57 }
 0x5fa   :  { %v1612_v7 = vadd.f32 %v2012_v52, %v1611_v15  ;;  %v1645_v11 = vadd.f32 %v1643_v45, %v1492_v34 }
 0x5fb   :  { %v1627_v17 = vadd.f32 %v2014_v42, %v1626_v63  ;;  %v1646_v19 = vadd.f32 %v1644_v3, %v1495_v49 }
 0x5fc   :  { %v1616_v31 = vsel %vm1615_vm6, %v2012_v52, %v1612_v7  ;;  %2015 = vtanh.f32 %v1645_v11 }
 0x5fd   :  { %v1631_v27 = vsel %vm1630_vm0, %v2014_v42, %v1627_v17  ;;  %2017 = vtanh.f32 %v1646_v19  ;;  %v1621_v37 = vsel %vm1618_vm8, %v1620_v28, %v1616_v31 }
 0x5fe   :  { %v1636_v18 = vsel %vm1633_vm3, %v1635_v22, %v1631_v27  ;;  %v1649_v46 = vsub.f32 1.0, %v1621_v37  ;;  %v1659_v21 = vmul.f32 %v1655_v38, %v1621_v37 }
 0x5ff   :  { %v1650_v0 = vsub.f32 1.0, %v1636_v18  ;;  %v1660_v14 = vmul.f32 %v1656_v41, %v1636_v18 }
 0x602   :  { %v2016_v55 = vpop.eup %2015 }
 0x603   :  { %v2018_v47 = vpop.eup %2017  ;;  %v1651_v9 = vmul.f32 %v2016_v55, %v1649_v46 }
 0x604   :  { %v1652_v50 = vmul.f32 %v2018_v47, %v1650_v0 }
 0x605   :  { %v1661_v56 = vadd.f32 %v1659_v21, %v1651_v9 }
 0x606   :  { %v1662_v59 = vadd.f32 %v1660_v14, %v1652_v50 }
 0x607   :  { %v1663_v1 = vpack.c.bf16 %v1661_v56, %v1661_v56  ;;  %1678 = vst [vmem:[#allocation2 - $0x7] sm:$0x80] %v1661_v56 }
 0x608   :  { %v1664_v6 = vpack.c.bf16 %v1662_v59, %v1662_v59  ;;  %v1675_v2 = vrot.slane %v1662_v59, 7  ;;  %1683 = vst [vmem:[%s2924_s5 - $0x7] sm:$0x80] %v1661_v56 }
 0x609   :  { %v1668_v36 = vsel %vm1666_vm10, %v1663_v1, %v1667_v25 }
 0x60a   :  { %1669 = vst [vmem:[%s2923_s4] sm:$0x8] %v1668_v36  ;;  %v1671_v60 = vsel %vm1666_vm10, %v1664_v6, %v1670_v48 }
 0x60b   :  { %1672 = vst [vmem:[%s2923_s4 + $0x4] sm:$0x8] %v1671_v60 }
 0x60c   :  { %1679 = vst [vmem:[#allocation2 + $0x1] sm:$0x1] %v1675_v2 }
 0x60d   :  { %1684 = vst [vmem:[%s2924_s5 + $0x1] sm:$0x1] %v1675_v2 }

</bundles_post_ra>
